<compile_context>
chip_gen: v7x
topology: tpu7x:2x2x1
jax: 0.10.0
libtpu: 0.0.40
codegen_flags: <defaults>
</compile_context>

<pallas_src>
import functools
import math

import jax
import jax.numpy as jnp
import numpy as np
from jax.experimental import pallas as pl
from jax.experimental.pallas import tpu as pltpu


_NEG_SLOPE = 0.01  # F.leaky_relu(negative_slope=0.01) in TYPEDecoder.forward


def _leaky_relu(x, slope=_NEG_SLOPE):
    # Identical to where(x > 0, x, slope * x) for slope in (0, 1); one fewer VALU op.
    return jnp.maximum(x, slope * x)


def _round_up(x, m):
    return ((x + m - 1) // m) * m


# ---------------------------------------------------------------------------
# Pallas kernel: one (batch, point-tile) step, everything "N-on-lanes".
# ---------------------------------------------------------------------------
def _type_decoder_kernel(points_ref, zcol_ref, wp_ref, ws_ref, wc_ref,
                         wh_ref, bh_ref, wo_ref, bo_ref, out_ref,
                         *, num_layers, num_freqs, matmul_dtype):
    # points_ref : (3, TN)          xyz on sublanes, points on lanes
    # zcol_ref   : (df, 1)          per-batch  W1_z @ z + b1  (hoisted to the wrapper)
    # wp/ws/wc   : (df,3)/(df,3F)/(df,3F)   linear_1 columns split by PE group
    # wh/bh      : (L, df, df) / (L, df, 1)
    # wo/bo      : (1, df) / (1, 1)
    pts = points_ref[...]                                            # (3, TN) f32

    # ---- positional encoding, sublane-dense ----
    # scaled row (i*3 + d) = 2^i * pts[d]; one sin + one cos over the whole (3F, TN) block.
    # The power-of-two scaling is exact and kept in f32 (phase accuracy at high freqs).
    scaled = jnp.concatenate(
        [pts if i == 0 else pts * float(2 ** i) for i in range(num_freqs)], axis=0)
    sin_b = jnp.sin(scaled)                                          # (3F, TN)
    cos_b = jnp.cos(scaled)                                          # (3F, TN)

    dt = matmul_dtype
    # ---- linear_1 as three accumulating MXU dots (no 39-row sublane concat) ----
    h = jnp.dot(wp_ref[...], pts.astype(dt), preferred_element_type=jnp.float32)
    h = h + jnp.dot(ws_ref[...], sin_b.astype(dt), preferred_element_type=jnp.float32)
    h = h + jnp.dot(wc_ref[...], cos_b.astype(dt), preferred_element_type=jnp.float32)
    h = _leaky_relu(h + zcol_ref[...])                               # (df, TN) f32

    # ---- hidden MLP, statically unrolled (LLO visibility), weights VMEM-resident ----
    for i in range(num_layers):
        h = _leaky_relu(
            jnp.dot(wh_ref[i], h.astype(dt), preferred_element_type=jnp.float32)
            + bh_ref[i])

    # ---- linear_out (df -> 1) on the MXU (idle slot); lane-dense (1, TN) store ----
    out_ref[...] = (jnp.dot(wo_ref[...], h.astype(dt),
                            preferred_element_type=jnp.float32) + bo_ref[...])


# ---------------------------------------------------------------------------
# LipLinearLayer weight normalization (applied once per forward, per layer).
# TODO(synk): LipLinearLayer is not defined in the provided source; standard
#             Lipschitz-MLP normalization W * min(1, softplus(c)/rowabssum(W)) is assumed.
# ---------------------------------------------------------------------------
def lip_weight_normalization(w, c):
    absrowsum = jnp.sum(jnp.abs(w), axis=1, keepdims=True)
    scale = jnp.minimum(1.0, jax.nn.softplus(c) / absrowsum)
    return w * scale


# ---------------------------------------------------------------------------
# Wrapper
# ---------------------------------------------------------------------------
def type_decoder_forward(z, points, params, *, num_freqs=6, lip_reg=True,
                         tile_n=1024, matmul_dtype=jnp.bfloat16):
    """Pallas implementation of TYPEDecoder.forward (use_diag branches are identical)."""
    B, N, pdim = points.shape
    z_dim = z.shape[1]
    w1, b1, c1, wh, bh, ch, wo, bo, co = params
    df = w1.shape[0]
    num_layers = wh.shape[0]
    out_dim = wo.shape[0]
    pe_dim = pdim * (1 + 2 * num_freqs)
    assert out_dim == 1, "kernel assumes linear_out projects to a single channel"
    assert w1.shape[1] == pe_dim + z_dim, "linear_1 input dim must equal PE_dim + z_dim"

    if lip_reg:
        w1 = lip_weight_normalization(w1, c1)
        wh = jax.vmap(lip_weight_normalization)(wh, ch)
        wo = lip_weight_normalization(wo, co)

    # --- split / permute linear_1 columns to the kernel's [pts | sin_all | cos_all] order ---
    w1_pe = w1[:, :pe_dim]                                    # (df, 39)
    w1_z = w1[:, pe_dim:]                                     # (df, z_dim)
    w_pts = w1_pe[:, :pdim]                                   # (df, 3)
    rest = w1_pe[:, pdim:].reshape(df, num_freqs, 2, pdim)    # original order: sin_i, cos_i per freq
    w_sin = rest[:, :, 0, :].reshape(df, num_freqs * pdim)    # column (i*3+d) <-> sin(2^i * x_d)
    w_cos = rest[:, :, 1, :].reshape(df, num_freqs * pdim)    # column (i*3+d) <-> cos(2^i * x_d)

    # --- per-batch z contribution of linear_1, hoisted out of the kernel ---
    z_col = (jnp.einsum('oz,bz->bo', w1_z, z) + b1[None, :])[:, :, None]   # (B, df, 1) f32

    dt = matmul_dtype
    w_pts = w_pts.astype(dt)
    w_sin = w_sin.astype(dt)
    w_cos = w_cos.astype(dt)
    wh_k = wh.astype(dt)                                       # (L, df, df)
    wo_k = wo.reshape(1, df).astype(dt)                        # (1, df) row, out_dim == 1
    bh_k = bh.reshape(num_layers, df, 1).astype(jnp.float32)
    bo_k = bo.reshape(1, 1).astype(jnp.float32)
    z_col = z_col.astype(jnp.float32)

    # --- lane tiling: tn multiple of 128, capped to padded N; keep >= 2 grid steps (v7x 2 TCs) ---
    n_pad_min = _round_up(N, 128)
    tn = max(128, _round_up(min(tile_n, n_pad_min), 128))
    if B * pl.cdiv(n_pad_min, tn) < 2 and n_pad_min >= 256:
        tn = _round_up(pl.cdiv(n_pad_min, 2), 128)
    n_pad = pl.cdiv(N, tn) * tn

    # transposed, lane-dense layout: points on lanes
    pts_t = jnp.transpose(points, (0, 2, 1))                   # (B, 3, N)
    if n_pad != N:
        pts_t = jnp.pad(pts_t, ((0, 0), (0, 0), (0, n_pad - N)))

    kernel = functools.partial(_type_decoder_kernel, num_layers=num_layers,
                               num_freqs=num_freqs, matmul_dtype=dt)

    # advisory cost estimate for XLA scheduling
    flops = int(B * n_pad * (2 * pe_dim * df + num_layers * 2 * df * df + 2 * df))
    transc = int(B * n_pad * pdim * 2 * num_freqs)
    w_itemsize = jnp.dtype(dt).itemsize
    param_bytes = int((w_pts.size + w_sin.size + w_cos.size + wh_k.size + wo_k.size) * w_itemsize
                      + (bh_k.size + bo_k.size + z_col.size) * 4)
    bytes_acc = int(pts_t.size * 4 + param_bytes + B * n_pad * 4)
    cost = pl.CostEstimate(flops=flops, transcendentals=transc, bytes_accessed=bytes_acc)

    out = pl.pallas_call(
        kernel,
        out_shape=jax.ShapeDtypeStruct((B, 1, n_pad), jnp.float32),
        grid=(B, n_pad // tn),
        in_specs=[
            pl.BlockSpec((None, pdim, tn), lambda b, n: (b, 0, n)),          # points (3, TN)
            pl.BlockSpec((None, df, 1), lambda b, n: (b, 0, 0)),             # z_col (df, 1)
            pl.BlockSpec((df, pdim), lambda b, n: (0, 0)),                   # W1 pts cols
            pl.BlockSpec((df, num_freqs * pdim), lambda b, n: (0, 0)),       # W1 sin cols
            pl.BlockSpec((df, num_freqs * pdim), lambda b, n: (0, 0)),       # W1 cos cols
            pl.BlockSpec((num_layers, df, df), lambda b, n: (0, 0, 0)),      # hidden weights
            pl.BlockSpec((num_layers, df, 1), lambda b, n: (0, 0, 0)),       # hidden biases
            pl.BlockSpec((1, df), lambda b, n: (0, 0)),                      # W_out row
            pl.BlockSpec((1, 1), lambda b, n: (0, 0)),                       # b_out
        ],
        out_specs=pl.BlockSpec((None, 1, tn), lambda b, n: (b, 0, n)),       # lane-dense output
        compiler_params=pltpu.CompilerParams(
            dimension_semantics=("parallel", "parallel"),
            vmem_limit_bytes=32 * 1024 * 1024),
        cost_estimate=cost,
    )(pts_t, z_col, w_pts, w_sin, w_cos, wh_k, bh_k, wo_k, bo_k)

    # (B, 1, n_pad) -> (B, n_pad, 1) is a free reshape; drop padding.
    return out.reshape(B, n_pad, 1)[:, :N, :]


# ---------------------------------------------------------------------------
# Deterministic parameter init (PyTorch Linear-style uniform + LipLinear c init).
# Weights use PyTorch (out, in) layout.
# ---------------------------------------------------------------------------
def init_params(key, z_dim, df_dim, mlp_num, *, num_freqs=6, point_dim=3, out_dim=1):
    pe_dim = point_dim * (1 + 2 * num_freqs)
    in1 = pe_dim + z_dim
    keys = jax.random.split(key, 2 * (mlp_num + 2))

    def linear(kw, kb, fan_in, fan_out):
        bound = 1.0 / math.sqrt(fan_in)
        w = jax.random.uniform(kw, (fan_out, fan_in), jnp.float32, -bound, bound)
        b = jax.random.uniform(kb, (fan_out,), jnp.float32, -bound, bound)
        c = jnp.max(jnp.sum(jnp.abs(w), axis=1))             # LipLinearLayer c init
        return w, b, c

    w1, b1, c1 = linear(keys[0], keys[1], in1, df_dim)
    whs, bhs, chs = [], [], []
    for i in range(mlp_num):
        w, b, c = linear(keys[2 + 2 * i], keys[3 + 2 * i], df_dim, df_dim)
        whs.append(w); bhs.append(b); chs.append(c)
    wh = jnp.stack(whs); bh = jnp.stack(bhs); ch = jnp.stack(chs)
    wo, bo, co = linear(keys[-2], keys[-1], df_dim, out_dim)
    return w1, b1, c1, wh, bh, ch, wo, bo, co


# ---------------------------------------------------------------------------
# Pure-JAX reference (same math, PyTorch layout / feature order) for correctness.
# ---------------------------------------------------------------------------
def reference_forward(z, points, params, *, num_freqs=6, lip_reg=True):
    w1, b1, c1, wh, bh, ch, wo, bo, co = params
    if lip_reg:
        w1 = lip_weight_normalization(w1, c1)
        wh = jax.vmap(lip_weight_normalization)(wh, ch)
        wo = lip_weight_normalization(wo, co)

    B, N, _ = points.shape
    feats = [points]
    for i in range(num_freqs):
        f = float(2.0 ** i)
        feats.append(jnp.sin(points * f))
        feats.append(jnp.cos(points * f))
    pe = jnp.concatenate(feats, axis=-1)                     # (B, N, 39)
    z_t = jnp.tile(z[:, None, :], (1, N, 1))                 # (B, N, z_dim)
    x = jnp.concatenate([pe, z_t], axis=-1)

    def lrelu(v):
        return jnp.where(v > 0, v, _NEG_SLOPE * v)

    h = lrelu(jnp.einsum('bnd,od->bno', x, w1) + b1)
    for i in range(wh.shape[0]):
        h = lrelu(jnp.einsum('bnd,od->bno', h, wh[i]) + bh[i])
    return jnp.einsum('bnd,od->bno', h, wo) + bo


if __name__ == "__main__":
    key = jax.random.PRNGKey(0)
    B, N = 2, 512
    z_dim = 16
    df_dim = 32
    mlp_num = 3
    num_freqs = 6           # num_encoding_functions=6 in the PyTorch forward
    point_dim = 3

    kz, kp, kw = jax.random.split(key, 3)
    z = jax.random.normal(kz, (B, z_dim), jnp.float32)
    points = jax.random.uniform(kp, (B, N, point_dim), jnp.float32, -1.0, 1.0)
    params = init_params(kw, z_dim, df_dim, mlp_num,
                         num_freqs=num_freqs, point_dim=point_dim, out_dim=1)

    ref = reference_forward(z, points, params, num_freqs=num_freqs, lip_reg=True)

    # f32 MXU-operand path: tight correctness check.
    out_f32 = type_decoder_forward(z, points, params, num_freqs=num_freqs,
                                   lip_reg=True, tile_n=1024,
                                   matmul_dtype=jnp.float32)
    out_f32 = jax.block_until_ready(out_f32)
    assert out_f32.shape == (B, N, 1)
    np.testing.assert_allclose(np.asarray(out_f32), np.asarray(ref), rtol=2e-3, atol=2e-3)

    # bf16 MXU-operand path (perf config for v6e/v7x): loose check vs f32 reference.
    out_bf16 = type_decoder_forward(z, points, params, num_freqs=num_freqs,
                                    lip_reg=True, tile_n=1024,
                                    matmul_dtype=jnp.bfloat16)
    out_bf16 = jax.block_until_ready(out_bf16)
    assert out_bf16.shape == (B, N, 1)
    np.testing.assert_allclose(np.asarray(out_bf16), np.asarray(ref), rtol=3e-2, atol=3e-2)

    print("KERNEL_OK")
</pallas_src>

<mosaic_0001>
module attributes {stable_mosaic.version = 11 : i64} {
  func.func @_type_decoder_kernel(%arg0: i32, %arg1: i32, %arg2: memref<1x3x512xf32, #tpu.memory_space<vmem>>, %arg3: memref<1x32x1xf32, #tpu.memory_space<vmem>>, %arg4: memref<32x3xf32, #tpu.memory_space<vmem>>, %arg5: memref<32x18xf32, #tpu.memory_space<vmem>>, %arg6: memref<32x18xf32, #tpu.memory_space<vmem>>, %arg7: memref<3x32x32xf32, #tpu.memory_space<vmem>>, %arg8: memref<3x32x1xf32, #tpu.memory_space<vmem>>, %arg9: memref<1x32xf32, #tpu.memory_space<vmem>>, %arg10: memref<1x1xf32, #tpu.memory_space<vmem>>, %arg11: memref<1x1x512xf32, #tpu.memory_space<vmem>>) attributes {dimension_semantics = [#tpu.dimension_semantics<parallel>, #tpu.dimension_semantics<parallel>], iteration_bounds = array<i64: 2, 1>, scalar_prefetch = 0 : i64, scratch_operands = 0 : i64, tpu.core_type = #tpu.core_type<tc>, window_params = [{transform_indices = @transform_0, window_bounds = array<i64: 1, 3, 512>}, {transform_indices = @transform_1, window_bounds = array<i64: 1, 32, 1>}, {pipeline_mode = #tpu.pipeline_mode<synchronous>, transform_indices = @transform_2, window_bounds = array<i64: 32, 3>}, {pipeline_mode = #tpu.pipeline_mode<synchronous>, transform_indices = @transform_3, window_bounds = array<i64: 32, 18>}, {pipeline_mode = #tpu.pipeline_mode<synchronous>, transform_indices = @transform_4, window_bounds = array<i64: 32, 18>}, {pipeline_mode = #tpu.pipeline_mode<synchronous>, transform_indices = @transform_5, window_bounds = array<i64: 3, 32, 32>}, {pipeline_mode = #tpu.pipeline_mode<synchronous>, transform_indices = @transform_6, window_bounds = array<i64: 3, 32, 1>}, {pipeline_mode = #tpu.pipeline_mode<synchronous>, transform_indices = @transform_7, window_bounds = array<i64: 1, 32>}, {pipeline_mode = #tpu.pipeline_mode<synchronous>, transform_indices = @transform_8, window_bounds = array<i64: 1, 1>}, {transform_indices = @transform_9, window_bounds = array<i64: 1, 1, 512>}]} {
    %c0 = arith.constant 0 : index
    %c0_0 = arith.constant 0 : index
    %c0_1 = arith.constant 0 : index
    %0 = vector.load %arg2[%c0, %c0_0, %c0_1] : memref<1x3x512xf32, #tpu.memory_space<vmem>>, vector<1x3x512xf32>
    %1 = vector.shape_cast %0 : vector<1x3x512xf32> to vector<3x512xf32>
    %cst = arith.constant 2.000000e+00 : f32
    %2 = vector.broadcast %cst : f32 to vector<3x512xf32>
    %3 = arith.mulf %1, %2 : vector<3x512xf32>
    %cst_2 = arith.constant 4.000000e+00 : f32
    %4 = vector.broadcast %cst_2 : f32 to vector<3x512xf32>
    %5 = arith.mulf %1, %4 : vector<3x512xf32>
    %cst_3 = arith.constant 8.000000e+00 : f32
    %6 = vector.broadcast %cst_3 : f32 to vector<3x512xf32>
    %7 = arith.mulf %1, %6 : vector<3x512xf32>
    %cst_4 = arith.constant 1.600000e+01 : f32
    %8 = vector.broadcast %cst_4 : f32 to vector<3x512xf32>
    %9 = arith.mulf %1, %8 : vector<3x512xf32>
    %cst_5 = arith.constant 3.200000e+01 : f32
    %10 = vector.broadcast %cst_5 : f32 to vector<3x512xf32>
    %11 = arith.mulf %1, %10 : vector<3x512xf32>
    %12 = tpu.concatenate %1, %3, %5, %7, %9, %11 in 0 : vector<3x512xf32>, vector<3x512xf32>, vector<3x512xf32>, vector<3x512xf32>, vector<3x512xf32>, vector<3x512xf32> -> vector<18x512xf32>
    %13 = math.sin %12 : vector<18x512xf32>
    %14 = math.cos %12 : vector<18x512xf32>
    %c0_6 = arith.constant 0 : index
    %c0_7 = arith.constant 0 : index
    %15 = vector.load %arg4[%c0_6, %c0_7] : memref<32x3xf32, #tpu.memory_space<vmem>>, vector<32x3xf32>
    %cst_8 = arith.constant dense<0.000000e+00> : vector<32x512xf32>
    %16 = tpu.matmul %15, %1, %cst_8 {dimension_numbers = #tpu.dot_dimension_numbers<[1], [0], [0], [1], [0, 0, 1, 1], [], []>} : vector<32x3xf32>, vector<3x512xf32>, vector<32x512xf32> -> vector<32x512xf32>
    %c0_9 = arith.constant 0 : index
    %c0_10 = arith.constant 0 : index
    %17 = vector.load %arg5[%c0_9, %c0_10] : memref<32x18xf32, #tpu.memory_space<vmem>>, vector<32x18xf32>
    %cst_11 = arith.constant dense<0.000000e+00> : vector<32x512xf32>
    %18 = tpu.matmul %17, %13, %cst_11 {dimension_numbers = #tpu.dot_dimension_numbers<[1], [0], [0], [1], [0, 0, 1, 1], [], []>} : vector<32x18xf32>, vector<18x512xf32>, vector<32x512xf32> -> vector<32x512xf32>
    %19 = arith.addf %16, %18 : vector<32x512xf32>
    %c0_12 = arith.constant 0 : index
    %c0_13 = arith.constant 0 : index
    %20 = vector.load %arg6[%c0_12, %c0_13] : memref<32x18xf32, #tpu.memory_space<vmem>>, vector<32x18xf32>
    %cst_14 = arith.constant dense<0.000000e+00> : vector<32x512xf32>
    %21 = tpu.matmul %20, %14, %cst_14 {dimension_numbers = #tpu.dot_dimension_numbers<[1], [0], [0], [1], [0, 0, 1, 1], [], []>} : vector<32x18xf32>, vector<18x512xf32>, vector<32x512xf32> -> vector<32x512xf32>
    %22 = arith.addf %19, %21 : vector<32x512xf32>
    %c0_15 = arith.constant 0 : index
    %c0_16 = arith.constant 0 : index
    %c0_17 = arith.constant 0 : index
    %23 = vector.load %arg3[%c0_15, %c0_16, %c0_17] : memref<1x32x1xf32, #tpu.memory_space<vmem>>, vector<1x32x1xf32>
    %24 = vector.shape_cast %23 : vector<1x32x1xf32> to vector<32x1xf32>
    %25 = vector.broadcast %24 : vector<32x1xf32> to vector<32x512xf32>
    %26 = arith.addf %22, %25 : vector<32x512xf32>
    %cst_18 = arith.constant 0.00999999977 : f32
    %27 = vector.broadcast %cst_18 : f32 to vector<32x512xf32>
    %28 = arith.mulf %27, %26 : vector<32x512xf32>
    %29 = arith.maximumf %26, %28 : vector<32x512xf32>
    %c0_19 = arith.constant 0 : index
    %c0_20 = arith.constant 0 : index
    %c0_21 = arith.constant 0 : index
    %30 = vector.load %arg7[%c0_19, %c0_20, %c0_21] : memref<3x32x32xf32, #tpu.memory_space<vmem>>, vector<1x32x32xf32>
    %31 = vector.shape_cast %30 : vector<1x32x32xf32> to vector<32x32xf32>
    %cst_22 = arith.constant dense<0.000000e+00> : vector<32x512xf32>
    %32 = tpu.matmul %31, %29, %cst_22 {dimension_numbers = #tpu.dot_dimension_numbers<[1], [0], [0], [1], [0, 0, 1, 1], [], []>} : vector<32x32xf32>, vector<32x512xf32>, vector<32x512xf32> -> vector<32x512xf32>
    %c0_23 = arith.constant 0 : index
    %c0_24 = arith.constant 0 : index
    %c0_25 = arith.constant 0 : index
    %33 = vector.load %arg8[%c0_23, %c0_24, %c0_25] : memref<3x32x1xf32, #tpu.memory_space<vmem>>, vector<1x32x1xf32>
    %34 = vector.shape_cast %33 : vector<1x32x1xf32> to vector<32x1xf32>
    %35 = vector.broadcast %34 : vector<32x1xf32> to vector<32x512xf32>
    %36 = arith.addf %32, %35 : vector<32x512xf32>
    %cst_26 = arith.constant 0.00999999977 : f32
    %37 = vector.broadcast %cst_26 : f32 to vector<32x512xf32>
    %38 = arith.mulf %37, %36 : vector<32x512xf32>
    %39 = arith.maximumf %36, %38 : vector<32x512xf32>
    %c1 = arith.constant 1 : index
    %c0_27 = arith.constant 0 : index
    %c0_28 = arith.constant 0 : index
    %40 = vector.load %arg7[%c1, %c0_27, %c0_28] : memref<3x32x32xf32, #tpu.memory_space<vmem>>, vector<1x32x32xf32>
    %41 = vector.shape_cast %40 : vector<1x32x32xf32> to vector<32x32xf32>
    %cst_29 = arith.constant dense<0.000000e+00> : vector<32x512xf32>
    %42 = tpu.matmul %41, %39, %cst_29 {dimension_numbers = #tpu.dot_dimension_numbers<[1], [0], [0], [1], [0, 0, 1, 1], [], []>} : vector<32x32xf32>, vector<32x512xf32>, vector<32x512xf32> -> vector<32x512xf32>
    %c1_30 = arith.constant 1 : index
    %c0_31 = arith.constant 0 : index
    %c0_32 = arith.constant 0 : index
    %43 = vector.load %arg8[%c1_30, %c0_31, %c0_32] : memref<3x32x1xf32, #tpu.memory_space<vmem>>, vector<1x32x1xf32>
    %44 = vector.shape_cast %43 : vector<1x32x1xf32> to vector<32x1xf32>
    %45 = vector.broadcast %44 : vector<32x1xf32> to vector<32x512xf32>
    %46 = arith.addf %42, %45 : vector<32x512xf32>
    %cst_33 = arith.constant 0.00999999977 : f32
    %47 = vector.broadcast %cst_33 : f32 to vector<32x512xf32>
    %48 = arith.mulf %47, %46 : vector<32x512xf32>
    %49 = arith.maximumf %46, %48 : vector<32x512xf32>
    %c2 = arith.constant 2 : index
    %c0_34 = arith.constant 0 : index
    %c0_35 = arith.constant 0 : index
    %50 = vector.load %arg7[%c2, %c0_34, %c0_35] : memref<3x32x32xf32, #tpu.memory_space<vmem>>, vector<1x32x32xf32>
    %51 = vector.shape_cast %50 : vector<1x32x32xf32> to vector<32x32xf32>
    %cst_36 = arith.constant dense<0.000000e+00> : vector<32x512xf32>
    %52 = tpu.matmul %51, %49, %cst_36 {dimension_numbers = #tpu.dot_dimension_numbers<[1], [0], [0], [1], [0, 0, 1, 1], [], []>} : vector<32x32xf32>, vector<32x512xf32>, vector<32x512xf32> -> vector<32x512xf32>
    %c2_37 = arith.constant 2 : index
    %c0_38 = arith.constant 0 : index
    %c0_39 = arith.constant 0 : index
    %53 = vector.load %arg8[%c2_37, %c0_38, %c0_39] : memref<3x32x1xf32, #tpu.memory_space<vmem>>, vector<1x32x1xf32>
    %54 = vector.shape_cast %53 : vector<1x32x1xf32> to vector<32x1xf32>
    %55 = vector.broadcast %54 : vector<32x1xf32> to vector<32x512xf32>
    %56 = arith.addf %52, %55 : vector<32x512xf32>
    %cst_40 = arith.constant 0.00999999977 : f32
    %57 = vector.broadcast %cst_40 : f32 to vector<32x512xf32>
    %58 = arith.mulf %57, %56 : vector<32x512xf32>
    %59 = arith.maximumf %56, %58 : vector<32x512xf32>
    %c0_41 = arith.constant 0 : index
    %c0_42 = arith.constant 0 : index
    %60 = vector.load %arg9[%c0_41, %c0_42] : memref<1x32xf32, #tpu.memory_space<vmem>>, vector<1x32xf32>
    %cst_43 = arith.constant dense<0.000000e+00> : vector<1x512xf32>
    %61 = tpu.matmul %60, %59, %cst_43 {dimension_numbers = #tpu.dot_dimension_numbers<[1], [0], [0], [1], [0, 0, 1, 1], [], []>} : vector<1x32xf32>, vector<32x512xf32>, vector<1x512xf32> -> vector<1x512xf32>
    %c0_44 = arith.constant 0 : index
    %c0_45 = arith.constant 0 : index
    %62 = vector.load %arg10[%c0_44, %c0_45] : memref<1x1xf32, #tpu.memory_space<vmem>>, vector<1x1xf32>
    %63 = vector.broadcast %62 : vector<1x1xf32> to vector<1x512xf32>
    %64 = arith.addf %61, %63 : vector<1x512xf32>
    %c0_46 = arith.constant 0 : index
    %c0_47 = arith.constant 0 : index
    %c0_48 = arith.constant 0 : index
    %65 = vector.load %arg11[%c0_46, %c0_47, %c0_48] : memref<1x1x512xf32, #tpu.memory_space<vmem>>, vector<1x1x512xf32>
    %66 = vector.shape_cast %65 : vector<1x1x512xf32> to vector<1x512xf32>
    %67 = vector.shape_cast %64 : vector<1x512xf32> to vector<1x1x512xf32>
    tpu.vector_store %arg11[%c0_46, %c0_47, %c0_48], %67 {strides = array<i32>} : memref<1x1x512xf32, #tpu.memory_space<vmem>>, vector<1x1x512xf32>,
    return
  }
  func.func @transform_0(%arg0: i32, %arg1: i32) -> (i32, i32, i32) {
    %c0_i32 = arith.constant 0 : i32
    %c0_i32_0 = arith.constant 0 : i32
    return %arg0, %c0_i32, %arg1 : i32, i32, i32
  }
  func.func @transform_1(%arg0: i32, %arg1: i32) -> (i32, i32, i32) {
    %c0_i32 = arith.constant 0 : i32
    %c0_i32_0 = arith.constant 0 : i32
    %c0_i32_1 = arith.constant 0 : i32
    return %arg0, %c0_i32, %c0_i32_0 : i32, i32, i32
  }
  func.func @transform_2(%arg0: i32, %arg1: i32) -> (i32, i32) {
    %c0_i32 = arith.constant 0 : i32
    %c0_i32_0 = arith.constant 0 : i32
    %c0_i32_1 = arith.constant 0 : i32
    return %c0_i32, %c0_i32_0 : i32, i32
  }
  func.func @transform_3(%arg0: i32, %arg1: i32) -> (i32, i32) {
    %c0_i32 = arith.constant 0 : i32
    %c0_i32_0 = arith.constant 0 : i32
    %c0_i32_1 = arith.constant 0 : i32
    return %c0_i32, %c0_i32_0 : i32, i32
  }
  func.func @transform_4(%arg0: i32, %arg1: i32) -> (i32, i32) {
    %c0_i32 = arith.constant 0 : i32
    %c0_i32_0 = arith.constant 0 : i32
    %c0_i32_1 = arith.constant 0 : i32
    return %c0_i32, %c0_i32_0 : i32, i32
  }
  func.func @transform_5(%arg0: i32, %arg1: i32) -> (i32, i32, i32) {
    %c0_i32 = arith.constant 0 : i32
    %c0_i32_0 = arith.constant 0 : i32
    %c0_i32_1 = arith.constant 0 : i32
    %c0_i32_2 = arith.constant 0 : i32
    return %c0_i32, %c0_i32_0, %c0_i32_1 : i32, i32, i32
  }
  func.func @transform_6(%arg0: i32, %arg1: i32) -> (i32, i32, i32) {
    %c0_i32 = arith.constant 0 : i32
    %c0_i32_0 = arith.constant 0 : i32
    %c0_i32_1 = arith.constant 0 : i32
    %c0_i32_2 = arith.constant 0 : i32
    return %c0_i32, %c0_i32_0, %c0_i32_1 : i32, i32, i32
  }
  func.func @transform_7(%arg0: i32, %arg1: i32) -> (i32, i32) {
    %c0_i32 = arith.constant 0 : i32
    %c0_i32_0 = arith.constant 0 : i32
    %c0_i32_1 = arith.constant 0 : i32
    return %c0_i32, %c0_i32_0 : i32, i32
  }
  func.func @transform_8(%arg0: i32, %arg1: i32) -> (i32, i32) {
    %c0_i32 = arith.constant 0 : i32
    %c0_i32_0 = arith.constant 0 : i32
    %c0_i32_1 = arith.constant 0 : i32
    return %c0_i32, %c0_i32_0 : i32, i32
  }
  func.func @transform_9(%arg0: i32, %arg1: i32) -> (i32, i32, i32) {
    %c0_i32 = arith.constant 0 : i32
    %c0_i32_0 = arith.constant 0 : i32
    return %arg0, %c0_i32, %arg1 : i32, i32, i32
  }
}

</mosaic_0001>

<bundles_post_ra>
// kernel: tpu_custom_call.1
= control target key start
LH: loop header
LB: loop body
LE: loop exit
PB: predicated region body
PF: predicated region fallthrough
CT: control target
= control target key end

     0   :  { %s7066_s0 = inlined_call_operand.vmem [shape: f32[2,3,512], index: 0, kind: input, shape index: {}]   ;;  %s7067_s1 = inlined_call_operand.vmem [shape: f32[2,32,1], index: 1, kind: input, shape index: {}]   ;;  %s7068_s2 = inlined_call_operand.vmem [shape: f32[32,3], index: 2, kind: input, shape index: {}]   ;;  %s7069_s3 = inlined_call_operand.vmem [shape: f32[32,18], index: 3, kind: input, shape index: {}]   ;;  %s7070_s4 = inlined_call_operand.vmem [shape: f32[32,18], index: 4, kind: input, shape index: {}]   ;;  %s7071_s5 = inlined_call_operand.vmem [shape: f32[3,32,32], index: 5, kind: input, shape index: {}]   ;;  %s7072_s6 = inlined_call_operand.vmem [shape: f32[3,32,1], index: 6, kind: input, shape index: {}]   ;;  %s7073_s7 = inlined_call_operand.vmem [shape: f32[1,32], index: 7, kind: input, shape index: {}]   ;;  %s7074_s8 = inlined_call_operand.<no memory space> [shape: f32[1,1], index: 8, kind: input, shape index: {}]   ;;  %s7075_s9 = inlined_call_operand.hbm [shape: f32[2,1,512], index: 9, kind: output, shape index: {}]  }
   0x1   :  { %v14_v0 = vstv %s7074_s8 }
   0x2   :  { %15 = vst [vmem:[#allocation2] sm:$0x1] %v14_v0 }
   0x3   :  { %16 = vsyncpa [#allocation4], 0 }
   0x4   :  { %18 = vsyncpa [#allocation4 + $0x1], 0  ;;  %s5334_s11 = smov 0   ;;  %s5336_s12 = smov 0  }
   0x5   :  { %s5338_s13 = smov 0   ;;  %s5340_s14 = smov 0  }
   0x6   :  { %s5342_s15 = smov 0   ;;  %s5344_s16 = smov 0  }
   0x7 LB: > { %s4720_s8 = sadd.s32 4294967295, %s5269_s16   ;;  %s4721_s17 = sadd.s32 4294967294, %s5269_s16   ;;  %s5269_s16 = sphi %s5344_s16, %s24_s16   ;;  %s5265_s15 = sphi %s5342_s15, %s7121_s15   ;;  %s5261_s14 = sphi %s5340_s14, %s7120_s14   ;;  %s5257_s13 = sphi %s5338_s13, %s7119_s13   ;;  %s5253_s12 = sphi %s5336_s12, %s7118_s12   ;;  %s5249_s11 = sphi %s5334_s11, %s7117_s11  }
   0x8   : > { %s36_s18 = sadd.s32 1, %s5265_s15  ;;  %s246_s19 = sadd.s32 1, %s5257_s13 }
   0x9   : > { %p38_p0 = scmp.ge.s32.totalorder %s36_s18, 2  ;;  %p256_p1 = scmp.ne.s32.totalorder %s5257_s13, %s5253_s12 }
   0xa   : > { %p257_p2 = scmp.eq.s32.totalorder %s4720_s8, 1  ;;  %p262_p3 = scmp.ne.s32.totalorder %s5253_s12, %s5249_s11 }
   0xb   : > { %s7123_s18 = smov (%p38_p0, %s36_s18), 0  ;;  %p263_p5 = scmp.eq.s32.totalorder %s4721_s17, 1 }
   0xc   : > { %p5374_p4 = por %p257_p2, %p256_p1  ;;  %s241_s21 = ssub.s32 %s5265_s15, %s7123_s18 }
   0xd   : > { %p4724_p6 = scmp.ge.s32.totalorder %s5269_s16, 1  ;;  %p244_p7 = scmp.eq.s32.totalorder %s241_s21, 0 }
   0xe   : > { %p5381_p8 = por %p263_p5, %p262_p3  ;;  %p323_p9 = scmp.lt.s32.totalorder %s5269_s16, 3 }
   0xf   : > { %s5387_s23 = scalar_select %p244_p7, %s5257_s13, %s246_s19  }
  0x10   : > { %p324_p10 = pnand %p4724_p6, %p323_p9 }
  0x11   : > { %p369_p11 = scmp.lt.s32.totalorder (!%p324_p10), %s5261_s14, 1  ;;  %vm7077_vm0 = vcmask (!%p324_p10), 1042432   ;;  %vm7080_vm1 = vcmask (!%p324_p10), 1045504   ;;  %vm466_vm2 = vcmask (!%p324_p10), 1040384   ;;  %vm7079_vm3 = vcmask (!%p324_p10), 1043456   ;;  %s4911_s27 = sshll.u32 (!%p324_p10), %s5261_s14, 6 }
  0x12   : > { %327 = sbr.rel (%p324_p10) target bundleno = 1618 (0x652), region = 56  ;;  %vm7078_vm4 = vcmask (!%p324_p10), 1046528   ;;  %v5271_v61 = vmov (!%p324_p10), 683565275   ;;  %v5272_v63 = vmov (!%p324_p10), 2475754826   ;;  %s7019_s17 = scalar_lea.hbm (!%p324_p10), %s7075_s9, %s4911_s27 }
  0x19   : > { %s5391_s24 = scalar_select %p369_p11, %s5261_s14, 1 }
  0x1a   : > { %s5280_s14 = smov [#allocation3]  }
  0x1b   : > { %s4909_s25 = sshll.u32 %s5391_s24, 4  ;;  %s4910_s29 = sshll.u32 %s5391_s24, 5 }
  0x1c   : > { %s5397_s28 = scalar_lea.vmem %s7066_s0, %s4909_s25  ;;  %s6712_s8 = scalar_lea.vmem %s7067_s1, %s4910_s29 }
  0x1d   : > { %v5400_v1 = vld [vmem:[%s5397_s28] sm:$0x77]  ;;  %v5403_v2 = vld [vmem:[%s5397_s28 + $0x8] sm:$0x77]  ;;  %s5195_s24 = sshll.u32 %s5280_s14, 4  ;;  %s5196_s24 = int_to_ptr.vmem [resolvable:$false] %s5195_s24 }
  0x1e   : > { %v5406_v3 = vmul.f32 2.0, %v5400_v1  ;;  %v5409_v4 = vmul.f32 4.0, %v5400_v1  ;;  %v5412_v5 = vmul.f32 8.0, %v5400_v1  ;;  %v5415_v6 = vmul.f32 32.0, %v5400_v1  ;;  %s5197_s25 = scalar_lea.vmem %s5196_s24, 128 }
  0x1f   : > { %v5418_v7 = vmul.f32 2.0, %v5403_v2  ;;  %v5422_v8 = vcombine.high %v5400_v1, %v5400_v1  ;;  %v5431_v12 = vmul.f32 16.0, %v5400_v1  ;;  %v5436_v14 = vmul.f32 4.0, %v5403_v2 }
  0x20   : > { %v404_v9 = vcombine.high %v5406_v3, %v5406_v3  ;;  %v416_v10 = vcombine.high %v5409_v4, %v5409_v4  ;;  %v428_v11 = vcombine.high %v5412_v5, %v5412_v5  ;;  %v446_v13 = vcombine.high %v5415_v6, %v5415_v6 }
  0x21   : > { %v405_v18 = vcombine.high %v5418_v7, %v5418_v7  ;;  %v5452_v24 = vcombine.high %v5403_v2, %v5403_v2  ;;  %v417_v25 = vcombine.high %v5436_v14, %v5436_v14  ;;  %v5465_v32 = vmul.f32 8.0, %v5403_v2 }
  0x22   : > { %v407_v15 = vrot.slane %v404_v9, 5  ;;  %v419_v16 = vrot.slane %v416_v10, 2  ;;  %v431_v17 = vrot.slane %v428_v11, 7  ;;  %v5440_v19 = vrot.slane %v446_v13, 1 }
  0x23   : > { %v409_v29 = vrot.slane %v405_v18, 5  ;;  %v5471_v37 = vrot.slane %v417_v25, 2  ;;  %v429_v41 = vcombine.high %v5465_v32, %v5465_v32  ;;  %v5483_v48 = vmul.f32 32.0, %v5403_v2 }
  0x24   : > { %v458_v20 = vsel %vm7077_vm0, %v5422_v8, %v407_v15  ;;  %v468_v21 = vsel %vm466_vm2, %v419_v16, %v431_v17  ;;  %v5273_v9 = vmov 2131351028   ;;  %v5274_v11 = vmov 2102212464  }
  0x25   : > { %v5446_v22 = vsel %vm7080_vm1, %v458_v20, %v419_v16  ;;  %v473_v23 = vsel %vm7079_vm3, %v468_v21, %v5431_v12  ;;  %v460_v39 = vsel %vm7077_vm0, %v5452_v24, %v409_v29  ;;  %v5485_v50 = vrot.slane %v429_v41, 7 }
  0x26   : > { %v5458_v26 = vsel %vm7078_vm4, %v473_v23, %v5440_v19  ;;  %v585_v27 = vand.u32 2147483647, %v5446_v22  ;;  %v588_v28 = vand.u32 2139095040, %v5446_v22  ;;  %v5479_v42 = vsel %vm7080_vm1, %v460_v39, %v5471_v37 }
  0x27   : > { %v1001_v30 = vand.u32 2147483647, %v5458_v26  ;;  %v1004_v31 = vand.u32 2139095040, %v5458_v26  ;;  %v796_v47 = vand.u32 2139095040, %v5479_v42  ;;  %v7076_v59 = vand.u32 2147483647, %v5479_v42 }
  0x28   : > { %v589_v33 = vshrl.u32 %v588_v28, 23  ;;  %v592_v34 = vand.u32 8388607, %v585_v27  ;;  %v5275_v15 = vmov 920167782  }
  0x29   : > { %v1005_v35 = vshrl.u32 %v1004_v31, 23  ;;  %v1008_v36 = vand.u32 8388607, %v1001_v30  ;;  %v797_v51 = vshrl.u32 %v796_v47, 23  ;;  %v5276_v28 = vmov 1326507024  }
  0x2a   : > { %v4734_v38 = vadd.s32 4294967169, %v589_v33  ;;  %v593_v43 = vor.u32 8388608, %v592_v34 }
  0x2b   : > { %v4750_v40 = vadd.s32 4294967169, %v1005_v35  ;;  %v1009_v45 = vor.u32 8388608, %v1008_v36  ;;  %v5499_v17 = vadd.s32 4294967169, %v797_v51 }
  0x2c   : > { %v595_v44 = vadd.s32 1, %v4734_v38  ;;  %v5487_v54 = vshll.u32 %v593_v43, 8 }
  0x2d   : > { %v1011_v46 = vadd.s32 1, %v4750_v40  ;;  %v5491_v58 = vshll.u32 %v1009_v45, 8 }
  0x2e   : > { %vm596_vm5 = vcmp.gt.s32.totalorder %v595_v44, 0 }
  0x2f   : > { %v597_v49 = vsel %vm596_vm5, %v595_v44, 0  ;;  %vm1012_vm6 = vcmp.gt.s32.totalorder %v1011_v46, 0 }
  0x30   : > { %v598_v52 = vshrl.u32 %v597_v49, 5  ;;  %v599_v53 = vand.u32 31, %v597_v49  ;;  %v1013_v55 = vsel %vm1012_vm6, %v1011_v46, 0 }
  0x31   : > { %v5489_v56 = vshrl.u32 %v1013_v55, 5  ;;  %v1015_v57 = vand.u32 31, %v1013_v55 }
  0x32   : > { %v600_v60 = vsub.s32 32, %v599_v53  ;;  %v602_v62 = vshll.u32 %v5271_v61, %v599_v53  ;;  %v605_v0 = vshll.u32 %v5272_v63, %v599_v53  ;;  %v608_v10 = vshll.u32 %v5273_v9, %v599_v53 }
  0x33   : > { %v611_v13 = vshll.u32 %v5274_v11, %v599_v53  ;;  %v614_v16 = vshll.u32 %v5275_v15, %v599_v53  ;;  %vm617_vm7 = vcmp.lt.s32.totalorder %v598_v52, 1  ;;  %vm618_vm8 = vcmp.lt.s32.totalorder %v598_v52, 2 }
  0x34   : > { %v601_v18 = vshrl.u32 %v5271_v61, %v600_v60  ;;  %v603_v20 = vshrl.u32 %v5272_v63, %v600_v60  ;;  %v606_v21 = vshrl.u32 %v5273_v9, %v600_v60  ;;  %v609_v23 = vshrl.u32 %v5274_v11, %v600_v60 }
  0x35   : > { %v612_v25 = vshrl.u32 %v5275_v15, %v600_v60  ;;  %v615_v29 = vshrl.u32 %v5276_v28, %v600_v60  ;;  %vm620_vm9 = vcmp.lt.s32.totalorder %v598_v52, 4  ;;  %v1016_v35 = vsub.s32 32, %v1015_v57 }
  0x36   : > { %v604_v31 = vor.u32 %v603_v20, %v602_v62  ;;  %v607_v33 = vor.u32 %v606_v21, %v605_v0  ;;  %v610_v34 = vor.u32 %v609_v23, %v608_v10  ;;  %vm619_vm10 = vcmp.lt.s32.totalorder %v598_v52, 3 }
  0x37   : > { %v613_v36 = vor.u32 %v612_v25, %v611_v13  ;;  %v616_v38 = vor.u32 %v615_v29, %v614_v16  ;;  %v1018_v39 = vshll.u32 %v5271_v61, %v1015_v57  ;;  %v1021_v49 = vshll.u32 %v5272_v63, %v1015_v57 }
  0x38   : > { %v621_v40 = vsel %vm617_vm7, %v601_v18, %v604_v31  ;;  %v622_v41 = vsel %vm620_vm9, %v610_v34, 2102212464  ;;  %v625_v43 = vsel %vm617_vm7, %v604_v31, %v607_v33  ;;  %v629_v44 = vsel %vm617_vm7, %v607_v33, %v610_v34 }
  0x39   : > { %v623_v45 = vsel %vm619_vm10, %v607_v33, %v622_v41  ;;  %v626_v46 = vsel %vm620_vm9, %v613_v36, 920167782  ;;  %v630_v47 = vsel %vm620_vm9, %v616_v38, 1326507024  ;;  %v1017_v55 = vshrl.u32 %v5271_v61, %v1016_v35 }
  0x3a   : > { %v627_v51 = vsel %vm619_vm10, %v610_v34, %v626_v46  ;;  %v631_v53 = vsel %vm619_vm10, %v613_v36, %v630_v47  ;;  %v1019_v60 = vshrl.u32 %v5272_v63, %v1016_v35  ;;  %v624_v62 = vsel %vm618_vm8, %v621_v40, %v623_v45 }
  0x3b   : > { %v628_v0 = vsel %vm618_vm8, %v625_v43, %v627_v51  ;;  %v632_v10 = vsel %vm618_vm8, %v629_v44, %v631_v53  ;;  %v1022_v13 = vshrl.u32 %v5273_v9, %v1016_v35  ;;  %v1024_v29 = vshll.u32 %v5273_v9, %v1015_v57 }
  0x3c   : > { %v5519_v16 = vmul.u32.u64.low %v5487_v54, %v632_v10  ;;  %v5520_v18 = vmul.u32.u64.high %v5487_v54, %v632_v10, %v5519_v16  ;;  %v5523_v20 = vmul.u32.u64.low %v5487_v54, %v628_v0  ;;  %v5524_v21 = vmul.u32.u64.high %v5487_v54, %v628_v0, %v5523_v20 }
  0x3d   : > { %v1020_v23 = vor.u32 %v1019_v60, %v1018_v39  ;;  %v1023_v25 = vor.u32 %v1022_v13, %v1021_v49  ;;  %v1025_v31 = vshrl.u32 %v5274_v11, %v1016_v35  ;;  %v1027_v52 = vshll.u32 %v5274_v11, %v1015_v57 }
  0x3e   : > { %v1028_v33 = vshrl.u32 %v5275_v15, %v1016_v35  ;;  %v1030_v34 = vshll.u32 %v5275_v15, %v1015_v57  ;;  %v1031_v36 = vshrl.u32 %v5276_v28, %v1016_v35  ;;  %v640_v38 = vmul.u32 %v5487_v54, %v624_v62 }
  0x3f   : > { %v1026_v40 = vor.u32 %v1025_v31, %v1024_v29  ;;  %vm1033_vm11 = vcmp.lt.s32.totalorder %v5489_v56, 1  ;;  %vm1034_vm12 = vcmp.lt.s32.totalorder %v5489_v56, 2  ;;  %vm642_vm13 = vc.u32 %v5520_v18, %v5523_v20 }
  0x40   : > { %v643_v39 = vadd.s32 1, %v5524_v21  ;;  %v1029_v41 = vor.u32 %v1028_v33, %v1027_v52  ;;  %vm1035_vm14 = vcmp.lt.s32.totalorder %v5489_v56, 3  ;;  %v1032_v43 = vor.u32 %v1031_v36, %v1030_v34 }
  0x41   : > { %vm1036_vm15 = vcmp.lt.s32.totalorder %v5489_v56, 4  ;;  %v1037_v57 = vsel %vm1033_vm11, %v1017_v55, %v1020_v23  ;;  %v1041_v35 = vsel %vm1033_vm11, %v1020_v23, %v1023_v25  ;;  %v1045_v46 = vsel %vm1033_vm11, %v1023_v25, %v1026_v40 }
  0x42   : > { %v644_v54 = vsel %vm642_vm13, %v643_v39, %v5524_v21  ;;  %v1038_v44 = vsel %vm1036_vm15, %v1026_v40, 2102212464  ;;  %v1042_v45 = vsel %vm1036_vm15, %v1029_v41, 920167782  ;;  %v1046_v53 = vsel %vm1036_vm15, %v1032_v43, 1326507024 }
  0x43   : > { %v645_v47 = vadd.s32 %v644_v54, %v640_v38  ;;  %v1039_v49 = vsel %vm1035_vm14, %v1023_v25, %v1038_v44  ;;  %v1043_v51 = vsel %vm1035_vm14, %v1026_v40, %v1042_v45  ;;  %v1047_v0 = vsel %vm1035_vm14, %v1029_v41, %v1046_v53 }
  0x44   : > { %v1040_v60 = vsel %vm1034_vm12, %v1037_v57, %v1039_v49  ;;  %v1044_v62 = vsel %vm1034_vm12, %v1041_v35, %v1043_v51  ;;  %v803_v10 = vadd.s32 1, %v5499_v17  ;;  %v1048_v13 = vsel %vm1034_vm12, %v1045_v46, %v1047_v0 }
  0x45   : > { %v646_v55 = vadd.s32 536870912, %v645_v47  ;;  %v5550_v16 = vmul.u32.u64.low %v5491_v58, %v1044_v62  ;;  %v5551_v21 = vmul.u32.u64.high %v5491_v58, %v1044_v62, %v5550_v16  ;;  %v447_v29 = vcombine.high %v5483_v48, %v5483_v48 }
  0x46   : > { %v5554_v23 = vmul.u32.u64.low %v5491_v58, %v1048_v13  ;;  %v5555_v25 = vmul.u32.u64.high %v5491_v58, %v1048_v13, %v5554_v23  ;;  %vm804_vm5 = vcmp.gt.s32.totalorder %v803_v10, 0  ;;  %v5560_v52 = vmul.f32 16.0, %v5403_v2 }
  0x47   : > { %v647_v31 = vshrl.u32 %v646_v55, 30  ;;  %v805_v17 = vsel %vm804_vm5, %v803_v10, 0  ;;  %v1056_v56 = vmul.u32 %v5491_v58, %v1040_v60  ;;  %v470_v33 = vsel %vm466_vm2, %v5471_v37, %v5485_v50 }
  0x48   : > { %v800_v34 = vand.u32 8388607, %v7076_v59  ;;  %v1059_v38 = vadd.s32 1, %v5551_v21  ;;  %v807_v40 = vand.u32 31, %v805_v17  ;;  %vm1058_vm6 = vc.u32 %v5555_v25, %v5550_v16 }
  0x49   : > { %v648_v36 = vshll.u32 %v647_v31, 30  ;;  %v5570_v39 = vrot.slane %v447_v29, 1  ;;  %v671_v41 = vsub.s32 4, %v647_v31  ;;  %v475_v43 = vsel %vm7079_vm3, %v470_v33, %v5560_v52 }
  0x4a   : > { %v1060_v58 = vsel %vm1058_vm6, %v1059_v38, %v5551_v21  ;;  %v801_v50 = vor.u32 8388608, %v800_v34  ;;  %v808_v35 = vsub.s32 32, %v807_v40  ;;  %vm5580_vm7 = vcmp.le.f32.partialorder %v585_v27, 0.7853982 }
  0x4b   : > { %v5572_v2 = vsub.s32 %v645_v47, %v648_v36  ;;  %v1061_v37 = vadd.s32 %v1060_v58, %v1056_v56  ;;  %vm587_vm8 = vcmp.lt.s32.totalorder %v5446_v22, 0  ;;  %v5587_v45 = vsel %vm7078_vm4, %v475_v43, %v5570_v39 }
  0x4c   : > { %v641_v46 = vadd.s32 %v5523_v20, %v5520_v18  ;;  %v672_v49 = vsel %vm587_vm8, %v671_v41, %v647_v31  ;;  %vm1003_vm9 = vcmp.lt.s32.totalorder %v5458_v26, 0  ;;  %v1209_v27 = vand.u32 2147483647, %v5587_v45 }
  0x4d   : > { %v651_v57 = vsub.s32 0, %v5572_v2  ;;  %v1062_v44 = vadd.s32 536870912, %v1061_v37  ;;  %v5596_v53 = vshrl.u32 %v805_v17, 5  ;;  %v810_v60 = vshll.u32 %v5271_v61, %v807_v40 }
  0x4e   : > { %v5599_v62 = vshll.u32 %v801_v50, 8  ;;  %v811_v10 = vshrl.u32 %v5272_v63, %v808_v35  ;;  %v813_v18 = vshll.u32 %v5272_v63, %v807_v40  ;;  %v814_v20 = vshrl.u32 %v5273_v9, %v808_v35 }
  0x4f   : > { %v4735_v47 = vmin.u32 %v651_v57, %v5572_v2  ;;  %v1063_v51 = vshrl.u32 %v1062_v44, 30  ;;  %v5606_v55 = vsel %vm5580_vm7, 0, %v672_v49  ;;  %v5609_v13 = vadd.s32 %v5550_v16, %v5555_v25 }
  0x50   : > { %v1212_v23 = vand.u32 2139095040, %v5587_v45  ;;  %vm5614_vm10 = vcmp.le.f32.partialorder %v1001_v30, 0.7853982  ;;  %v809_v17 = vshrl.u32 %v5271_v61, %v808_v35  ;;  %v816_v56 = vshll.u32 %v5273_v9, %v807_v40 }
  0x51   : > { %v653_v0 = vclz %v4735_v47  ;;  %v1064_v21 = vshll.u32 %v1063_v51, 30  ;;  %v817_v33 = vshrl.u32 %v5274_v11, %v808_v35  ;;  %v1087_v16 = vsub.s32 4, %v1063_v51 }
  0x52   : > { %v819_v25 = vshll.u32 %v5274_v11, %v807_v40  ;;  %v820_v36 = vshrl.u32 %v5275_v15, %v808_v35  ;;  %v678_v38 = vadd.s32 3, %v5606_v55  ;;  %v812_v30 = vor.u32 %v811_v10, %v810_v60 }
  0x53   : > { %v4736_v29 = vadd.s32 4294967294, %v653_v0  ;;  %v5621_v34 = vsub.s32 %v1061_v37, %v1064_v21  ;;  %v815_v41 = vor.u32 %v814_v20, %v813_v18  ;;  %v822_v50 = vshll.u32 %v5275_v15, %v807_v40 }
  0x54   : > { %v823_v57 = vshrl.u32 %v5276_v28, %v808_v35  ;;  %v818_v49 = vor.u32 %v817_v33, %v816_v56  ;;  %v1088_v21 = vsel %vm1003_vm9, %v1087_v16, %v1063_v51  ;;  %v821_v59 = vor.u32 %v820_v36, %v819_v25 }
  0x55   : > { %vm4737_vm11 = vcmp.lt.s32.totalorder %v4736_v29, 0  ;;  %v1067_v43 = vsub.s32 0, %v5621_v34  ;;  %vm825_vm12 = vcmp.lt.s32.totalorder %v5596_v53, 1  ;;  %vm826_vm13 = vcmp.lt.s32.totalorder %v5596_v53, 2 }
  0x56   : > { %v656_v58 = vsel %vm4737_vm11, 0, %v4736_v29  ;;  %vm828_vm14 = vcmp.lt.s32.totalorder %v5596_v53, 4  ;;  %v824_v35 = vor.u32 %v823_v57, %v822_v50  ;;  %vm827_vm15 = vcmp.lt.s32.totalorder %v5596_v53, 3 }
  0x57   : > { %v657_v44 = vsub.s32 32, %v656_v58  ;;  %v658_v37 = vshll.u32 %v5572_v2, %v656_v58  ;;  %v661_v47 = vsub.s32 4294967266, %v656_v58  ;;  %v4751_v0 = vmin.u32 %v1067_v43, %v5621_v34 }
  0x58   : > { %v829_v2 = vsel %vm825_vm12, %v809_v17, %v812_v30  ;;  %v830_v51 = vsel %vm828_vm14, %v818_v49, 2102212464  ;;  %v1090_v56 = vsel %vm5614_vm10, 0, %v1088_v21  ;;  %v834_v16 = vsel %vm828_vm14, %v821_v59, 920167782 }
  0x59   : > { %v659_v60 = vshrl.u32 %v641_v46, %v657_v44  ;;  %v662_v10 = vadd.s32 127, %v661_v47  ;;  %v1069_v40 = vclz %v4751_v0  ;;  %v833_v46 = vsel %vm825_vm12, %v812_v30, %v815_v41 }
  0x5a   : > { %v831_v33 = vsel %vm827_vm15, %v815_v41, %v830_v51  ;;  %v835_v36 = vsel %vm827_vm15, %v818_v49, %v834_v16  ;;  %v837_v58 = vsel %vm825_vm12, %v815_v41, %v818_v49  ;;  %v838_v50 = vsel %vm828_vm14, %v824_v35, 1326507024 }
  0x5b   : > { %v660_v18 = vor.u32 %v659_v60, %v658_v37  ;;  %v663_v20 = vshll.u32 %v662_v10, 23  ;;  %v4752_v29 = vadd.s32 4294967294, %v1069_v40  ;;  %v832_v30 = vsel %vm826_vm13, %v829_v2, %v831_v33 }
  0x5c   : > { %v836_v43 = vsel %vm826_vm13, %v833_v46, %v835_v36  ;;  %v839_v37 = vsel %vm827_vm15, %v821_v59, %v838_v50  ;;  %v1213_v47 = vshrl.u32 %v1212_v23, 23  ;;  %v1216_v53 = vand.u32 8388607, %v1209_v27 }
  0x5d   : > { %v664_v25 = vor.u32 4788187, %v663_v20  ;;  %v667_v17 = vcvt.s32.f32 %v660_v18  ;;  %vm4753_vm5 = vcmp.lt.s32.totalorder %v4752_v29, 0  ;;  %v840_v49 = vsel %vm826_vm13, %v837_v58, %v839_v37 }
  0x5e   : > { %v1072_v44 = vsel %vm4753_vm5, 0, %v4752_v29  ;;  %v5665_v10 = vmul.u32.u64.low %v5599_v62, %v840_v49  ;;  %v5666_v40 = vmul.u32.u64.high %v5599_v62, %v840_v49, %v5665_v10  ;;  %v4758_v2 = vadd.s32 4294967169, %v1213_v47 }
  0x5f   : > { %v665_v57 = vand.u32 2147483647, %v664_v25  ;;  %v1073_v0 = vsub.s32 32, %v1072_v44  ;;  %v1074_v21 = vshll.u32 %v5621_v34, %v1072_v44  ;;  %v1077_v41 = vsub.s32 4294967266, %v1072_v44 }
  0x60   : > { %v5670_v20 = vmul.u32.u64.low %v5599_v62, %v836_v43  ;;  %v5671_v59 = vmul.u32.u64.high %v5599_v62, %v836_v43, %v5670_v20  ;;  %v5674_v34 = vand.u32 3, %v5606_v55  ;;  %v1219_v51 = vadd.s32 1, %v4758_v2 }
  0x61   : > { %v668_v60 = vmul.f32 %v667_v17, %v665_v57  ;;  %v1075_v35 = vshrl.u32 %v5609_v13, %v1073_v0  ;;  %v1078_v18 = vadd.s32 127, %v1077_v41  ;;  %v5678_v46 = vand.u32 3, %v678_v38 }
  0x62   : > { %v1094_v16 = vadd.s32 3, %v1090_v56  ;;  %v848_v25 = vmul.u32 %v5599_v62, %v832_v30  ;;  %vm850_vm6 = vc.u32 %v5666_v40, %v5670_v20  ;;  %vm1220_vm11 = vcmp.gt.s32.totalorder %v1219_v51, 0 }
  0x63   : > { %v669_v23 = vxor.u32 2147483648, %v668_v60  ;;  %v1076_v29 = vor.u32 %v1075_v35, %v1074_v21  ;;  %v1079_v33 = vshll.u32 %v1078_v18, 23  ;;  %v851_v38 = vadd.s32 1, %v5671_v59 }
  0x64   : > { %v1221_v58 = vsel %vm1220_vm11, %v1219_v51, 0  ;;  %v406_v57 = vrot.slane %v5406_v3, 5  ;;  %v5691_v62 = vand.u32 3, %v1090_v56  ;;  %vm684_vm12 = vcmp.eq.s32.totalorder %v5678_v46, 2 }
  0x65   : > { %v670_v13 = vsel %vm587_vm8, %v669_v23, %v668_v60  ;;  %v1080_v17 = vor.u32 4788187, %v1079_v33  ;;  %v1083_v36 = vcvt.s32.f32 %v1076_v29  ;;  %v852_v50 = vsel %vm850_vm6, %v851_v38, %v5671_v59 }
  0x66   : > { %v673_v55 = vsel %vm5580_vm7, %v5446_v22, %v670_v13  ;;  %vm1930_vm8 = vcmp.eq.s32.totalorder %v5674_v34, 2  ;;  %v853_v30 = vadd.s32 %v852_v50, %v848_v25  ;;  %v1223_v44 = vand.u32 31, %v1221_v58 }
  0x67   : > { %5140 = vcosq.f32 %v673_v55  ;;  %v1081_v43 = vand.u32 2147483647, %v1080_v17  ;;  %vm681_vm7 = vcmp.eq.s32.totalorder %v5678_v46, 0  ;;  %v5695_v37 = vand.u32 3, %v1094_v16 }
  0x68   : > { %5142 = vsinq.f32 %v673_v55  ;;  %vm1927_vm13 = vcmp.eq.s32.totalorder %v5674_v34, 0  ;;  %v1217_v47 = vor.u32 8388608, %v1216_v53  ;;  %v418_v0 = vrot.slane %v5409_v4, 2 }
  0x69   : > { %v1084_v54 = vmul.f32 %v1083_v36, %v1081_v43  ;;  %vm1926_vm14 = vcmp.lt.s32.totalorder %v5674_v34, 2  ;;  %v854_v3 = vadd.s32 536870912, %v853_v30  ;;  %v1224_v21 = vsub.s32 32, %v1223_v44 }
  0x6a   : > { %v430_v56 = vrot.slane %v5412_v5, 7  ;;  %v440_v41 = vcombine.low %v5431_v12, %v5431_v12  ;;  %v5703_v60 = vshrl.u32 %v1221_v58, 5  ;;  %v1226_v10 = vshll.u32 %v5271_v61, %v1223_v44 }
  0x6b   : > { %v1085_v49 = vxor.u32 2147483648, %v1084_v54  ;;  %v1229_v2 = vshll.u32 %v5272_v63, %v1223_v44  ;;  %vm680_vm15 = vcmp.lt.s32.totalorder %v5678_v46, 2  ;;  %v5708_v35 = vshrl.u32 %v854_v3, 30 }
  0x6c   : > { %v1227_v18 = vshrl.u32 %v5272_v63, %v1224_v21  ;;  %v1232_v59 = vshll.u32 %v5273_v9, %v1223_v44  ;;  %v1235_v23 = vshll.u32 %v5274_v11, %v1223_v44  ;;  %vm677_vm5 = vweird.f32 %v5446_v22 }
  0x6d   : > { %v1086_v53 = vsel %vm1003_vm9, %v1085_v49, %v1084_v54  ;;  %v1230_v51 = vshrl.u32 %v5273_v9, %v1224_v21  ;;  %v1233_v29 = vshrl.u32 %v5274_v11, %v1224_v21  ;;  %v1236_v33 = vshrl.u32 %v5275_v15, %v1224_v21 }
  0x6e   : > { %v1089_v16 = vsel %vm5614_vm10, %v5458_v26, %v1086_v53  ;;  %v5723_v13 = vadd.s32 %v5670_v20, %v5666_v40  ;;  %v856_v25 = vshll.u32 %v5708_v35, 30  ;;  %v5726_v55 = vshll.u32 %v1217_v47, 8 }
  0x6f   : > { %5144 = vcosq.f32 %v1089_v16  ;;  %v1238_v17 = vshll.u32 %v5275_v15, %v1223_v44  ;;  %v1239_v36 = vshrl.u32 %v5276_v28, %v1224_v21  ;;  %v5732_v38 = vsel %vm7077_vm0, %v5400_v1, %v406_v57 }
  0x70   : > { %5146 = vsinq.f32 %v1089_v16  ;;  %v5734_v31 = vsub.s32 %v853_v30, %v856_v25  ;;  %v1228_v43 = vor.u32 %v1227_v18, %v1226_v10  ;;  %vm1241_vm9 = vcmp.lt.s32.totalorder %v5703_v60, 1 }
  0x71   : > { %v5141_v58 = vpop.eup %5140  ;;  %vm1100_vm10 = vcmp.eq.s32.totalorder %v5695_v37, 2  ;;  %v1231_v50 = vor.u32 %v1230_v51, %v1229_v2  ;;  %v1234_v44 = vor.u32 %v1233_v29, %v1232_v59  ;;  %v1237_v54 = vor.u32 %v1236_v33, %v1235_v23 }
  0x72   : > { %v5143_v40 = vpop.eup %5142  ;;  %v685_v20 = vxor.u32 2147483648, %v5141_v58  ;;  %vm1097_vm11 = vcmp.eq.s32.totalorder %v5695_v37, 0  ;;  %v859_v1 = vsub.s32 0, %v5734_v31  ;;  %v1225_v57 = vshrl.u32 %v5271_v61, %v1224_v21 }
  0x73   : > { %v682_v47 = vxor.u32 2147483648, %v5143_v40  ;;  %vm1244_vm4 = vcmp.lt.s32.totalorder %v5703_v60, 4  ;;  %vm1096_vm3 = vcmp.lt.s32.totalorder %v5695_v37, 2  ;;  %vm2338_vm1 = vcmp.lt.s32.totalorder %v5691_v62, 2 }
  0x74   : > { %v1932_v30 = vsel %vm1930_vm8, %v685_v20, %v5143_v40  ;;  %v1240_v3 = vor.u32 %v1239_v36, %v1238_v17  ;;  %vm1243_vm6 = vcmp.lt.s32.totalorder %v5703_v60, 3  ;;  %v1246_v49 = vsel %vm1244_vm4, %v1234_v44, 2102212464 }
  0x75   : > { %v683_v10 = vsel %vm681_vm7, %v5141_v58, %v682_v47  ;;  %v686_v21 = vsel %vm684_vm12, %v685_v20, %v5143_v40  ;;  %vm1093_vm0 = vweird.f32 %v5458_v26  ;;  %v1929_v2 = vsel %vm1927_vm13, %v5141_v58, %v682_v47 }
  0x76   : > { %v4743_v18 = vmin.u32 %v859_v1, %v5734_v31  ;;  %v1933_v59 = vsel %vm1926_vm14, %v1929_v2, %v1932_v30  ;;  %vm1242_vm8 = vcmp.lt.s32.totalorder %v5703_v60, 2  ;;  %v1249_v23 = vsel %vm1241_vm9, %v1228_v43, %v1231_v50 }
  0x77   : > { %v1250_v53 = vsel %vm1244_vm4, %v1237_v54, 920167782  ;;  %v5768_v51 = vsel %vm677_vm5, nan, %v1933_v59  ;;  %v1245_v33 = vsel %vm1241_vm9, %v1225_v57, %v1228_v43  ;;  %v1247_v34 = vsel %vm1243_vm6, %v1231_v50, %v1246_v49 }
  0x78   : > { %v861_v29 = vclz %v4743_v18  ;;  %v687_v16 = vsel %vm680_vm15, %v683_v10, %v686_v21  ;;  %v1251_v25 = vsel %vm1243_vm6, %v1234_v44, %v1250_v53  ;;  %v1253_v17 = vsel %vm1241_vm9, %v1231_v50, %v1234_v44 }
  0x79   : > { %v467_v36 = vsel %vm466_vm2, %v418_v0, %v430_v56  ;;  %v879_v43 = vsub.s32 4, %v5708_v35  ;;  %v1252_v40 = vsel %vm1242_vm8, %v1249_v23, %v1251_v25  ;;  %v1254_v46 = vsel %vm1244_vm4, %v1240_v3, 1326507024  ;;  %v5145_v20 = vpop.eup %5144 }
  0x7a   : > { %v4744_v58 = vadd.s32 4294967294, %v861_v29  ;;  %v1248_v47 = vsel %vm1242_vm8, %v1245_v33, %v1247_v34  ;;  %v1255_v5 = vsel %vm1243_vm6, %v1237_v54, %v1254_v46  ;;  %v5147_v56 = vpop.eup %5146  ;;  %v688_v1 = vsel %vm677_vm5, nan, %v687_v16 }
  0x7b   : > { %v5795_v50 = vmul.u32.u64.low %v5726_v55, %v1252_v40  ;;  %v5796_v44 = vmul.u32.u64.high %v5726_v55, %v1252_v40, %v5795_v50  ;;  %v1101_v57 = vxor.u32 2147483648, %v5145_v20  ;;  %v1256_v30 = vsel %vm1242_vm8, %v1253_v17, %v1255_v5 }
  0x7c   : > { %vm4745_vm7 = vcmp.lt.s32.totalorder %v4744_v58, 0  ;;  %v1098_v3 = vxor.u32 2147483648, %v5147_v56  ;;  %v5804_v10 = vmul.u32.u64.low %v5726_v55, %v1256_v30  ;;  %v5805_v21 = vmul.u32.u64.high %v5726_v55, %v1256_v30, %v5804_v10 }
  0x7d   : > { %v864_v49 = vsel %vm4745_vm7, 0, %v4744_v58  ;;  %v1102_v54 = vsel %vm1100_vm10, %v1101_v57, %v5147_v56  ;;  %vm7087_vm4 = vcmp.eq.s32.totalorder %v5691_v62, 2  ;;  %vm7088_vm12 = vcmp.eq.s32.totalorder %v5691_v62, 0 }
  0x7e   : > { %v2344_v2 = vsel %vm7087_vm4, %v1101_v57, %v5147_v56  ;;  %v865_v18 = vsub.s32 32, %v864_v49  ;;  %v866_v22 = vshll.u32 %v5734_v31, %v864_v49  ;;  %v1099_v59 = vsel %vm1097_vm11, %v5145_v20, %v1098_v3 }
  0x7f   : > { %v2341_v60 = vsel %vm7088_vm12, %v5145_v20, %v1098_v3  ;;  %v869_v23 = vsub.s32 4294967266, %v864_v49  ;;  %v1267_v53 = vadd.s32 1, %v5796_v44  ;;  %v1103_v29 = vsel %vm1096_vm3, %v1099_v59, %v1102_v54 }
  0x80   : > { %v2345_v33 = vsel %vm2338_vm1, %v2341_v60, %v2344_v2  ;;  %v867_v34 = vshrl.u32 %v5723_v13, %v865_v18  ;;  %v1264_v16 = vmul.u32 %v5726_v55, %v1248_v47  ;;  %v1104_v31 = vsel %vm1093_vm0, nan, %v1103_v29 }
  0x81   : > { %v5827_v25 = vsel %vm1093_vm0, nan, %v2345_v33  ;;  %v870_v17 = vadd.s32 127, %v869_v23  ;;  %v5830_v58 = vrot.slane %v5415_v6, 1  ;;  %v4912_v37 = vpack.c.bf16 %v1104_v31, %v688_v1 }
  0x82   : > { %v868_v40 = vor.u32 %v867_v34, %v866_v22  ;;  %vm1266_vm1 = vc.u32 %v5805_v21, %v5795_v50  ;;  %vm7089_vm3 = vcmask 1045504   ;;  %vm795_vm13 = vcmp.lt.s32.totalorder %v5479_v42, 0 }
  0x83   : > { %v5838_v62 = vsel %vm7089_vm3, %v5732_v38, %v418_v0  ;;  %v871_v26 = vshll.u32 %v870_v17, 23  ;;  %v1268_v13 = vsel %vm1266_vm1, %v1267_v53, %v5796_v44  ;;  %vm7090_vm0 = vcmask 1043456   ;;  %4913 = vmatprep.subr.bf16.mxu0 %v4912_v37 }
  0x84   : > { %v472_v6 = vsel %vm7090_vm0, %v467_v36, %v440_v41  ;;  %v875_v55 = vcvt.s32.f32 %v868_v40  ;;  %v880_v4 = vsel %vm795_vm13, %v879_v43, %v5708_v35  ;;  %v1269_v46 = vadd.s32 %v1268_v13, %v1264_v16 }
  0x85   : > { %v872_v20 = vor.u32 4788187, %v871_v26  ;;  %vm7091_vm14 = vcmask 1046528   ;;  %v481_v38 = vand.u32 2147483647, %v5838_v62  ;;  %v484_v47 = vand.u32 2139095040, %v5838_v62 }
  0x86   : > { %v5851_v0 = vsel %vm7091_vm14, %v472_v6, %v5830_v58  ;;  %v1270_v5 = vadd.s32 536870912, %v1269_v46  ;;  %v7092_v12 = vand.u32 2147483647, %v5479_v42  ;;  %vm5878_vm9 = vcmp.le.f32.partialorder %v1209_v27, 0.7853982 }
  0x87   : > { %v873_v36 = vand.u32 2147483647, %v872_v20  ;;  %v485_v44 = vshrl.u32 %v484_v47, 23  ;;  %v900_v56 = vand.u32 2139095040, %v5851_v0  ;;  %v488_v30 = vand.u32 8388607, %v481_v38 }
  0x88   : > { %vm5857_vm15 = vcmp.le.f32.partialorder %v7092_v12, 0.7853982  ;;  %v1271_v43 = vshrl.u32 %v1270_v5, 30  ;;  %v897_v49 = vand.u32 2147483647, %v5851_v0  ;;  %vm1211_vm10 = vcmp.lt.s32.totalorder %v5587_v45, 0 }
  0x89   : > { %v882_v35 = vsel %vm5857_vm15, 0, %v880_v4  ;;  %v876_v1 = vmul.f32 %v875_v55, %v873_v36  ;;  %v4730_v57 = vadd.s32 4294967169, %v485_v44  ;;  %v901_v59 = vshrl.u32 %v900_v56, 23 }
  0x8a   : > { %v1272_v3 = vshll.u32 %v1271_v43, 30  ;;  %v886_v54 = vadd.s32 3, %v882_v35  ;;  %v5869_v22 = vand.u32 3, %v882_v35  ;;  %v1295_v23 = vsub.s32 4, %v1271_v43 }
  0x8b   : > { %v877_v10 = vxor.u32 2147483648, %v876_v1  ;;  %v491_v2 = vadd.s32 1, %v4730_v57  ;;  %v489_v53 = vor.u32 8388608, %v488_v30  ;;  %v5885_v16 = vand.u32 8388607, %v897_v49 }
  0x8c   : > { %v5867_v18 = vsub.s32 %v1269_v46, %v1272_v3  ;;  %v5887_v31 = vand.u32 3, %v886_v54  ;;  %v1265_v37 = vadd.s32 %v5795_v50, %v5805_v21  ;;  %v4746_v40 = vadd.s32 4294967169, %v901_v59 }
  0x8d   : > { %v878_v60 = vsel %vm795_vm13, %v877_v10, %v876_v1  ;;  %vm492_vm5 = vcmp.gt.s32.totalorder %v491_v2, 0  ;;  %v1296_v26 = vsel %vm1211_vm10, %v1295_v23, %v1271_v43  ;;  %vm2136_vm6 = vcmp.eq.s32.totalorder %v5869_v22, 2 }
  0x8e   : > { %v881_v29 = vsel %vm5857_vm15, %v5479_v42, %v878_v60  ;;  %v1275_v34 = vsub.s32 0, %v5867_v18  ;;  %v493_v17 = vsel %vm492_vm5, %v491_v2, 0  ;;  %v5896_v6 = vshll.u32 %v489_v53, 8 }
  0x8f   : > { %5148 = vcosq.f32 %v881_v29  ;;  %v495_v13 = vand.u32 31, %v493_v17  ;;  %v408_v55 = vrot.slane %v5418_v7, 5  ;;  %vm2133_vm11 = vcmp.eq.s32.totalorder %v5869_v22, 0 }
  0x90   : > { %5150 = vsinq.f32 %v881_v29  ;;  %v4759_v27 = vmin.u32 %v1275_v34, %v5867_v18  ;;  %v5900_v46 = vshrl.u32 %v493_v17, 5  ;;  %v905_v50 = vor.u32 8388608, %v5885_v16 }
  0x91   : > { %v420_v21 = vrot.slane %v5436_v14, 2  ;;  %vm2132_vm8 = vcmp.lt.s32.totalorder %v5869_v22, 2  ;;  %v496_v20 = vsub.s32 32, %v495_v13  ;;  %v498_v47 = vshll.u32 %v5271_v61, %v495_v13 }
  0x92   : > { %v1277_v4 = vclz %v4759_v27  ;;  %v501_v5 = vshll.u32 %v5272_v63, %v495_v13  ;;  %v432_v12 = vrot.slane %v5465_v32, 7  ;;  %v1298_v36 = vsel %vm5878_vm9, 0, %v1296_v26 }
  0x93   : > { %v507_v44 = vshll.u32 %v5274_v11, %v495_v13  ;;  %v907_v35 = vadd.s32 1, %v4746_v40  ;;  %v499_v43 = vshrl.u32 %v5272_v63, %v496_v20  ;;  %v502_v56 = vshrl.u32 %v5273_v9, %v496_v20 }
  0x94   : > { %v4760_v41 = vadd.s32 4294967294, %v1277_v4  ;;  %v504_v1 = vshll.u32 %v5273_v9, %v495_v13  ;;  %v505_v57 = vshrl.u32 %v5274_v11, %v496_v20  ;;  %vm885_vm7 = vweird.f32 %v5479_v42  ;;  %v5188_v42 = vld [vmem:[%s5397_s28 + $0x8] sm:$0x77] }
  0x95   : > { %v508_v30 = vshrl.u32 %v5275_v15, %v496_v20  ;;  %v510_v3 = vshll.u32 %v5275_v15, %v495_v13  ;;  %vm513_vm12 = vcmp.lt.s32.totalorder %v5900_v46, 1  ;;  %v500_v54 = vor.u32 %v499_v43, %v498_v47 }
  0x96   : > { %vm4761_vm4 = vcmp.lt.s32.totalorder %v4760_v41, 0  ;;  %v503_v2 = vor.u32 %v502_v56, %v501_v5  ;;  %v511_v59 = vshrl.u32 %v5276_v28, %v496_v20  ;;  %vm892_vm1 = vcmp.eq.s32.totalorder %v5887_v31, 2 }
  0x97   : > { %v1280_v10 = vsel %vm4761_vm4, 0, %v4760_v41  ;;  %v509_v29 = vor.u32 %v508_v30, %v507_v44  ;;  %v497_v17 = vshrl.u32 %v5271_v61, %v496_v20  ;;  %v506_v27 = vor.u32 %v505_v57, %v504_v1 }
  0x98   : > { %v1281_v60 = vsub.s32 32, %v1280_v10  ;;  %v1282_v23 = vshll.u32 %v5867_v18, %v1280_v10  ;;  %v1285_v53 = vsub.s32 4294967266, %v1280_v10  ;;  %vm514_vm3 = vcmp.lt.s32.totalorder %v5900_v46, 2 }
  0x99   : > { %v5922_v34 = vpop.eup %5148  ;;  %vm516_vm13 = vcmp.lt.s32.totalorder %v5900_v46, 4  ;;  %vm515_vm0 = vcmp.lt.s32.totalorder %v5900_v46, 3  ;;  %v512_v47 = vor.u32 %v511_v59, %v510_v3  ;;  %v1302_v56 = vadd.s32 3, %v1298_v36 }
  0x9a   : > { %v5927_v40 = vpop.eup %5150  ;;  %v893_v26 = vxor.u32 2147483648, %v5922_v34  ;;  %v1283_v13 = vshrl.u32 %v1265_v37, %v1281_v60  ;;  %v1286_v4 = vadd.s32 127, %v1285_v53  ;;  %v518_v5 = vsel %vm516_vm13, %v506_v27, 2102212464 }
  0x9b   : > { %v890_v18 = vxor.u32 2147483648, %v5927_v40  ;;  %v522_v20 = vsel %vm516_vm13, %v509_v29, 920167782  ;;  %v521_v37 = vsel %vm513_vm12, %v500_v54, %v503_v2  ;;  %vm908_vm14 = vcmp.gt.s32.totalorder %v907_v35, 0 }
  0x9c   : > { %v1284_v41 = vor.u32 %v1283_v13, %v1282_v23  ;;  %v1287_v44 = vshll.u32 %v1286_v4, 23  ;;  %v2138_v43 = vsel %vm2136_vm6, %v893_v26, %v5927_v40  ;;  %v523_v57 = vsel %vm515_vm0, %v506_v27, %v522_v20 }
  0x9d   : > { %v2135_v1 = vsel %vm2133_vm11, %v5922_v34, %v890_v18  ;;  %v517_v59 = vsel %vm513_vm12, %v497_v17, %v500_v54  ;;  %vm889_vm15 = vcmp.eq.s32.totalorder %v5887_v31, 0  ;;  %v519_v23 = vsel %vm515_vm0, %v503_v2, %v518_v5 }
  0x9e   : > { %v1288_v30 = vor.u32 4788187, %v1287_v44  ;;  %v1291_v3 = vcvt.s32.f32 %v1284_v41  ;;  %v2139_v10 = vsel %vm2132_vm8, %v2135_v1, %v2138_v43  ;;  %v524_v53 = vsel %vm514_vm3, %v521_v37, %v523_v57 }
  0x9f   : > { %v5955_v60 = vsel %vm885_vm7, nan, %v2139_v10  ;;  %v525_v13 = vsel %vm513_vm12, %v503_v2, %v506_v27  ;;  %v526_v4 = vsel %vm516_vm13, %v512_v47, 1326507024  ;;  %v5970_v20 = vand.u32 3, %v1298_v36 }
  0xa0   : > { %v1289_v22 = vand.u32 2147483647, %v1288_v30  ;;  %v5966_v54 = vmul.u32.u64.low %v5896_v6, %v524_v53  ;;  %v5967_v17 = vmul.u32.u64.high %v5896_v6, %v524_v53, %v5966_v54  ;;  %v527_v5 = vsel %vm515_vm0, %v509_v29, %v526_v4 }
  0xa1   : > { %v909_v41 = vsel %vm908_vm14, %v907_v35, 0  ;;  %v5976_v44 = vshll.u32 %v905_v50, 8  ;;  %v520_v27 = vsel %vm514_vm3, %v517_v59, %v519_v23  ;;  %v528_v47 = vsel %vm514_vm3, %v525_v13, %v527_v5 }
  0xa2   : > { %v1292_v2 = vmul.f32 %v1291_v3, %v1289_v22  ;;  %v911_v43 = vand.u32 31, %v909_v41  ;;  %vm888_vm5 = vcmp.lt.s32.totalorder %v5887_v31, 2  ;;  %v894_v36 = vsel %vm892_vm1, %v893_v26, %v5927_v40 }
  0xa3   : > { %v5986_v29 = vand.u32 3, %v1302_v56  ;;  %v5989_v16 = vmul.u32.u64.low %v5896_v6, %v528_v47  ;;  %v5990_v50 = vmul.u32.u64.high %v5896_v6, %v528_v47, %v5989_v16  ;;  %v539_v37 = vadd.s32 1, %v5967_v17 }
  0xa4   : > { %v1293_v35 = vxor.u32 2147483648, %v1292_v2  ;;  %v912_v1 = vsub.s32 32, %v911_v43  ;;  %v914_v46 = vshll.u32 %v5271_v61, %v911_v43  ;;  %v536_v57 = vmul.u32 %v5896_v6, %v520_v27 }
  0xa5   : > { %v910_v30 = vshrl.u32 %v909_v41, 5  ;;  %v917_v3 = vshll.u32 %v5272_v63, %v911_v43  ;;  %v920_v10 = vshll.u32 %v5273_v9, %v911_v43  ;;  %v923_v23 = vshll.u32 %v5274_v11, %v911_v43 }
  0xa6   : > { %v1294_v26 = vsel %vm1211_vm10, %v1293_v35, %v1292_v2  ;;  %v915_v56 = vshrl.u32 %v5272_v63, %v912_v1  ;;  %v918_v59 = vshrl.u32 %v5273_v9, %v912_v1  ;;  %vm538_vm6 = vc.u32 %v5990_v50, %v5966_v54 }
  0xa7   : > { %v1297_v53 = vsel %vm5878_vm9, %v5587_v45, %v1294_v26  ;;  %v921_v6 = vshrl.u32 %v5274_v11, %v912_v1  ;;  %v926_v13 = vshll.u32 %v5275_v15, %v911_v43  ;;  %v540_v22 = vsel %vm538_vm6, %v539_v37, %v5967_v17 }
  0xa8   : > { %5152 = vcosq.f32 %v1297_v53  ;;  %v916_v4 = vor.u32 %v915_v56, %v914_v46  ;;  %v919_v5 = vor.u32 %v918_v59, %v917_v3  ;;  %v541_v41 = vadd.s32 %v540_v22, %v536_v57 }
  0xa9   : > { %5154 = vsinq.f32 %v1297_v53  ;;  %v922_v2 = vor.u32 %v921_v6, %v920_v10  ;;  %v924_v27 = vshrl.u32 %v5275_v15, %v912_v1  ;;  %v891_v33 = vsel %vm889_vm15, %v5922_v34, %v890_v18 }
  0xaa   : > { %v913_v47 = vshrl.u32 %v5271_v61, %v912_v1  ;;  %v927_v43 = vshrl.u32 %v5276_v28, %v912_v1  ;;  %vm929_vm9 = vcmp.lt.s32.totalorder %v910_v30, 1  ;;  %v542_v16 = vadd.s32 536870912, %v541_v41 }
  0xab   : > { %v925_v17 = vor.u32 %v924_v27, %v923_v23  ;;  %vm931_vm10 = vcmp.lt.s32.totalorder %v910_v30, 3  ;;  %vm932_vm11 = vcmp.lt.s32.totalorder %v910_v30, 4  ;;  %vm2544_vm8 = vcmp.lt.s32.totalorder %v5970_v20, 2 }
  0xac   : > { %v928_v35 = vor.u32 %v927_v43, %v926_v13  ;;  %vm930_vm4 = vcmp.lt.s32.totalorder %v910_v30, 2  ;;  %v937_v37 = vsel %vm929_vm9, %v916_v4, %v919_v5  ;;  %vm1301_vm12 = vweird.f32 %v5587_v45 }
  0xad   : > { %v6021_v40 = vshrl.u32 %v542_v16, 30  ;;  %v934_v34 = vsel %vm932_vm11, %v922_v2, 2102212464  ;;  %v938_v18 = vsel %vm932_vm11, %v925_v17, 920167782  ;;  %v941_v46 = vsel %vm929_vm9, %v919_v5, %v922_v2 }
  0xae   : > { %v895_v1 = vsel %vm888_vm5, %v891_v33, %v894_v36  ;;  %vm2545_vm1 = vcmp.eq.s32.totalorder %v5970_v20, 0  ;;  %v939_v57 = vsel %vm931_vm10, %v922_v2, %v938_v18  ;;  %v942_v3 = vsel %vm932_vm11, %v928_v35, 1326507024 }
  0xaf   : > { %v544_v10 = vshll.u32 %v6021_v40, 30  ;;  %v933_v26 = vsel %vm929_vm9, %v913_v47, %v916_v4  ;;  %v940_v56 = vsel %vm930_vm4, %v937_v37, %v939_v57  ;;  %v943_v59 = vsel %vm931_vm10, %v925_v17, %v942_v3 }
  0xb0   : > { %v935_v23 = vsel %vm931_vm10, %v919_v5, %v934_v34  ;;  %v944_v53 = vsel %vm930_vm4, %v941_v46, %v943_v59  ;;  %v6035_v31 = vmul.u32.u64.low %v5976_v44, %v940_v56  ;;  %v6036_v36 = vmul.u32.u64.high %v5976_v44, %v940_v56, %v6035_v31 }
  0xb1   : > { %vm2548_vm3 = vcmp.eq.s32.totalorder %v5970_v20, 2  ;;  %v6040_v6 = vsub.s32 %v541_v41, %v544_v10  ;;  %v6043_v13 = vmul.u32.u64.low %v5976_v44, %v944_v53  ;;  %v6044_v22 = vmul.u32.u64.high %v5976_v44, %v944_v53, %v6043_v13 }
  0xb2   : > { %v5153_v4 = vpop.eup %5152  ;;  %v896_v5 = vsel %vm885_vm7, nan, %v895_v1  ;;  %vm1304_vm13 = vcmp.lt.s32.totalorder %v5986_v29, 2  ;;  %vm1305_vm0 = vcmp.eq.s32.totalorder %v5986_v29, 0  ;;  %vm1308_vm14 = vcmp.eq.s32.totalorder %v5986_v29, 2 }
  0xb3   : > { %v5155_v2 = vpop.eup %5154  ;;  %v1309_v27 = vxor.u32 2147483648, %v5153_v4  ;;  %v547_v33 = vsub.s32 0, %v6040_v6  ;;  %v936_v41 = vsel %vm930_vm4, %v933_v26, %v935_v23  ;;  %v441_v47 = vcombine.low %v5560_v52, %v5560_v52 }
  0xb4   : > { %v1306_v43 = vxor.u32 2147483648, %v5155_v2  ;;  %v6056_v16 = vrot.slane %v5483_v48, 1  ;;  %vm7097_vm7 = vcmask 1042432   ;;  %v469_v35 = vsel %vm466_vm2, %v420_v21, %v432_v12 }
  0xb5   : > { %v459_v17 = vsel %vm7097_vm7, %v5188_v42, %v408_v55  ;;  %v1310_v30 = vsel %vm1308_vm14, %v1309_v27, %v5155_v2  ;;  %v2550_v37 = vsel %vm2548_vm3, %v1309_v27, %v5155_v2  ;;  %v4731_v52 = vmin.u32 %v547_v33, %v6040_v6 }
  0xb6   : > { %v955_v48 = vadd.s32 1, %v6036_v36  ;;  %v1307_v34 = vsel %vm1305_vm0, %v5153_v4, %v1306_v43  ;;  %v2547_v7 = vsel %vm2545_vm1, %v5153_v4, %v1306_v43  ;;  %v952_v32 = vmul.u32 %v5976_v44, %v936_v41 }
  0xb7   : > { %vm954_vm15 = vc.u32 %v6044_v22, %v6035_v31  ;;  %v1311_v55 = vsel %vm1304_vm13, %v1307_v34, %v1310_v30  ;;  %v2551_v12 = vsel %vm2544_vm8, %v2547_v7, %v2550_v37  ;;  %v549_v18 = vclz %v4731_v52 }
  0xb8   : > { %vm7098_vm2 = vcmask 1045504   ;;  %v1312_v1 = vsel %vm1301_vm12, nan, %v1311_v55  ;;  %v6091_v44 = vsel %vm1301_vm12, nan, %v2551_v12  ;;  %v567_v57 = vsub.s32 4, %v6021_v40 }
  0xb9   : > { %v6085_v46 = vsel %vm7098_vm2, %v459_v17, %v420_v21  ;;  %vm7099_vm5 = vcmask 1043456   ;;  %v4916_v3 = vpack.c.bf16 %v1312_v1, %v896_v5  ;;  %v4732_v20 = vadd.s32 4294967294, %v549_v18 }
  0xba   : > { %v474_v29 = vsel %vm7099_vm5, %v469_v35, %v441_v47  ;;  %v956_v10 = vsel %vm954_vm15, %v955_v48, %v6036_v36  ;;  %v689_v14 = vand.u32 2147483647, %v6085_v46  ;;  %v692_v21 = vand.u32 2139095040, %v6085_v46 }
  0xbb   : > { %v957_v26 = vadd.s32 %v956_v10, %v952_v32  ;;  %4917 = vmatprep.subr.bf16.mxu1 %v4916_v3  ;;  %vm483_vm6 = vcmp.lt.s32.totalorder %v5838_v62, 0  ;;  %v537_v45 = vadd.s32 %v5966_v54, %v5990_v50  ;;  %vm4733_vm9 = vcmp.lt.s32.totalorder %v4732_v20, 0 }
  0xbc   : > { %vm7100_vm10 = vcmask 1046528   ;;  %v552_v59 = vsel %vm4733_vm9, 0, %v4732_v20  ;;  %v568_v23 = vsel %vm483_vm6, %v567_v57, %v6021_v40  ;;  %v693_v36 = vshrl.u32 %v692_v21, 23 }
  0xbd   : > { %v6103_v56 = vsel %vm7100_vm10, %v474_v29, %v6056_v16  ;;  %v958_v53 = vadd.s32 536870912, %v957_v26  ;;  %vm6110_vm11 = vcmp.le.f32.partialorder %v481_v38, 0.7853982  ;;  %v553_v4 = vsub.s32 32, %v552_v59 }
  0xbe   : > { %v554_v54 = vshll.u32 %v6040_v6, %v552_v59  ;;  %v557_v50 = vsub.s32 4294967266, %v552_v59  ;;  %v4738_v2 = vadd.s32 4294967169, %v693_v36  ;;  %v696_v27 = vand.u32 8388607, %v689_v14 }
  0xbf   : > { %v959_v5 = vshrl.u32 %v958_v53, 30  ;;  %v1108_v33 = vand.u32 2139095040, %v6103_v56  ;;  %v555_v40 = vshrl.u32 %v537_v45, %v553_v4  ;;  %v570_v47 = vsel %vm6110_vm11, 0, %v568_v23 }
  0xc0   : > { %v558_v41 = vadd.s32 127, %v557_v50  ;;  %v699_v43 = vadd.s32 1, %v4738_v2  ;;  %v574_v30 = vadd.s32 3, %v570_v47  ;;  %v697_v37 = vor.u32 8388608, %v696_v27 }
  0xc1   : > { %v960_v38 = vshll.u32 %v959_v5, 30  ;;  %v1109_v42 = vshrl.u32 %v1108_v33, 23  ;;  %v556_v17 = vor.u32 %v555_v40, %v554_v54  ;;  %v1105_v7 = vand.u32 2147483647, %v6103_v56 }
  0xc2   : > { %v559_v35 = vshll.u32 %v558_v41, 23  ;;  %vm700_vm8 = vcmp.gt.s32.totalorder %v699_v43, 0  ;;  %v983_v55 = vsub.s32 4, %v959_v5  ;;  %vm899_vm4 = vcmp.lt.s32.totalorder %v5851_v0, 0 }
  0xc3   : > { %v6120_v6 = vsub.s32 %v957_v26, %v960_v38  ;;  %v563_v48 = vcvt.s32.f32 %v556_v17  ;;  %v701_v34 = vsel %vm700_vm8, %v699_v43, 0  ;;  %v4754_v12 = vadd.s32 4294967169, %v1109_v42 }
  0xc4   : > { %v560_v52 = vor.u32 4788187, %v559_v35  ;;  %v6125_v1 = vand.u32 3, %v570_v47  ;;  %v703_v57 = vand.u32 31, %v701_v34  ;;  %v6127_v29 = vand.u32 3, %v574_v30 }
  0xc5   : > { %v963_v32 = vsub.s32 0, %v6120_v6  ;;  %v953_v3 = vadd.s32 %v6035_v31, %v6044_v22  ;;  %v6132_v10 = vshll.u32 %v697_v37, 8  ;;  %v6137_v59 = vand.u32 8388607, %v1105_v7 }
  0xc6   : > { %v561_v18 = vand.u32 2147483647, %v560_v52  ;;  %v704_v21 = vsub.s32 32, %v703_v57  ;;  %v706_v45 = vshll.u32 %v5271_v61, %v703_v57  ;;  %v984_v53 = vsel %vm899_vm4, %v983_v55, %v959_v5 }
  0xc7   : > { %v4747_v20 = vmin.u32 %v963_v32, %v6120_v6  ;;  %v702_v36 = vshrl.u32 %v701_v34, 5  ;;  %v1115_v4 = vadd.s32 1, %v4754_v12  ;;  %v709_v50 = vshll.u32 %v5272_v63, %v703_v57 }
  0xc8   : > { %v564_v26 = vmul.f32 %v563_v48, %v561_v18  ;;  %v705_v31 = vshrl.u32 %v5271_v61, %v704_v21  ;;  %v707_v22 = vshrl.u32 %v5272_v63, %v704_v21  ;;  %vm6146_vm12 = vcmp.le.f32.partialorder %v897_v49, 0.7853982 }
  0xc9   : > { %v965_v23 = vclz %v4747_v20  ;;  %v710_v33 = vshrl.u32 %v5273_v9, %v704_v21  ;;  %v712_v5 = vshll.u32 %v5273_v9, %v703_v57  ;;  %v713_v40 = vshrl.u32 %v5274_v11, %v704_v21 }
  0xca   : > { %v565_v54 = vxor.u32 2147483648, %v564_v26  ;;  %v708_v47 = vor.u32 %v707_v22, %v706_v45  ;;  %v715_v38 = vshll.u32 %v5274_v11, %v703_v57  ;;  %v716_v43 = vshrl.u32 %v5275_v15, %v704_v21 }
  0xcb   : > { %v4748_v27 = vadd.s32 4294967294, %v965_v23  ;;  %v711_v42 = vor.u32 %v710_v33, %v709_v50  ;;  %v714_v17 = vor.u32 %v713_v40, %v712_v5  ;;  %v718_v37 = vshll.u32 %v5275_v15, %v703_v57 }
  0xcc   : > { %v566_v41 = vsel %vm483_vm6, %v565_v54, %v564_v26  ;;  %v717_v30 = vor.u32 %v716_v43, %v715_v38  ;;  %v719_v32 = vshrl.u32 %v5276_v28, %v704_v21  ;;  %vm721_vm3 = vcmp.lt.s32.totalorder %v702_v36, 1 }
  0xcd   : > { %v569_v49 = vsel %vm6110_vm11, %v5838_v62, %v566_v41  ;;  %vm4749_vm1 = vcmp.lt.s32.totalorder %v4748_v27, 0  ;;  %vm722_vm13 = vcmp.lt.s32.totalorder %v702_v36, 2  ;;  %vm723_vm0 = vcmp.lt.s32.totalorder %v702_v36, 3 }
  0xce   : > { %5156 = vcosq.f32 %v569_v49  ;;  %v968_v35 = vsel %vm4749_vm1, 0, %v4748_v27  ;;  %vm724_vm14 = vcmp.lt.s32.totalorder %v702_v36, 4  ;;  %v725_v12 = vsel %vm721_vm3, %v705_v31, %v708_v47 }
  0xcf   : > { %5158 = vsinq.f32 %v569_v49  ;;  %v969_v52 = vsub.s32 32, %v968_v35  ;;  %v970_v48 = vshll.u32 %v6120_v6, %v968_v35  ;;  %v973_v34 = vsub.s32 4294967266, %v968_v35 }
  0xd0   : > { %v720_v18 = vor.u32 %v719_v32, %v718_v37  ;;  %v726_v20 = vsel %vm724_vm14, %v714_v17, 2102212464  ;;  %v729_v26 = vsel %vm721_vm3, %v708_v47, %v711_v42  ;;  %v730_v57 = vsel %vm724_vm14, %v717_v30, 920167782 }
  0xd1   : > { %v971_v13 = vshrl.u32 %v953_v3, %v969_v52  ;;  %v974_v55 = vadd.s32 127, %v973_v34  ;;  %v727_v6 = vsel %vm723_vm0, %v711_v42, %v726_v20  ;;  %v731_v54 = vsel %vm723_vm0, %v714_v17, %v730_v57 }
  0xd2   : > { %v986_v21 = vsel %vm6146_vm12, 0, %v984_v53  ;;  %v732_v3 = vsel %vm722_vm13, %v729_v26, %v731_v54  ;;  %v733_v22 = vsel %vm721_vm3, %v711_v42, %v714_v17  ;;  %v734_v50 = vsel %vm724_vm14, %v720_v18, 1326507024 }
  0xd3   : > { %v972_v45 = vor.u32 %v971_v13, %v970_v48  ;;  %v975_v23 = vshll.u32 %v974_v55, 23  ;;  %v728_v33 = vsel %vm722_vm13, %v725_v12, %v727_v6  ;;  %v735_v5 = vsel %vm723_vm0, %v717_v30, %v734_v50 }
  0xd4   : > { %v736_v40 = vsel %vm722_vm13, %v733_v22, %v735_v5  ;;  %v6175_v41 = vmul.u32.u64.low %v6132_v10, %v732_v3  ;;  %v6176_v47 = vmul.u32.u64.high %v6132_v10, %v732_v3, %v6175_v41  ;;  %vm1116_vm7 = vcmp.gt.s32.totalorder %v1115_v4, 0 }
  0xd5   : > { %v976_v31 = vor.u32 4788187, %v975_v23  ;;  %v979_v27 = vcvt.s32.f32 %v972_v45  ;;  %v6180_v38 = vmul.u32.u64.low %v6132_v10, %v736_v40  ;;  %v6181_v43 = vmul.u32.u64.high %v6132_v10, %v736_v40, %v6180_v38 }
  0xd6   : > { %v1117_v49 = vsel %vm1116_vm7, %v1115_v4, 0  ;;  %v990_v17 = vadd.s32 3, %v986_v21  ;;  %vm1827_vm15 = vcmp.eq.s32.totalorder %v6125_v1, 2  ;;  %v1113_v36 = vor.u32 8388608, %v6137_v59 }
  0xd7   : > { %v977_v53 = vand.u32 2147483647, %v976_v31  ;;  %v1119_v35 = vand.u32 31, %v1117_v49  ;;  %vm573_vm2 = vweird.f32 %v5838_v62  ;;  %vm1824_vm5 = vcmp.eq.s32.totalorder %v6125_v1, 0 }
  0xd8   : > { %v6183_v42 = vpop.eup %5156  ;;  %vm1823_vm6 = vcmp.lt.s32.totalorder %v6125_v1, 2  ;;  %v744_v4 = vmul.u32 %v6132_v10, %v728_v33  ;;  %v747_v34 = vadd.s32 1, %v6176_v47  ;;  %vm577_vm9 = vcmp.eq.s32.totalorder %v6127_v29, 0 }
  0xd9   : > { %v6187_v30 = vpop.eup %5158  ;;  %v581_v37 = vxor.u32 2147483648, %v6183_v42  ;;  %v980_v52 = vmul.f32 %v979_v27, %v977_v53  ;;  %vm580_vm10 = vcmp.eq.s32.totalorder %v6127_v29, 2  ;;  %v6201_v13 = vand.u32 3, %v986_v21 }
  0xda   : > { %v578_v48 = vxor.u32 2147483648, %v6187_v30  ;;  %v1120_v55 = vsub.s32 32, %v1119_v35  ;;  %v6203_v12 = vand.u32 3, %v990_v17  ;;  %vm746_vm11 = vc.u32 %v6181_v43, %v6175_v41 }
  0xdb   : > { %v981_v59 = vxor.u32 2147483648, %v980_v52  ;;  %v1829_v32 = vsel %vm1827_vm15, %v581_v37, %v6187_v30  ;;  %v6208_v10 = vshll.u32 %v1113_v36, 8  ;;  %v748_v57 = vsel %vm746_vm11, %v747_v34, %v6176_v47 }
  0xdc   : > { %v1826_v18 = vsel %vm1824_vm5, %v6183_v42, %v578_v48  ;;  %v1122_v1 = vshll.u32 %v5271_v61, %v1119_v35  ;;  %vm576_vm8 = vcmp.lt.s32.totalorder %v6127_v29, 2  ;;  %v749_v6 = vadd.s32 %v748_v57, %v744_v4 }
  0xdd   : > { %v982_v20 = vsel %vm899_vm4, %v981_v59, %v980_v52  ;;  %v1830_v26 = vsel %vm1823_vm6, %v1826_v18, %v1829_v32  ;;  %v1118_v54 = vshrl.u32 %v1117_v49, 5  ;;  %v1123_v21 = vshrl.u32 %v5272_v63, %v1120_v55 }
  0xde   : > { %v985_v45 = vsel %vm6146_vm12, %v5851_v0, %v982_v20  ;;  %v6220_v23 = vsel %vm573_vm2, nan, %v1830_v26  ;;  %v1125_v3 = vshll.u32 %v5272_v63, %v1119_v35  ;;  %v1126_v22 = vshrl.u32 %v5273_v9, %v1120_v55 }
  0xdf   : > { %5160 = vcosq.f32 %v985_v45  ;;  %v750_v50 = vadd.s32 536870912, %v749_v6  ;;  %v1128_v31 = vshll.u32 %v5273_v9, %v1119_v35  ;;  %v1129_v2 = vshrl.u32 %v5274_v11, %v1120_v55 }
  0xe0   : > { %5162 = vsinq.f32 %v985_v45  ;;  %vm2239_vm4 = vcmp.eq.s32.totalorder %v6201_v13, 2  ;;  %v1124_v27 = vor.u32 %v1123_v21, %v1122_v1  ;;  %v1127_v33 = vor.u32 %v1126_v22, %v1125_v3 }
  0xe1   : > { %v1131_v5 = vshll.u32 %v5274_v11, %v1119_v35  ;;  %v1132_v40 = vshrl.u32 %v5275_v15, %v1120_v55  ;;  %vm2236_vm12 = vcmp.eq.s32.totalorder %v6201_v13, 0  ;;  %v6231_v47 = vshrl.u32 %v750_v50, 30 }
  0xe2   : > { %v1130_v53 = vor.u32 %v1129_v2, %v1128_v31  ;;  %v1134_v38 = vshll.u32 %v5275_v15, %v1119_v35  ;;  %v1135_v49 = vshrl.u32 %v5276_v28, %v1120_v55  ;;  %vm2235_vm1 = vcmp.lt.s32.totalorder %v6201_v13, 2 }
  0xe3   : > { %v1121_v17 = vshrl.u32 %v5271_v61, %v1120_v55  ;;  %v1133_v36 = vor.u32 %v1132_v40, %v1131_v5  ;;  %vm1137_vm3 = vcmp.lt.s32.totalorder %v1118_v54, 1  ;;  %vm1139_vm13 = vcmp.lt.s32.totalorder %v1118_v54, 3 }
  0xe4   : > { %vm989_vm0 = vweird.f32 %v5851_v0  ;;  %v752_v52 = vshll.u32 %v6231_v47, 30  ;;  %v1136_v4 = vor.u32 %v1135_v49, %v1134_v38  ;;  %vm1138_vm14 = vcmp.lt.s32.totalorder %v1118_v54, 2 }
  0xe5   : > { %vm1140_vm7 = vcmp.lt.s32.totalorder %v1118_v54, 4  ;;  %vm992_vm15 = vcmp.lt.s32.totalorder %v6203_v12, 2  ;;  %v1145_v34 = vsel %vm1137_vm3, %v1124_v27, %v1127_v33  ;;  %v579_v32 = vsel %vm577_vm9, %v6183_v42, %v578_v48 }
  0xe6   : > { %v1142_v35 = vsel %vm1140_vm7, %v1130_v53, 2102212464  ;;  %v1146_v59 = vsel %vm1140_vm7, %v1133_v36, 920167782  ;;  %v582_v55 = vsel %vm580_vm10, %v581_v37, %v6187_v30  ;;  %v6249_v18 = vsub.s32 %v749_v6, %v752_v52 }
  0xe7   : > { %v1147_v20 = vsel %vm1139_vm13, %v1130_v53, %v1146_v59  ;;  %v1141_v26 = vsel %vm1137_vm3, %v1121_v17, %v1124_v27  ;;  %v1143_v57 = vsel %vm1139_vm13, %v1127_v33, %v1142_v35  ;;  %v1149_v45 = vsel %vm1137_vm3, %v1127_v33, %v1130_v53 }
  0xe8   : > { %v1148_v1 = vsel %vm1138_vm14, %v1145_v34, %v1147_v20  ;;  %vm993_vm5 = vcmp.eq.s32.totalorder %v6203_v12, 0  ;;  %vm996_vm6 = vcmp.eq.s32.totalorder %v6203_v12, 2  ;;  %v755_v42 = vsub.s32 0, %v6249_v18 }
  0xe9   : > { %v1150_v30 = vsel %vm1140_vm7, %v1136_v4, 1326507024  ;;  %v5161_v37 = vpop.eup %5160  ;;  %v583_v48 = vsel %vm576_vm8, %v579_v32, %v582_v55  ;;  %v6264_v21 = vmul.u32.u64.low %v6208_v10, %v1148_v1  ;;  %v6265_v3 = vmul.u32.u64.high %v6208_v10, %v1148_v1, %v6264_v21 }
  0xea   : > { %v1151_v6 = vsel %vm1139_vm13, %v1133_v36, %v1150_v30  ;;  %v5163_v22 = vpop.eup %5162  ;;  %v997_v50 = vxor.u32 2147483648, %v5161_v37  ;;  %v4739_v31 = vmin.u32 %v755_v42, %v6249_v18  ;;  %v1144_v2 = vsel %vm1138_vm14, %v1141_v26, %v1143_v57 }
  0xeb   : > { %v1152_v27 = vsel %vm1138_vm14, %v1149_v45, %v1151_v6  ;;  %v994_v33 = vxor.u32 2147483648, %v5163_v22  ;;  %v1420_v40 = vand.u32 2139095040, %v5440_v19  ;;  %v745_v49 = vadd.s32 %v6175_v41, %v6181_v43 }
  0xec   : > { %v6272_v5 = vmul.u32.u64.low %v6208_v10, %v1152_v27  ;;  %v6273_v29 = vmul.u32.u64.high %v6208_v10, %v1152_v27, %v6272_v5  ;;  %v998_v53 = vsel %vm996_vm6, %v997_v50, %v5163_v22  ;;  %v2241_v38 = vsel %vm2239_vm4, %v997_v50, %v5163_v22 }
  0xed   : > { %v757_v17 = vclz %v4739_v31  ;;  %v584_v54 = vsel %vm573_vm2, nan, %v583_v48  ;;  %v995_v36 = vsel %vm993_vm5, %v5161_v37, %v994_v33  ;;  %v2238_v52 = vsel %vm2236_vm12, %v5161_v37, %v994_v33 }
  0xee   : > { %v1160_v4 = vmul.u32 %v6208_v10, %v1144_v2  ;;  %v999_v35 = vsel %vm992_vm15, %v995_v36, %v998_v53  ;;  %v2242_v34 = vsel %vm2235_vm1, %v2238_v52, %v2241_v38  ;;  %v1163_v41 = vadd.s32 1, %v6265_v3 }
  0xef   : > { %v4740_v59 = vadd.s32 4294967294, %v757_v17  ;;  %v1000_v62 = vsel %vm989_vm0, nan, %v999_v35  ;;  %v6298_v43 = vsel %vm989_vm0, nan, %v2242_v34  ;;  %v775_v32 = vsub.s32 4, %v6231_v47 }
  0xf0   : > { %vm1162_vm2 = vc.u32 %v6273_v29, %v6264_v21  ;;  %v4914_v12 = vpack.c.bf16 %v1000_v62, %v584_v54  ;;  %v4922_v13 = vpack.c.bf16 %v6298_v43, %v6220_v23  ;;  %v1417_v26 = vand.u32 2147483647, %v5440_v19  ;;  %v5190_v23 = vld [vmem:[%s5397_s28 + $0x8] sm:$0x77] }
  0xf1   : > { %vm4741_vm9 = vcmp.lt.s32.totalorder %v4740_v59, 0  ;;  %v1164_v10 = vsel %vm1162_vm2, %v1163_v41, %v6265_v3  ;;  %vm691_vm10 = vcmp.lt.s32.totalorder %v6085_v46, 0  ;;  %v1421_v30 = vshrl.u32 %v1420_v40, 23 }
  0xf2   : > { %v760_v55 = vsel %vm4741_vm9, 0, %v4740_v59  ;;  %v1165_v20 = vadd.s32 %v1164_v10, %v1160_v4  ;;  %4915 = vmatpush1.bf16.msra.mxu0 %v4914_v12  ;;  %v776_v45 = vsel %vm691_vm10, %v775_v32, %v6231_v47  ;;  %vm6314_vm11 = vcmp.le.f32.partialorder %v689_v14, 0.7853982 }
  0xf3   : > { %v761_v0 = vsub.s32 32, %v760_v55  ;;  %v762_v57 = vshll.u32 %v6249_v18, %v760_v55  ;;  %v765_v1 = vsub.s32 4294967266, %v760_v55  ;;  %v4766_v22 = vadd.s32 4294967169, %v1421_v30 }
  0xf4   : > { %v1166_v42 = vadd.s32 536870912, %v1165_v20  ;;  %v1424_v18 = vand.u32 8388607, %v1417_v26  ;;  %v1628_v50 = vand.u32 2139095040, %v5570_v39  ;;  %v778_v47 = vsel %vm6314_vm11, 0, %v776_v45 }
  0xf5   : > { %v763_v48 = vshrl.u32 %v745_v49, %v761_v0  ;;  %v766_v6 = vadd.s32 127, %v765_v1  ;;  %v1625_v27 = vand.u32 2147483647, %v5570_v39  ;;  %v1427_v33 = vadd.s32 1, %v4766_v22 }
  0xf6   : > { %v1167_v3 = vshrl.u32 %v1166_v42, 30  ;;  %v1629_v53 = vshrl.u32 %v1628_v50, 23  ;;  %v782_v38 = vadd.s32 3, %v778_v47  ;;  %v1425_v17 = vor.u32 8388608, %v1424_v18 }
  0xf7   : > { %v764_v31 = vor.u32 %v763_v48, %v762_v57  ;;  %v767_v2 = vshll.u32 %v766_v6, 23  ;;  %vm1428_vm8 = vcmp.gt.s32.totalorder %v1427_v33, 0  ;;  %v6328_v52 = vand.u32 8388607, %v1625_v27 }
  0xf8   : > { %v1168_v14 = vshll.u32 %v1167_v3, 30  ;;  %v1429_v36 = vsel %vm1428_vm8, %v1427_v33, 0  ;;  %v1191_v35 = vsub.s32 4, %v1167_v3  ;;  %v4774_v34 = vadd.s32 4294967169, %v1629_v53 }
  0xf9   : > { %v768_v5 = vor.u32 4788187, %v767_v2  ;;  %v771_v40 = vcvt.s32.f32 %v764_v31  ;;  %vm1107_vm4 = vcmp.lt.s32.totalorder %v6103_v56, 0  ;;  %v6332_v41 = vand.u32 3, %v778_v47 }
  0xfa   : > { %v6324_v49 = vsub.s32 %v1165_v20, %v1168_v14  ;;  %v1431_v62 = vand.u32 31, %v1429_v36  ;;  %v6334_v32 = vand.u32 3, %v782_v38  ;;  %v1161_v12 = vadd.s32 %v6264_v21, %v6273_v29 }
  0xfb   : > { %v769_v54 = vand.u32 2147483647, %v768_v5  ;;  %v6339_v55 = vshll.u32 %v1425_v17, 8  ;;  %v1633_v1 = vor.u32 8388608, %v6328_v52  ;;  %v1192_v42 = vsel %vm1107_vm4, %v1191_v35, %v1167_v3 }
  0xfc   : > { %v1171_v4 = vsub.s32 0, %v6324_v49  ;;  %v1432_v0 = vsub.s32 32, %v1431_v62  ;;  %v1434_v57 = vshll.u32 %v5271_v61, %v1431_v62  ;;  %v1430_v30 = vshrl.u32 %v1429_v36, 5 }
  0xfd   : > { %v772_v59 = vmul.f32 %v771_v40, %v769_v54  ;;  %v1635_v48 = vadd.s32 1, %v4774_v34  ;;  %v1437_v22 = vshll.u32 %v5272_v63, %v1431_v62  ;;  %vm6355_vm12 = vcmp.le.f32.partialorder %v1105_v7, 0.7853982 }
  0xfe   : > { %v4755_v10 = vmin.u32 %v1171_v4, %v6324_v49  ;;  %v1433_v21 = vshrl.u32 %v5271_v61, %v1432_v0  ;;  %v1435_v29 = vshrl.u32 %v5272_v63, %v1432_v0  ;;  %v1438_v31 = vshrl.u32 %v5273_v9, %v1432_v0 }
  0xff   : > { %v773_v20 = vxor.u32 2147483648, %v772_v59  ;;  %v1440_v2 = vshll.u32 %v5273_v9, %v1431_v62  ;;  %v1441_v14 = vshrl.u32 %v5274_v11, %v1432_v0  ;;  %v1443_v33 = vshll.u32 %v5274_v11, %v1431_v62 }
 0x100   : > { %v1173_v45 = vclz %v4755_v10  ;;  %v1436_v47 = vor.u32 %v1435_v29, %v1434_v57  ;;  %v1439_v37 = vor.u32 %v1438_v31, %v1437_v22  ;;  %v1444_v5 = vshrl.u32 %v5275_v15, %v1432_v0 }
 0x101   : > { %v774_v6 = vsel %vm691_vm10, %v773_v20, %v772_v59  ;;  %vm2033_vm3 = vcmp.eq.s32.totalorder %v6332_v41, 2  ;;  %v1442_v40 = vor.u32 %v1441_v14, %v1440_v2  ;;  %v1446_v53 = vshll.u32 %v5275_v15, %v1431_v62 }
 0x102   : > { %v777_v18 = vsel %vm6314_vm11, %v6085_v46, %v774_v6  ;;  %v4756_v3 = vadd.s32 4294967294, %v1173_v45  ;;  %v1447_v38 = vshrl.u32 %v5276_v28, %v1432_v0  ;;  %vm2030_vm13 = vcmp.eq.s32.totalorder %v6332_v41, 0 }
 0x103   : > { %5164 = vcosq.f32 %v777_v18  ;;  %v1445_v4 = vor.u32 %v1444_v5, %v1443_v33  ;;  %vm1449_vm0 = vcmp.lt.s32.totalorder %v1430_v30, 1  ;;  %vm1450_vm14 = vcmp.lt.s32.totalorder %v1430_v30, 2 }
 0x104   : > { %5166 = vsinq.f32 %v777_v18  ;;  %vm4757_vm1 = vcmp.lt.s32.totalorder %v4756_v3, 0  ;;  %v1448_v35 = vor.u32 %v1447_v38, %v1446_v53  ;;  %vm1451_vm7 = vcmp.lt.s32.totalorder %v1430_v30, 3 }
 0x105   : > { %v1176_v7 = vsel %vm4757_vm1, 0, %v4756_v3  ;;  %vm1452_vm15 = vcmp.lt.s32.totalorder %v1430_v30, 4  ;;  %v1453_v10 = vsel %vm1449_vm0, %v1433_v21, %v1436_v47  ;;  %v1457_v57 = vsel %vm1449_vm0, %v1436_v47, %v1439_v37 }
 0x106   : > { %v1177_v17 = vsub.s32 32, %v1176_v7  ;;  %v1178_v54 = vshll.u32 %v6324_v49, %v1176_v7  ;;  %v1181_v36 = vsub.s32 4294967266, %v1176_v7  ;;  %v1454_v20 = vsel %vm1452_vm15, %v1442_v40, 2102212464 }
 0x107   : > { %v1458_v62 = vsel %vm1452_vm15, %v1445_v4, 920167782  ;;  %v1461_v45 = vsel %vm1449_vm0, %v1439_v37, %v1442_v40  ;;  %v1455_v49 = vsel %vm1451_vm7, %v1439_v37, %v1454_v20  ;;  %v1194_v22 = vsel %vm6355_vm12, 0, %v1192_v42 }
 0x108   : > { %v1179_v34 = vshrl.u32 %v1161_v12, %v1177_v17  ;;  %v1182_v59 = vadd.s32 127, %v1181_v36  ;;  %v1459_v29 = vsel %vm1451_vm7, %v1442_v40, %v1458_v62  ;;  %v1462_v3 = vsel %vm1452_vm15, %v1448_v35, 1326507024 }
 0x109   : > { %v1460_v18 = vsel %vm1450_vm14, %v1457_v57, %v1459_v29  ;;  %vm1636_vm5 = vcmp.gt.s32.totalorder %v1635_v48, 0  ;;  %v1456_v21 = vsel %vm1450_vm14, %v1453_v10, %v1455_v49  ;;  %v1463_v2 = vsel %vm1451_vm7, %v1445_v4, %v1462_v3 }
 0x10a   : > { %v1180_v0 = vor.u32 %v1179_v34, %v1178_v54  ;;  %v1183_v6 = vshll.u32 %v1182_v59, 23  ;;  %v1464_v14 = vsel %vm1450_vm14, %v1461_v45, %v1463_v2  ;;  %v1637_v42 = vsel %vm1636_vm5, %v1635_v48, 0 }
 0x10b   : > { %v6380_v33 = vmul.u32.u64.low %v6339_v55, %v1460_v18  ;;  %v6381_v37 = vmul.u32.u64.high %v6339_v55, %v1460_v18, %v6380_v33  ;;  %v6388_v53 = vmul.u32.u64.low %v6339_v55, %v1464_v14  ;;  %v6389_v38 = vmul.u32.u64.high %v6339_v55, %v1464_v14, %v6388_v53 }
 0x10c   : > { %v1184_v12 = vor.u32 4788187, %v1183_v6  ;;  %v1187_v31 = vcvt.s32.f32 %v1180_v0  ;;  %v1198_v54 = vadd.s32 3, %v1194_v22  ;;  %vm2029_vm6 = vcmp.lt.s32.totalorder %v6332_v41, 2 }
 0x10d   : > { %v6376_v47 = vpop.eup %5164  ;;  %v1639_v30 = vand.u32 31, %v1637_v42  ;;  %vm781_vm2 = vweird.f32 %v6085_v46  ;;  %v1472_v35 = vmul.u32 %v6339_v55, %v1456_v21  ;;  %v1475_v34 = vadd.s32 1, %v6381_v37 }
 0x10e   : > { %v6384_v5 = vpop.eup %5166  ;;  %v789_v7 = vxor.u32 2147483648, %v6376_v47  ;;  %v1185_v40 = vand.u32 2147483647, %v1184_v12  ;;  %vm788_vm9 = vcmp.eq.s32.totalorder %v6334_v32, 2  ;;  %v6407_v57 = vand.u32 3, %v1194_v22 }
 0x10f   : > { %v786_v17 = vxor.u32 2147483648, %v6384_v5  ;;  %v1640_v59 = vsub.s32 32, %v1639_v30  ;;  %v6411_v62 = vshll.u32 %v1633_v1, 8  ;;  %vm785_vm10 = vcmp.eq.s32.totalorder %v6334_v32, 0 }
 0x110   : > { %v1188_v36 = vmul.f32 %v1187_v31, %v1185_v40  ;;  %v2035_v48 = vsel %vm2033_vm3, %v789_v7, %v6384_v5  ;;  %v6414_v45 = vand.u32 3, %v1198_v54  ;;  %vm1474_vm11 = vc.u32 %v6389_v38, %v6380_v33 }
 0x111   : > { %v2032_v4 = vsel %vm2030_vm13, %v6376_v47, %v786_v17  ;;  %v6422_v55 = vshrl.u32 %v1637_v42, 5  ;;  %v1476_v52 = vsel %vm1474_vm11, %v1475_v34, %v6381_v37  ;;  %v1642_v1 = vshll.u32 %v5271_v61, %v1639_v30 }
 0x112   : > { %v1189_v10 = vxor.u32 2147483648, %v1188_v36  ;;  %v2036_v20 = vsel %vm2029_vm6, %v2032_v4, %v2035_v48  ;;  %v1643_v6 = vshrl.u32 %v5272_v63, %v1640_v59  ;;  %v1477_v29 = vadd.s32 %v1476_v52, %v1472_v35 }
 0x113   : > { %v6418_v41 = vsel %vm781_vm2, nan, %v2036_v20  ;;  %v1645_v22 = vshll.u32 %v5272_v63, %v1639_v30  ;;  %v1646_v18 = vshrl.u32 %v5273_v9, %v1640_v59  ;;  %vm784_vm8 = vcmp.lt.s32.totalorder %v6334_v32, 2 }
 0x114   : > { %v1190_v0 = vsel %vm1107_vm4, %v1189_v10, %v1188_v36  ;;  %v1644_v3 = vor.u32 %v1643_v6, %v1642_v1  ;;  %v1648_v12 = vshll.u32 %v5273_v9, %v1639_v30  ;;  %v1649_v31 = vshrl.u32 %v5274_v11, %v1640_v59 }
 0x115   : > { %v1193_v49 = vsel %vm6355_vm12, %v6103_v56, %v1190_v0  ;;  %v1478_v21 = vadd.s32 536870912, %v1477_v29  ;;  %v1647_v2 = vor.u32 %v1646_v18, %v1645_v22  ;;  %v1651_v14 = vshll.u32 %v5274_v11, %v1639_v30 }
 0x116   : > { %5168 = vcosq.f32 %v1193_v49  ;;  %v1650_v50 = vor.u32 %v1649_v31, %v1648_v12  ;;  %v1652_v37 = vshrl.u32 %v5275_v15, %v1640_v59  ;;  %v1654_v42 = vshll.u32 %v5275_v15, %v1639_v30 }
 0x117   : > { %5170 = vsinq.f32 %v1193_v49  ;;  %v1655_v40 = vshrl.u32 %v5276_v28, %v1640_v59  ;;  %vm2442_vm4 = vcmp.eq.s32.totalorder %v6407_v57, 0  ;;  %vm2445_vm12 = vcmp.eq.s32.totalorder %v6407_v57, 2 }
 0x118   : > { %v1479_v53 = vshrl.u32 %v1478_v21, 30  ;;  %v1641_v54 = vshrl.u32 %v5271_v61, %v1640_v59  ;;  %vm1657_vm1 = vcmp.lt.s32.totalorder %v6422_v55, 1  ;;  %vm1200_vm3 = vcmp.lt.s32.totalorder %v6414_v45, 2 }
 0x119   : > { %vm2441_vm13 = vcmp.lt.s32.totalorder %v6407_v57, 2  ;;  %v1653_v36 = vor.u32 %v1652_v37, %v1651_v14  ;;  %v1656_v48 = vor.u32 %v1655_v40, %v1654_v42  ;;  %vm1659_vm0 = vcmp.lt.s32.totalorder %v6422_v55, 3 }
 0x11a   : > { %vm1660_vm14 = vcmp.lt.s32.totalorder %v6422_v55, 4  ;;  %vm1197_vm7 = vweird.f32 %v6103_v56  ;;  %vm1201_vm15 = vcmp.eq.s32.totalorder %v6414_v45, 0  ;;  %vm1419_vm5 = vcmp.lt.s32.totalorder %v5440_v19, 0 }
 0x11b   : > { %v1480_v30 = vshll.u32 %v1479_v53, 30  ;;  %vm1658_vm6 = vcmp.lt.s32.totalorder %v6422_v55, 2  ;;  %v1665_v4 = vsel %vm1657_vm1, %v1644_v3, %v1647_v2  ;;  %v1662_v35 = vsel %vm1660_vm14, %v1650_v50, 2102212464 }
 0x11c   : > { %v1666_v34 = vsel %vm1660_vm14, %v1653_v36, 920167782  ;;  %v1669_v59 = vsel %vm1657_vm1, %v1647_v2, %v1650_v50  ;;  %v1670_v10 = vsel %vm1660_vm14, %v1656_v48, 1326507024  ;;  %v790_v20 = vsel %vm788_vm9, %v789_v7, %v6384_v5 }
 0x11d   : > { %vm1204_vm11 = vcmp.eq.s32.totalorder %v6414_v45, 2  ;;  %v6463_v0 = vsub.s32 %v1477_v29, %v1480_v30  ;;  %v1667_v52 = vsel %vm1659_vm0, %v1650_v50, %v1666_v34  ;;  %v787_v1 = vsel %vm785_vm10, %v6376_v47, %v786_v17 }
 0x11e   : > { %v1661_v6 = vsel %vm1657_vm1, %v1641_v54, %v1644_v3  ;;  %v1668_v49 = vsel %vm1658_vm6, %v1665_v4, %v1667_v52  ;;  %v1671_v7 = vsel %vm1659_vm0, %v1653_v36, %v1670_v10  ;;  %v1503_v22 = vsub.s32 4, %v1479_v53 }
 0x11f   : > { %v1483_v29 = vsub.s32 0, %v6463_v0  ;;  %v1663_v18 = vsel %vm1659_vm0, %v1647_v2, %v1662_v35  ;;  %v1672_v5 = vsel %vm1658_vm6, %v1669_v59, %v1671_v7  ;;  %v791_v14 = vsel %vm784_vm8, %v787_v1, %v790_v20 }
 0x120   : > { %v5169_v12 = vpop.eup %5168  ;;  %v6484_v47 = vmul.u32.u64.low %v6411_v62, %v1672_v5  ;;  %v6485_v17 = vmul.u32.u64.high %v6411_v62, %v1672_v5, %v6484_v47  ;;  %v6488_v3 = vmul.u32.u64.low %v6411_v62, %v1668_v49  ;;  %v6489_v31 = vmul.u32.u64.high %v6411_v62, %v1668_v49, %v6488_v3 }
 0x121   : > { %v5171_v21 = vpop.eup %5170  ;;  %v1205_v50 = vxor.u32 2147483648, %v5169_v12  ;;  %v4767_v2 = vmin.u32 %v1483_v29, %v6463_v0  ;;  %v1313_v37 = vand.u32 2147483647, %v5830_v58  ;;  %v1473_v40 = vadd.s32 %v6380_v33, %v6389_v38 }
 0x122   : > { %v1202_v42 = vxor.u32 2147483648, %v5171_v21  ;;  %v1664_v54 = vsel %vm1658_vm6, %v1661_v6, %v1663_v18  ;;  %v1316_v30 = vand.u32 2139095040, %v5830_v58  ;;  %v5277_v4 = vmov 0.0  }
 0x123   : > { %v1206_v36 = vsel %vm1204_vm11, %v1205_v50, %v5171_v21  ;;  %v2447_v48 = vsel %vm2445_vm12, %v1205_v50, %v5171_v21  ;;  %v1485_v32 = vclz %v4767_v2  ;;  %3063 = vmatprep.mubr.f32.mxu0 %v5277_v4  ;;  %3152 = vmatprep.mubr.f32.mxu1 %v5277_v4  ;;  %v792_v33 = vsel %vm781_vm2, nan, %v791_v14 }
 0x124   : > { %v1203_v38 = vsel %vm1201_vm15, %v5169_v12, %v1202_v42  ;;  %v2444_v55 = vsel %vm2442_vm4, %v5169_v12, %v1202_v42  ;;  %v1504_v35 = vsel %vm1419_vm5, %v1503_v22, %v1479_v53  ;;  %v1680_v20 = vmul.u32 %v6411_v62, %v1664_v54 }
 0x125   : > { %v1207_v34 = vsel %vm1200_vm3, %v1203_v38, %v1206_v36  ;;  %v2448_v59 = vsel %vm2441_vm13, %v2444_v55, %v2447_v48  ;;  %v4768_v10 = vadd.s32 4294967294, %v1485_v32  ;;  %vm1682_vm2 = vc.u32 %v6485_v17, %v6488_v3 }
 0x126   : > { %v1208_v46 = vsel %vm1197_vm7, nan, %v1207_v34  ;;  %v6524_v52 = vsel %vm1197_vm7, nan, %v2448_v59  ;;  %v1683_v53 = vadd.s32 1, %v6489_v31  ;;  %v1317_v1 = vshrl.u32 %v1316_v30, 23 }
 0x127   : > { %v4918_v45 = vpack.c.bf16 %v1208_v46, %v792_v33  ;;  %v4926_v57 = vpack.c.bf16 %v6524_v52, %v6418_v41  ;;  %vm4769_vm9 = vcmp.lt.s32.totalorder %v4768_v10, 0  ;;  %vm6533_vm10 = vcmp.le.f32.partialorder %v1417_v26, 0.7853982 }
 0x128   : > { %v1488_v56 = vsel %vm4769_vm9, 0, %v4768_v10  ;;  %v1684_v6 = vsel %vm1682_vm2, %v1683_v53, %v6489_v31  ;;  %v6541_v18 = vsel %vm6533_vm10, 0, %v1504_v35  ;;  %v4762_v5 = vadd.s32 4294967169, %v1317_v1 }
 0x129   : > { %4919 = vmatpush1.bf16.msra.mxu1 %v4918_v45  ;;  %v1489_v49 = vsub.s32 32, %v1488_v56  ;;  %v1490_v7 = vshll.u32 %v6463_v0, %v1488_v56  ;;  %v1493_v29 = vsub.s32 4294967266, %v1488_v56  ;;  %v1685_v22 = vadd.s32 %v1684_v6, %v1680_v20 }
 0x12a   : > { %v1320_v26 = vand.u32 8388607, %v1313_v37  ;;  %v1524_v14 = vand.u32 2139095040, %v6056_v16  ;;  %v1323_v31 = vadd.s32 1, %v4762_v5  ;;  %v1510_v0 = vadd.s32 3, %v6541_v18 }
 0x12b   : > { %v1491_v12 = vshrl.u32 %v1473_v40, %v1489_v49  ;;  %v1494_v47 = vadd.s32 127, %v1493_v29  ;;  %v1686_v21 = vadd.s32 536870912, %v1685_v22  ;;  %v4920_v36 = vpack.c.bf16 %v5827_v25, %v5768_v51  ;;  %v2972_v51 = vld [vmem:[%s7069_s3 + $0x18] sm:$0xff] }
 0x12c   : > { %vm1324_vm8 = vcmp.gt.s32.totalorder %v1323_v31, 0  ;;  %v1525_v54 = vshrl.u32 %v1524_v14, 23  ;;  %v1321_v33 = vor.u32 8388608, %v1320_v26  ;;  %v1521_v38 = vand.u32 2147483647, %v6056_v16 }
 0x12d   : > { %v1492_v50 = vor.u32 %v1491_v12, %v1490_v7  ;;  %v1495_v2 = vshll.u32 %v1494_v47, 23  ;;  %v1687_v42 = vshrl.u32 %v1686_v21, 30  ;;  %v1325_v40 = vsel %vm1324_vm8, %v1323_v31, 0 }
 0x12e   : > { %v4924_v55 = vpack.c.bf16 %v6091_v44, %v5955_v60  ;;  %vm1627_vm4 = vcmp.lt.s32.totalorder %v5570_v39, 0  ;;  %v6555_v10 = vand.u32 3, %v1510_v0  ;;  %v1681_v20 = vadd.s32 %v6488_v3, %v6485_v17  ;;  %v2968_v60 = vld [vmem:[%s7068_s2 + $0x18] sm:$0xff]  ;;  %v3376_v44 = vld [vmem:[%s7070_s4] sm:$0xff] }
 0x12f   : > { %v1496_v48 = vor.u32 4788187, %v1495_v2  ;;  %v1499_v32 = vcvt.s32.f32 %v1492_v50  ;;  %v1688_v30 = vshll.u32 %v1687_v42, 30  ;;  %v1711_v59 = vsub.s32 4, %v1687_v42 }
 0x130   : > { %v1327_v46 = vand.u32 31, %v1325_v40  ;;  %v4770_v53 = vadd.s32 4294967169, %v1525_v54  ;;  %v6560_v56 = vshrl.u32 %v1325_v40, 5  ;;  %v6562_v6 = vshll.u32 %v1321_v33, 8 }
 0x131   : > { %v1497_v35 = vand.u32 2147483647, %v1496_v48  ;;  %v6553_v34 = vsub.s32 %v1685_v22, %v1688_v30  ;;  %v6568_v22 = vand.u32 8388607, %v1521_v38  ;;  %vm6572_vm12 = vcmp.le.f32.partialorder %v1625_v27, 0.7853982 }
 0x132   : > { %v1328_v49 = vsub.s32 32, %v1327_v46  ;;  %v1330_v7 = vshll.u32 %v5271_v61, %v1327_v46  ;;  %v1333_v29 = vshll.u32 %v5272_v63, %v1327_v46  ;;  %v1712_v26 = vsel %vm1627_vm4, %v1711_v59, %v1687_v42 }
 0x133   : > { %v1500_v45 = vmul.f32 %v1499_v32, %v1497_v35  ;;  %v1691_v1 = vsub.s32 0, %v6553_v34  ;;  %v1336_v12 = vshll.u32 %v5273_v9, %v1327_v46  ;;  %v1531_v31 = vadd.s32 1, %v4770_v53 }
 0x134   : > { %v1331_v47 = vshrl.u32 %v5272_v63, %v1328_v49  ;;  %v1334_v21 = vshrl.u32 %v5273_v9, %v1328_v49  ;;  %v1337_v14 = vshrl.u32 %v5274_v11, %v1328_v49  ;;  %v1339_v2 = vshll.u32 %v5274_v11, %v1327_v46 }
 0x135   : > { %v1501_v5 = vxor.u32 2147483648, %v1500_v45  ;;  %v4775_v3 = vmin.u32 %v1691_v1, %v6553_v34  ;;  %vm1345_vm1 = vcmp.lt.s32.totalorder %v6560_v56, 1  ;;  %v1329_v0 = vshrl.u32 %v5271_v61, %v1328_v49 }
 0x136   : > { %v1332_v54 = vor.u32 %v1331_v47, %v1330_v7  ;;  %v1335_v48 = vor.u32 %v1334_v21, %v1333_v29  ;;  %v1338_v30 = vor.u32 %v1337_v14, %v1336_v12  ;;  %v1340_v33 = vshrl.u32 %v5275_v15, %v1328_v49 }
 0x137   : > { %v1502_v27 = vsel %vm1419_vm5, %v1501_v5, %v1500_v45  ;;  %v1693_v50 = vclz %v4775_v3  ;;  %v1342_v40 = vshll.u32 %v5275_v15, %v1327_v46  ;;  %v1343_v35 = vshrl.u32 %v5276_v28, %v1328_v49 }
 0x138   : > { %v1505_v42 = vsel %vm6533_vm10, %v5440_v19, %v1502_v27  ;;  %vm1346_vm3 = vcmp.lt.s32.totalorder %v6560_v56, 2  ;;  %v1341_v59 = vor.u32 %v1340_v33, %v1339_v2  ;;  %vm1347_vm0 = vcmp.lt.s32.totalorder %v6560_v56, 3 }
 0x139   : > { %5172 = vcosq.f32 %v1505_v42  ;;  %v4776_v32 = vadd.s32 4294967294, %v1693_v50  ;;  %vm1348_vm14 = vcmp.lt.s32.totalorder %v6560_v56, 4  ;;  %vm1513_vm7 = vcmp.eq.s32.totalorder %v6555_v10, 0 }
 0x13a   : > { %5174 = vsinq.f32 %v1505_v42  ;;  %v1344_v53 = vor.u32 %v1343_v35, %v1342_v40  ;;  %v1349_v45 = vsel %vm1345_vm1, %v1329_v0, %v1332_v54  ;;  %v1350_v46 = vsel %vm1348_vm14, %v1338_v30, 2102212464 }
 0x13b   : > { %vm4777_vm13 = vcmp.lt.s32.totalorder %v4776_v32, 0  ;;  %vm1512_vm15 = vcmp.lt.s32.totalorder %v6555_v10, 2  ;;  %v1351_v29 = vsel %vm1347_vm0, %v1335_v48, %v1350_v46  ;;  %vm1509_vm5 = vweird.f32 %v5440_v19 }
 0x13c   : > { %v1696_v62 = vsel %vm4777_vm13, 0, %v4776_v32  ;;  %v6609_v5 = vsel %vm6572_vm12, 0, %v1712_v26  ;;  %v1353_v3 = vsel %vm1345_vm1, %v1332_v54, %v1335_v48  ;;  %v1354_v12 = vsel %vm1348_vm14, %v1341_v59, 920167782 }
 0x13d   : > { %v1697_v1 = vsub.s32 32, %v1696_v62  ;;  %v1698_v49 = vshll.u32 %v6553_v34, %v1696_v62  ;;  %v1701_v7 = vsub.s32 4294967266, %v1696_v62  ;;  %v1357_v47 = vsel %vm1345_vm1, %v1335_v48, %v1338_v30 }
 0x13e   : > { %vm2986_vm6 = vcmask 1041408   ;;  %v1355_v14 = vsel %vm1347_vm0, %v1338_v30, %v1354_v12  ;;  %v1358_v27 = vsel %vm1348_vm14, %v1344_v53, 1326507024  ;;  %v1352_v26 = vsel %vm1346_vm3, %v1349_v45, %v1351_v29 }
 0x13f   : > { %v1699_v34 = vshrl.u32 %v1681_v20, %v1697_v1  ;;  %v1702_v21 = vadd.s32 127, %v1701_v7  ;;  %v1356_v50 = vsel %vm1346_vm3, %v1353_v3, %v1355_v14  ;;  %v1359_v2 = vsel %vm1347_vm0, %v1341_v59, %v1358_v27 }
 0x140   : > { %vm1532_vm11 = vcmp.gt.s32.totalorder %v1531_v31, 0  ;;  %v1360_v20 = vsel %vm1346_vm3, %v1357_v47, %v1359_v2  ;;  %v6634_v30 = vmul.u32.u64.low %v6562_v6, %v1356_v50  ;;  %v6635_v33 = vmul.u32.u64.high %v6562_v6, %v1356_v50, %v6634_v30 }
 0x141   : > { %v1700_v42 = vor.u32 %v1699_v34, %v1698_v49  ;;  %v1703_v0 = vshll.u32 %v1702_v21, 23  ;;  %v1533_v54 = vsel %vm1532_vm11, %v1531_v31, 0  ;;  %vm1516_vm2 = vcmp.eq.s32.totalorder %v6555_v10, 2 }
 0x142   : > { %v6630_v48 = vmul.u32.u64.low %v6562_v6, %v1360_v20  ;;  %v6631_v32 = vmul.u32.u64.high %v6562_v6, %v1360_v20, %v6630_v48  ;;  %v1535_v62 = vand.u32 31, %v1533_v54  ;;  %v1718_v31 = vadd.s32 3, %v6609_v5 }
 0x143   : > { %v6638_v40 = vpop.eup %5172  ;;  %v1704_v35 = vor.u32 4788187, %v1703_v0  ;;  %v1707_v59 = vcvt.s32.f32 %v1700_v42  ;;  %v1529_v45 = vor.u32 8388608, %v6568_v22  ;;  %v6647_v46 = vand.u32 3, %v6541_v18 }
 0x144   : > { %v6641_v53 = vpop.eup %5174  ;;  %v1517_v56 = vxor.u32 2147483648, %v6638_v40  ;;  %v1368_v7 = vmul.u32 %v6562_v6, %v1352_v26  ;;  %v1536_v29 = vsub.s32 32, %v1535_v62  ;;  %vm1370_vm9 = vc.u32 %v6631_v32, %v6634_v30 }
 0x145   : > { %v1514_v1 = vxor.u32 2147483648, %v6641_v53  ;;  %v1705_v49 = vand.u32 2147483647, %v1704_v35  ;;  %v1371_v12 = vadd.s32 1, %v6635_v33  ;;  %v1538_v22 = vshll.u32 %v5271_v61, %v1535_v62 }
 0x146   : > { %v1518_v3 = vsel %vm1516_vm2, %v1517_v56, %v6641_v53  ;;  %v1534_v6 = vshrl.u32 %v1533_v54, 5  ;;  %v1539_v34 = vshrl.u32 %v5272_v63, %v1536_v29  ;;  %v1541_v27 = vshll.u32 %v5272_v63, %v1535_v62 }
 0x147   : > { %v1515_v18 = vsel %vm1513_vm7, %v6638_v40, %v1514_v1  ;;  %v1708_v47 = vmul.f32 %v1707_v59, %v1705_v49  ;;  %v1372_v14 = vsel %vm1370_vm9, %v1371_v12, %v6635_v33  ;;  %v1542_v26 = vshrl.u32 %v5273_v9, %v1536_v29 }
 0x148   : > { %v1519_v21 = vsel %vm1512_vm15, %v1515_v18, %v1518_v3  ;;  %v1373_v42 = vadd.s32 %v1372_v14, %v1368_v7  ;;  %v1537_v0 = vshrl.u32 %v5271_v61, %v1536_v29  ;;  %v1540_v20 = vor.u32 %v1539_v34, %v1538_v22 }
 0x149   : > { %v1520_v50 = vsel %vm1509_vm5, nan, %v1519_v21  ;;  %v1709_v2 = vxor.u32 2147483648, %v1708_v47  ;;  %v1544_v54 = vshll.u32 %v5273_v9, %v1535_v62  ;;  %v1545_v10 = vshrl.u32 %v5274_v11, %v1536_v29 }
 0x14a   : > { %4826 = vmatprep.subr.msk.mxu0 %vm2986_vm6, %v1520_v50  ;;  %v1547_v48 = vshll.u32 %v5274_v11, %v1535_v62  ;;  %v1374_v33 = vadd.s32 536870912, %v1373_v42  ;;  %v1548_v35 = vshrl.u32 %v5275_v15, %v1536_v29  ;;  %v1550_v59 = vshll.u32 %v5275_v15, %v1535_v62 }
 0x14b   : > { %v1710_v63 = vsel %vm1627_vm4, %v1709_v2, %v1708_v47  ;;  %v1543_v49 = vor.u32 %v1542_v26, %v1541_v27  ;;  %v1546_v7 = vor.u32 %v1545_v10, %v1544_v54  ;;  %v1551_v9 = vshrl.u32 %v5276_v28, %v1536_v29 }
 0x14c   : > { %v1713_v61 = vsel %vm6572_vm12, %v5570_v39, %v1710_v63  ;;  %v6684_v3 = vshrl.u32 %v1374_v33, 30  ;;  %v1549_v11 = vor.u32 %v1548_v35, %v1547_v48  ;;  %vm1553_vm10 = vcmp.lt.s32.totalorder %v1534_v6, 1 }
 0x14d   : > { %5176 = vcosq.f32 %v1713_v61  ;;  %v1552_v12 = vor.u32 %v1551_v9, %v1550_v59  ;;  %vm1555_vm8 = vcmp.lt.s32.totalorder %v1534_v6, 3  ;;  %vm1556_vm4 = vcmp.lt.s32.totalorder %v1534_v6, 4  ;;  %v3600_v9 = vld [vmem:[%s6712_s8 + $0x10] sm:$0xff] }
 0x14e   : > { %5178 = vsinq.f32 %v1713_v61  ;;  %v1376_v15 = vshll.u32 %v6684_v3, 30  ;;  %vm1554_vm1 = vcmp.lt.s32.totalorder %v1534_v6, 2  ;;  %v1558_v62 = vsel %vm1556_vm4, %v1546_v7, 2102212464 }
 0x14f   : > { %v1569_v17 = vshll.u32 %v1529_v45, 8  ;;  %v1557_v22 = vsel %vm1553_vm10, %v1537_v0, %v1540_v20  ;;  %v1559_v18 = vsel %vm1555_vm8, %v1543_v49, %v1558_v62  ;;  %v1561_v47 = vsel %vm1553_vm10, %v1540_v20, %v1543_v49 }
 0x150   : > { %v1562_v28 = vsel %vm1556_vm4, %v1549_v11, 920167782  ;;  %v6688_v29 = vsub.s32 %v1373_v42, %v1376_v15  ;;  %v1565_v21 = vsel %vm1553_vm10, %v1543_v49, %v1546_v7  ;;  %vm2751_vm12 = vcmp.eq.s32.totalorder %v6647_v46, 0 }
 0x151   : > { %v1563_v34 = vsel %vm1555_vm8, %v1546_v7, %v1562_v28  ;;  %v1719_v14 = vand.u32 3, %v1718_v31  ;;  %v1566_v26 = vsel %vm1556_vm4, %v1552_v12, 1326507024  ;;  %v1560_v45 = vsel %vm1554_vm1, %v1557_v22, %v1559_v18  ;;  %v3598_v7 = vld [vmem:[%s6712_s8] sm:$0xff]  ;;  %v3599_v22 = vld [vmem:[%s6712_s8 + $0x8] sm:$0xff]  ;;  %v3601_v18 = vld [vmem:[%s6712_s8 + $0x18] sm:$0xff] }
 0x152   : > { %v1564_v27 = vsel %vm1554_vm1, %v1561_v47, %v1563_v34  ;;  %v1379_v50 = vsub.s32 0, %v6688_v29  ;;  %v1567_v2 = vsel %vm1555_vm8, %v1549_v11, %v1566_v26  ;;  %vm2754_vm3 = vcmp.eq.s32.totalorder %v6647_v46, 2 }
 0x153   : > { %v1568_v42 = vsel %vm1554_vm1, %v1565_v21, %v1567_v2  ;;  %v6699_v0 = vmul.u32.u64.low %v1569_v17, %v1564_v27  ;;  %v6700_v20 = vmul.u32.u64.high %v1569_v17, %v1564_v27, %v6699_v0  ;;  %v2753_v31 = vsel %vm2751_vm12, %v6638_v40, %v1514_v1 }
 0x154   : > { %vm1717_vm13 = vweird.f32 %v5570_v39  ;;  %v4763_v54 = vmin.u32 %v1379_v50, %v6688_v29  ;;  %vm2750_vm0 = vcmp.lt.s32.totalorder %v6647_v46, 2  ;;  %vm1720_vm14 = vcmp.lt.s32.totalorder %v1719_v14, 2 }
 0x155   : > { %v6714_v6 = vmul.u32.u64.low %v1569_v17, %v1568_v42  ;;  %v6715_v10 = vmul.u32.u64.high %v1569_v17, %v1568_v42, %v6714_v6  ;;  %v2756_v1 = vsel %vm2754_vm3, %v1517_v56, %v6641_v53  ;;  %vm1721_vm7 = vcmp.eq.s32.totalorder %v1719_v14, 0  ;;  %v3674_v42 = vld [vmem:[%s7072_s6] sm:$0xff] }
 0x156   : > { %vm1724_vm15 = vcmp.eq.s32.totalorder %v1719_v14, 2  ;;  %v1381_v63 = vclz %v4763_v54  ;;  %v1576_v46 = vmul.u32 %v1569_v17, %v1560_v45  ;;  %v1579_v59 = vadd.s32 1, %v6700_v20 }
 0x157   : > { %v5177_v48 = vpop.eup %5176  ;;  %v2757_v61 = vsel %vm2750_vm0, %v2753_v31, %v2756_v1  ;;  %v2955_v49 = vand.u32 3, %v6609_v5  ;;  %v1369_v56 = vadd.s32 %v6634_v30, %v6631_v32  ;;  %vm1578_vm11 = vc.u32 %v6715_v10, %v6699_v0 }
 0x158   : > { %v5179_v33 = vpop.eup %5178  ;;  %v1725_v35 = vxor.u32 2147483648, %v5177_v48  ;;  %v4764_v12 = vadd.s32 4294967294, %v1381_v63  ;;  %v6726_v40 = vsel %vm1509_vm5, nan, %v2757_v61  ;;  %v5278_v15 = vmov 0  }
 0x159   : > { %v1722_v11 = vxor.u32 2147483648, %v5179_v33  ;;  %vm2956_vm2 = vcmp.lt.s32.totalorder %v2955_v49, 2  ;;  %5136 = vset.pattern.permute.xlu0 %v5278_v15  ;;  %5137 = vset.pattern.permute.xlu1 %v5278_v15  ;;  %v1580_v19 = vsel %vm1578_vm11, %v1579_v59, %v6700_v20  ;;  %vm2957_vm5 = vcmp.eq.s32.totalorder %v2955_v49, 0 }
 0x15a   : > { %v1726_v53 = vsel %vm1724_vm15, %v1725_v35, %v5179_v33  ;;  %vm4765_vm9 = vcmp.lt.s32.totalorder %v4764_v12, 0  ;;  %3604 = vperm.xlu0 %5136, %v3598_v7   ;;  %3614 = vperm.xlu1 %5137, %v3600_v9   ;;  %v1581_v30 = vadd.s32 %v1580_v19, %v1576_v46  ;;  %vm2960_vm10 = vcmp.eq.s32.totalorder %v2955_v49, 2  ;;  %v3676_v46 = vld [vmem:[%s7072_s6 + $0x10] sm:$0xff]  ;;  %v4874_v7 = vld [vmem:[%s7072_s6 + $0x20] sm:$0xff]  ;;  %v4875_v9 = vld [vmem:[%s7072_s6 + $0x28] sm:$0xff] }
 0x15b   : > { %v1723_v5 = vsel %vm1721_vm7, %v5177_v48, %v1722_v11  ;;  %v1384_v32 = vsel %vm4765_vm9, 0, %v4764_v12  ;;  %v2959_v17 = vsel %vm2957_vm5, %v5177_v48, %v1722_v11  ;;  %v2962_v14 = vsel %vm2960_vm10, %v1725_v35, %v5179_v33  ;;  %v3677_v33 = vld [vmem:[%s7072_s6 + $0x18] sm:$0xff] }
 0x15c   : > { %v1727_v62 = vsel %vm1720_vm14, %v1723_v5, %v1726_v53  ;;  %v1385_v28 = vsub.s32 32, %v1384_v32  ;;  %v1386_v34 = vshll.u32 %v6688_v29, %v1384_v32  ;;  %v1389_v21 = vsub.s32 4294967266, %v1384_v32  ;;  %v3675_v29 = vld [vmem:[%s7072_s6 + $0x8] sm:$0xff] }
 0x15d   : > { %v1728_v47 = vsel %vm1717_vm13, nan, %v1727_v62  ;;  %v1582_v27 = vadd.s32 536870912, %v1581_v30  ;;  %v2963_v2 = vsel %vm2956_vm2, %v2959_v17, %v2962_v14  ;;  %v1399_v39 = vsub.s32 4, %v6684_v3  ;;  %v4876_v62 = vld [vmem:[%s7072_s6 + $0x30] sm:$0xff] }
 0x15e   : > { %4832 = vmatprep.subr.msk.mxu1 %vm2986_vm6, %v1728_v47  ;;  %v1387_v26 = vshrl.u32 %v1369_v56, %v1385_v28  ;;  %v1390_v50 = vadd.s32 127, %v1389_v21  ;;  %3609 = vperm.xlu0 %5136, %v3599_v22   ;;  %v6752_v54 = vsel %vm1717_vm13, nan, %v2963_v2  ;;  %vm1315_vm8 = vcmp.lt.s32.totalorder %v5830_v58, 0  ;;  %v4890_v47 = vld [vmem:[%s7072_s6 + $0x40] sm:$0xff]  ;;  %v4891_v28 = vld [vmem:[%s7072_s6 + $0x48] sm:$0xff] }
 0x15f   : > { %3619 = vperm.xlu1 %5137, %v3601_v18   ;;  %v6741_v45 = vshrl.u32 %v1582_v27, 30  ;;  %vm1314_vm4 = vcmp.le.f32.partialorder %v1313_v37, 0.7853982  ;;  %v1400_v12 = vsel %vm1315_vm8, %v1399_v39, %v6684_v3  ;;  %v4877_v37 = vld [vmem:[%s7072_s6 + $0x38] sm:$0xff]  ;;  %v1577_v3 = vadd.s32 %v6699_v0, %v6715_v10 }
 0x160   : > { %v1388_v20 = vor.u32 %v1387_v26, %v1386_v34  ;;  %v1391_v31 = vshll.u32 %v1390_v50, 23  ;;  %v6773_v5 = vsel %vm1314_vm4, 0, %v1400_v12  ;;  %v4892_v26 = vld [vmem:[%s7072_s6 + $0x50] sm:$0xff]  ;;  %v4893_v50 = vld [vmem:[%s7072_s6 + $0x58] sm:$0xff]  ;;  %vm1405_vm0 = vweird.f32 %v5830_v58 }
 0x161   : > { %v1584_v6 = vshll.u32 %v6741_v45, 30  ;;  %v1406_v32 = vadd.s32 3, %v6773_v5  ;;  %vm1522_vm14 = vcmp.le.f32.partialorder %v1521_v38, 0.7853982  ;;  %vm1523_vm7 = vcmp.lt.s32.totalorder %v6056_v16, 0 }
 0x162   : > { %v1392_v1 = vor.u32 4788187, %v1391_v31  ;;  %v1395_v48 = vcvt.s32.f32 %v1388_v20  ;;  %3680 = vperm.xlu0 %5136, %v3674_v42   ;;  %vm2973_vm15 = vcmask 146432   ;;  %vm7113_vm11 = vcmask 1042432  }
 0x163   : > { %3685 = vperm.xlu1 %5137, %v3675_v29   ;;  %v1585_v63 = vsub.s32 %v1581_v30, %v1584_v6  ;;  %v1407_v0 = vand.u32 3, %v1406_v32  ;;  %v4426_v29 = vld [vmem:[#allocation2] sm:$0x1]  ;;  %vm7114_vm2 = vmmov %vm7113_vm11 }
 0x164   : > { %v1393_v35 = vand.u32 2147483647, %v1392_v1  ;;  %v1607_v1 = vsub.s32 4, %v6741_v45 }
 0x165   : > { %v1587_v59 = vsub.s32 0, %v1585_v63  ;;  %vm1412_vm12 = vcmp.eq.s32.totalorder %v1407_v0, 2  ;;  %vm1409_vm3 = vcmp.eq.s32.totalorder %v1407_v0, 0  ;;  %vm1408_vm13 = vcmp.lt.s32.totalorder %v1407_v0, 2 }
 0x166   : > { %v1396_v61 = vmul.f32 %v1395_v48, %v1393_v35  ;;  %3690 = vperm.xlu0 %5136, %v3676_v46  }
 0x167   : > { %3695 = vperm.xlu1 %5137, %v3677_v33   ;;  %v4771_v49 = vmin.u32 %v1587_v59, %v1585_v63  ;;  %v1608_v59 = vsel %vm1523_vm7, %v1607_v1, %v6741_v45  ;;  %v2970_v45 = vld [vmem:[%s7069_s3 + $0x8] sm:$0xff] }
 0x168   : > { %v1397_v11 = vxor.u32 2147483648, %v1396_v61 }
 0x169   : > { %v1589_v53 = vclz %v4771_v49 }
 0x16a   : > { %v1398_v56 = vsel %vm1315_vm8, %v1397_v11, %v1396_v61  ;;  %3933 = vperm.xlu0 %5136, %v4874_v7   ;;  %v2969_v61 = vld [vmem:[%s7069_s3] sm:$0xff] }
 0x16b   : > { %3938 = vperm.xlu1 %5137, %v4875_v9   ;;  %v1401_v15 = vsel %vm1314_vm4, %v5830_v58, %v1398_v56  ;;  %v4772_v19 = vadd.s32 4294967294, %v1589_v53  ;;  %v1610_v9 = vsel %vm1522_vm14, 0, %v1608_v59  ;;  %v5189_v11 = vld [vmem:[%s5397_s28] sm:$0x77]  ;;  %v2646_v53 = vand.u32 3, %v6773_v5  ;;  %v2967_v58 = vld [vmem:[%s7068_s2 + $0x10] sm:$0xff] }
 0x16c   : > { %5180 = vcosq.f32 %v1401_v15  ;;  %v1614_v12 = vadd.s32 3, %v1610_v9  ;;  %s365_s28 = sand.u32 1, %s5253_s12  }
 0x16d   : > { %5182 = vsinq.f32 %v1401_v15  ;;  %vm4773_vm1 = vcmp.lt.s32.totalorder %v4772_v19, 0  ;;  %vm2648_vm9 = vcmp.eq.s32.totalorder %v2646_v53, 0  ;;  %vm2651_vm5 = vcmp.eq.s32.totalorder %v2646_v53, 2  ;;  %s4725_s26 = sshll.u32 %s365_s28, 2  ;;  %s4616_s19 = scalar_lea.sflag [#allocation4], %s365_s28 }
 0x16e   : > { %v1592_v30 = vsel %vm4773_vm1, 0, %v4772_v19  ;;  %3943 = vperm.xlu0 %5136, %v4876_v62   ;;  %v1615_v56 = vand.u32 3, %v1614_v12  ;;  %vm2647_vm8 = vcmp.lt.s32.totalorder %v2646_v53, 2  ;;  %vm3177_vm1 = vcmask 23552   ;;  %s367_s29 = scalar_lea.vmem [#allocation3], %s4725_s26 }
 0x16f   : > { %3948 = vperm.xlu1 %5137, %v4877_v37   ;;  %v1593_v17 = vsub.s32 32, %v1592_v30  ;;  %v1594_v22 = vshll.u32 %v1585_v63, %v1592_v30  ;;  %v1597_v18 = vsub.s32 4294967266, %v1592_v30  ;;  %v2965_v37 = vld [vmem:[%s7068_s2] sm:$0xff]  ;;  %s4632_s30 = sshll.u32 %s367_s29, 4  ;;  %s7021_s30 = int_to_ptr.vmem [resolvable:$true] %s4632_s30 }
 0x170   : > { %vm1620_vm10 = vcmp.eq.s32.totalorder %v1615_v56, 2  ;;  %vm1617_vm4 = vcmp.eq.s32.totalorder %v1615_v56, 0  ;;  %s5191_s21 = scalar_lea.vmem %s7021_s30, 64  ;;  %p5198_p1 = scmp.lt.s32.totalorder %s7021_s30, %s5196_s24 }
 0x171   : > { %v1595_v34 = vshrl.u32 %v1577_v3, %v1593_v17  ;;  %v1598_v21 = vadd.s32 127, %v1597_v18  ;;  %v2966_v18 = vld [vmem:[%s7068_s2 + $0x8] sm:$0xff]  ;;  %p5192_p12 = scmp.ne.s32.totalorder %s7021_s30, %s5191_s21  ;;  %p5199_p2 = scmp.lt.s32.totalorder %s5197_s25, %s5191_s21 }
 0x172   : > { %4185 = vperm.xlu0 %5136, %v4890_v47  }
 0x173   : > { %4190 = vperm.xlu1 %5137, %v4891_v28   ;;  %v1596_v10 = vor.u32 %v1595_v34, %v1594_v22  ;;  %v1599_v27 = vshll.u32 %v1598_v21, 23  ;;  %v3378_v34 = vld [vmem:[%s7070_s4 + $0x10] sm:$0xff]  ;;  %p5193_p13 = pnand %p5192_p12, %p5374_p4  ;;  %p5200_p3 = por %p5199_p2, %p5198_p1 }
 0x175   : > { %v1600_v14 = vor.u32 4788187, %v1599_v27  ;;  %v1603_v2 = vcvt.s32.f32 %v1596_v10  ;;  %p5194_p0 = pneg %p5193_p13 }
 0x176   : > { %v5181_v42 = vpop.eup %5180  ;;  %4195 = vperm.xlu0 %5136, %v4892_v26  }
 0x177   : > { %4200 = vperm.xlu1 %5137, %v4893_v50   ;;  %v5183_v20 = vpop.eup %5182  ;;  %v1413_v31 = vxor.u32 2147483648, %v5181_v42  ;;  %v1601_v6 = vand.u32 2147483647, %v1600_v14  ;;  %p5201_p5 = pnand %p5200_p3, %p5194_p0 }
 0x178   : > { %v1410_v48 = vxor.u32 2147483648, %v5183_v20 }
 0x179   : > { %v1414_v63 = vsel %vm1412_vm12, %v1413_v31, %v5183_v20  ;;  %v1604_v46 = vmul.f32 %v1603_v2, %v1601_v6  ;;  %v2653_v19 = vsel %vm2651_vm5, %v1413_v31, %v5183_v20  ;;  %vm1616_vm12 = vcmp.lt.s32.totalorder %v1615_v56, 2 }
 0x17a   : > { %v1411_v33 = vsel %vm1409_vm3, %v5181_v42, %v1410_v48  ;;  %4429 = vperm.xlu0 %5136, %v4426_v29   ;;  %v2650_v5 = vsel %vm2648_vm9, %v5181_v42, %v1410_v48  ;;  %vm1613_vm3 = vweird.f32 %v6056_v16 }
 0x17b   : > { %v1415_v35 = vsel %vm1408_vm13, %v1411_v33, %v1414_v63  ;;  %v1605_v39 = vxor.u32 2147483648, %v1604_v46  ;;  %v2654_v30 = vsel %vm2647_vm8, %v2650_v5, %v2653_v19  ;;  %vm7115_vm13 = vmmov %vm7114_vm2 }
 0x17c   : > { %v1416_v49 = vsel %vm1405_vm0, nan, %v1415_v35  ;;  %v2655_v47 = vsel %vm1405_vm0, nan, %v2654_v30 }
 0x17d   : > { %4827 = vmatpush1.msk.msra.mxu0 %vm2986_vm6, %v1416_v49  ;;  %v1606_v7 = vsel %vm1523_vm7, %v1605_v39, %v1604_v46 }
 0x17e   : > { %v1609_v38 = vsel %vm1522_vm14, %v6056_v16, %v1606_v7  ;;  %4828 = vmatmul.mubr.msk.f32.vlgmr.msra.gmra.mrb[0].mxu0 %vm2973_vm15, %v2969_v61  ;;  %4838 = vmatprep.subr.msk.mxu0 %vm7113_vm11, %v5422_v8  ;;  %v2971_v8 = vld [vmem:[%s7069_s3 + $0x10] sm:$0xff]  ;;  %vm7116_vm14 = vmmov %vm7114_vm2  ;;  %v3379_v16 = vld [vmem:[%s7070_s4 + $0x18] sm:$0xff] }
 0x17f   : > { %5184 = vcosq.f32 %v1609_v38  ;;  %3069 = vmatprep.mubr.f32.mxu0 %v5277_v4  ;;  %4839 = vmatpush1.msk.msra.mxu0 %vm7114_vm2, %v5189_v11 }
 0x180   : > { %5186 = vsinq.f32 %v1609_v38  ;;  %4921 = vmatprep.subr.bf16.mxu0 %v4920_v36 }
 0x182   : > { %4829 = vmatmul.mubr.msk.f32.gmra.mrb[2].mxu0 %vm2973_vm15, %v2970_v45 }
 0x183   : > { %3075 = vmatprep.mubr.f32.mxu0 %v5277_v4 }
 0x186   : > { %4830 = vmatmul.mubr.msk.f32.gmra.mrb[4].mxu0 %vm2973_vm15, %v2971_v8 }
 0x187   : > { %3081 = vmatprep.mubr.f32.mxu0 %v5277_v4 }
 0x189   : > { %v5185_v25 = vpop.eup %5184 }
 0x18a   : > { %v5187_v36 = vpop.eup %5186  ;;  %v1621_v15 = vxor.u32 2147483648, %v5185_v25  ;;  %4831 = vmatmul.mubr.msk.f32.gmra.mrb[6].mxu0 %vm2973_vm15, %v2972_v51 }
 0x18b   : > { %v1618_v62 = vxor.u32 2147483648, %v5187_v36  ;;  %3262 = vmatprep.mubr.f32.mxu0 %v5277_v4 }
 0x18c   : > { %v1622_v3 = vsel %vm1620_vm10, %v1621_v15, %v5187_v36 }
 0x18d   : > { %v1619_v32 = vsel %vm1617_vm4, %v5185_v25, %v1618_v62 }
 0x18e   : > { %v1623_v17 = vsel %vm1616_vm12, %v1619_v32, %v1622_v3  ;;  %4840 = vmatmul.mubr.msk.f32.vlgmr.msra.gmra.mrb[0].mxu0 %vm3177_vm1, %v2965_v37 }
 0x18f   : > { %v1624_v22 = vsel %vm1613_vm3, nan, %v1623_v17  ;;  %3268 = vmatprep.mubr.f32.mxu0 %v5277_v4  ;;  %4923 = vmatpush1.bf16.msra.mxu0 %v4922_v13 }
 0x190   : > { %4833 = vmatpush1.msk.msra.mxu1 %vm2986_vm6, %v1624_v22  ;;  %4850 = vmatprep.subr.msk.mxu0 %vm2986_vm6, %v6726_v40  ;;  %v3377_v40 = vld [vmem:[%s7070_s4 + $0x8] sm:$0xff]  ;;  %v3670_v22 = vld [vmem:[%s7071_s5] sm:$0xff] }
 0x191   : > { %4834 = vmatmul.mubr.msk.f32.vlgmr.msra.gmra.mrb[0].mxu1 %vm2973_vm15, %v2969_v61  ;;  %4844 = vmatprep.subr.msk.mxu1 %vm7115_vm13, %v5452_v24  ;;  %v2852_v24 = vand.u32 3, %v1610_v9 }
 0x192   : > { %3158 = vmatprep.mubr.f32.mxu1 %v5277_v4  ;;  %4845 = vmatpush1.msk.msra.mxu1 %vm7116_vm14, %v5190_v23 }
 0x193   : > { %4841 = vmatmul.mubr.msk.f32.gmra.mrb[2].mxu0 %vm3177_vm1, %v2966_v18  ;;  %4925 = vmatprep.subr.bf16.mxu1 %v4924_v55  ;;  %vm2854_vm0 = vcmp.eq.s32.totalorder %v2852_v24, 0  ;;  %vm2857_vm7 = vcmp.eq.s32.totalorder %v2852_v24, 2  ;;  %vm2853_vm11 = vcmp.lt.s32.totalorder %v2852_v24, 2 }
 0x194   : > { %3274 = vmatprep.mubr.f32.mxu0 %v5277_v4  ;;  %4851 = vmatpush1.msk.msra.mxu0 %vm2986_vm6, %v2655_v47  ;;  %v2856_v43 = vsel %vm2854_vm0, %v5185_v25, %v1618_v62  ;;  %v2859_v13 = vsel %vm2857_vm7, %v1621_v15, %v5187_v36 }
 0x195   : > { %4835 = vmatmul.mubr.msk.f32.gmra.mrb[2].mxu1 %vm2973_vm15, %v2970_v45  ;;  %v2860_v55 = vsel %vm2853_vm11, %v2856_v43, %v2859_v13 }
 0x196   : > { %3164 = vmatprep.mubr.f32.mxu1 %v5277_v4  ;;  %v2861_v28 = vsel %vm1613_vm3, nan, %v2860_v55  ;;  %v3671_v55 = vld [vmem:[%s7071_s5 + $0x8] sm:$0xff] }
 0x197   : > { %4842 = vmatmul.mubr.msk.f32.gmra.mrb[4].mxu0 %vm3177_vm1, %v2967_v58 }
 0x198   : > { %3280 = vmatprep.mubr.f32.mxu0 %v5277_v4 }
 0x199   : > { %4836 = vmatmul.mubr.msk.f32.gmra.mrb[4].mxu1 %vm2973_vm15, %v2971_v8 }
 0x19a   : > { %3170 = vmatprep.mubr.f32.mxu1 %v5277_v4 }
 0x19b   : > { %4843 = vmatmul.mubr.msk.f32.gmra.mrb[6].mxu0 %vm3177_vm1, %v2968_v60 }
 0x19c   : > { %3468 = vmatprep.mubr.f32.mxu0 %v5277_v4 }
 0x19d   : > { %4837 = vmatmul.mubr.msk.f32.gmra.mrb[6].mxu1 %vm2973_vm15, %v2972_v51 }
 0x19e   : > { %3351 = vmatprep.mubr.f32.mxu1 %v5277_v4 }
 0x19f   : > { %4852 = vmatmul.mubr.msk.f32.vlgmr.msra.gmra.mrb[0].mxu0 %vm2973_vm15, %v3376_v44 }
 0x1a0   : > { %3474 = vmatprep.mubr.f32.mxu0 %v5277_v4 }
 0x1a1   : > { %4846 = vmatmul.mubr.msk.f32.vlgmr.msra.gmra.mrb[0].mxu1 %vm3177_vm1, %v2965_v37 }
 0x1a2   : > { %3357 = vmatprep.mubr.f32.mxu1 %v5277_v4  ;;  %4927 = vmatpush1.bf16.msra.mxu1 %v4926_v57 }
 0x1a3   : > { %4856 = vmatprep.subr.msk.mxu1 %vm2986_vm6, %v6752_v54  ;;  %4853 = vmatmul.mubr.msk.f32.gmra.mrb[2].mxu0 %vm2973_vm15, %v3377_v40 }
 0x1a4   : > { %3480 = vmatprep.mubr.f32.mxu0 %v5277_v4 }
 0x1a5   : > { %4847 = vmatmul.mubr.msk.f32.gmra.mrb[2].mxu1 %vm3177_vm1, %v2966_v18 }
 0x1a6   : > { %3363 = vmatprep.mubr.f32.mxu1 %v5277_v4  ;;  %4857 = vmatpush1.msk.msra.mxu1 %vm2986_vm6, %v2861_v28  ;;  %vm3698_vm6 = vcmask 261120  }
 0x1a7   : > { %4854 = vmatmul.mubr.msk.f32.gmra.mrb[4].mxu0 %vm2973_vm15, %v3378_v34 }
 0x1a8   : > { %3486 = vmatprep.mubr.f32.mxu0 %v5277_v4 }
 0x1a9   : > { %4848 = vmatmul.mubr.msk.f32.gmra.mrb[4].mxu1 %vm3177_vm1, %v2967_v58 }
 0x1aa   : > { %3369 = vmatprep.mubr.f32.mxu1 %v5277_v4 }
 0x1ab   : > { %4855 = vmatmul.mubr.msk.f32.gmra.mrb[6].mxu0 %vm2973_vm15, %v3379_v16 }
 0x1ac   : > { %3775 = vmatprep.mubr.f32.mxu0 %v5277_v4 }
 0x1ad   : > { %4849 = vmatmul.mubr.msk.f32.gmra.mrb[6].mxu1 %vm3177_vm1, %v2968_v60 }
 0x1ae   : > { %3557 = vmatprep.mubr.f32.mxu1 %v5277_v4 }
 0x1b1   : > { %4858 = vmatmul.mubr.msk.f32.vlgmr.msra.gmra.mrb[0].mxu1 %vm2973_vm15, %v3376_v44 }
 0x1b2   : > { %3563 = vmatprep.mubr.f32.mxu1 %v5277_v4 }
 0x1b5   : > { %4859 = vmatmul.mubr.msk.f32.gmra.mrb[2].mxu1 %vm2973_vm15, %v3377_v40 }
 0x1b6   : > { %3569 = vmatprep.mubr.f32.mxu1 %v5277_v4 }
 0x1b9   : > { %4860 = vmatmul.mubr.msk.f32.gmra.mrb[4].mxu1 %vm2973_vm15, %v3378_v34 }
 0x1ba   : > { %3575 = vmatprep.mubr.f32.mxu1 %v5277_v4 }
 0x1bd   : > { %4861 = vmatmul.mubr.msk.f32.gmra.mrb[6].mxu1 %vm2973_vm15, %v3379_v16 }
 0x1be   : > { %3864 = vmatprep.mubr.f32.mxu1 %v5277_v4 }
 0x1d9   : > { %v3605_v41 = vpop.permute.xlu0 %3604  ;;  %v3615_v14 = vpop.permute.xlu1 %3614 }
 0x1dd   : > { %v3610_v0 = vpop.permute.xlu0 %3609 }
 0x1de   : > { %v3620_v59 = vpop.permute.xlu1 %3619 }
 0x272   : > { %v3470_v52 = vpop.f32.mrb[0].mxu0 }
 0x273   : > { %v3622_v57 = vadd.f32 %v3605_v41, %v3470_v52  ;;  %v3472_v54 = vpop.f32.mrb[1].mxu0 }
 0x274   : > { %v3623_v21 = vadd.f32 %v3605_v41, %v3472_v54 }
 0x275   : > { %v3638_v27 = vmul.f32 0.01, %v3622_v57 }
 0x276   : > { %v3476_v10 = vpop.f32.mrb[2].mxu0  ;;  %v3639_v2 = vmul.f32 0.01, %v3623_v21 }
 0x277   : > { %v3626_v26 = vadd.f32 %v3610_v0, %v3476_v10  ;;  %v3478_v50 = vpop.f32.mrb[3].mxu0  ;;  %v3654_v6 = vmax.f32 %v3622_v57, %v3638_v27 }
 0x278   : > { %v3627_v42 = vadd.f32 %v3610_v0, %v3478_v50  ;;  %v3655_v46 = vmax.f32 %v3623_v21, %v3639_v2 }
 0x279   : > { %v3642_v29 = vmul.f32 0.01, %v3626_v26 }
 0x27a   : > { %v3643_v20 = vmul.f32 0.01, %v3627_v42  ;;  %v3482_v31 = vpop.f32.mrb[4].mxu0 }
 0x27b   : > { %v3658_v1 = vmax.f32 %v3626_v26, %v3642_v29  ;;  %v3630_v48 = vadd.f32 %v3615_v14, %v3482_v31  ;;  %v3484_v63 = vpop.f32.mrb[5].mxu0 }
 0x27c   : > { %v3659_v33 = vmax.f32 %v3627_v42, %v3643_v20  ;;  %v3631_v35 = vadd.f32 %v3615_v14, %v3484_v63  ;;  %v3673_v42 = vld [vmem:[%s7071_s5 + $0x18] sm:$0xff] }
 0x27d   : > { %v4930_v39 = vpack.c.bf16 %v3658_v1, %v3654_v6  ;;  %v3646_v7 = vmul.f32 0.01, %v3630_v48  ;;  %v3681_v1 = vpop.permute.xlu0 %3680 }
 0x27e   : > { %v3488_v61 = vpop.f32.mrb[6].mxu0  ;;  %v4928_v49 = vpack.c.bf16 %v3659_v33, %v3655_v46  ;;  %v3647_v45 = vmul.f32 0.01, %v3631_v35 }
 0x27f   : > { %v3634_v38 = vadd.f32 %v3620_v59, %v3488_v61  ;;  %v3490_v9 = vpop.f32.mrb[7].mxu0  ;;  %v3662_v53 = vmax.f32 %v3630_v48, %v3646_v7 }
 0x280   : > { %v3635_v11 = vadd.f32 %v3620_v59, %v3490_v9  ;;  %4929 = vmatprep.subr.bf16.mxu0 %v4928_v49  ;;  %v3663_v25 = vmax.f32 %v3631_v35, %v3647_v45  ;;  %v3686_v35 = vpop.permute.xlu1 %3685 }
 0x281   : > { %v3650_v12 = vmul.f32 0.01, %v3634_v38  ;;  %4931 = vmatpush1.bf16.msra.mxu0 %v4930_v39  ;;  %v3691_v45 = vpop.permute.xlu0 %3690 }
 0x282   : > { %v3651_v8 = vmul.f32 0.01, %v3635_v11 }
 0x283   : > { %v3666_v56 = vmax.f32 %v3634_v38, %v3650_v12 }
 0x284   : > { %v3559_v51 = vpop.f32.mrb[0].mxu1  ;;  %v3667_v36 = vmax.f32 %v3635_v11, %v3651_v8 }
 0x285   : > { %v3624_v15 = vadd.f32 %v3605_v41, %v3559_v51  ;;  %v3561_v5 = vpop.f32.mrb[1].mxu1  ;;  %v4934_v19 = vpack.c.bf16 %v3666_v56, %v3662_v53 }
 0x286   : > { %v3625_v62 = vadd.f32 %v3605_v41, %v3561_v5  ;;  %v4932_v37 = vpack.c.bf16 %v3667_v36, %v3663_v25 }
 0x287   : > { %v3640_v32 = vmul.f32 0.01, %v3624_v15 }
 0x288   : > { %v3565_v3 = vpop.f32.mrb[2].mxu1  ;;  %4933 = vmatprep.subr.bf16.mxu0 %v4932_v37  ;;  %v3641_v18 = vmul.f32 0.01, %v3625_v62 }
 0x289   : > { %v3628_v30 = vadd.f32 %v3610_v0, %v3565_v3  ;;  %v3567_v17 = vpop.f32.mrb[3].mxu1  ;;  %4935 = vmatpush1.bf16.msra.mxu0 %v4934_v19  ;;  %v3656_v60 = vmax.f32 %v3624_v15, %v3640_v32  ;;  %v3696_v19 = vpop.permute.xlu1 %3695 }
 0x28a   : > { %v3629_v47 = vadd.f32 %v3610_v0, %v3567_v17  ;;  %v3657_v40 = vmax.f32 %v3625_v62, %v3641_v18  ;;  %v3672_v0 = vld [vmem:[%s7071_s5 + $0x10] sm:$0xff] }
 0x28b   : > { %v3644_v23 = vmul.f32 0.01, %v3628_v30 }
 0x28c   : > { %v3645_v58 = vmul.f32 0.01, %v3629_v47  ;;  %v3571_v24 = vpop.f32.mrb[4].mxu1  ;;  %4862 = vmatmul.mubr.msk.f32.vlgmr.msra.gmra.mrb[8].mxu0 %vm3698_vm6, %v3670_v22 }
 0x28d   : > { %v3660_v44 = vmax.f32 %v3628_v30, %v3644_v23  ;;  %v3632_v43 = vadd.f32 %v3615_v14, %v3571_v24  ;;  %v3573_v13 = vpop.f32.mrb[5].mxu1  ;;  %3781 = vmatprep.mubr.f32.mxu0 %v5277_v4 }
 0x28e   : > { %v3661_v28 = vmax.f32 %v3629_v47, %v3645_v58  ;;  %v3633_v34 = vadd.f32 %v3615_v14, %v3573_v13 }
 0x28f   : > { %v4938_v16 = vpack.c.bf16 %v3660_v44, %v3656_v60  ;;  %v3648_v57 = vmul.f32 0.01, %v3632_v43 }
 0x290   : > { %v3577_v41 = vpop.f32.mrb[6].mxu1  ;;  %v4936_v52 = vpack.c.bf16 %v3661_v28, %v3657_v40  ;;  %4863 = vmatmul.mubr.msk.f32.gmra.mrb[10].mxu0 %vm3698_vm6, %v3671_v55  ;;  %v3649_v10 = vmul.f32 0.01, %v3633_v34 }
 0x291   : > { %v3636_v54 = vadd.f32 %v3620_v59, %v3577_v41  ;;  %v3579_v21 = vpop.f32.mrb[7].mxu1  ;;  %3787 = vmatprep.mubr.f32.mxu0 %v5277_v4  ;;  %v3664_v14 = vmax.f32 %v3632_v43, %v3648_v57  ;;  %v4870_v57 = vld [vmem:[%s7071_s5 + $0x20] sm:$0xff] }
 0x292   : > { %v3637_v27 = vadd.f32 %v3620_v59, %v3579_v21  ;;  %4937 = vmatprep.subr.bf16.mxu1 %v4936_v52  ;;  %v3665_v29 = vmax.f32 %v3633_v34, %v3649_v10 }
 0x293   : > { %v3652_v26 = vmul.f32 0.01, %v3636_v54  ;;  %4939 = vmatpush1.bf16.msra.mxu1 %v4938_v16 }
 0x294   : > { %v3653_v50 = vmul.f32 0.01, %v3637_v27  ;;  %4864 = vmatmul.mubr.msk.f32.gmra.mrb[12].mxu0 %vm3698_vm6, %v3672_v0 }
 0x295   : > { %v3668_v2 = vmax.f32 %v3636_v54, %v3652_v26  ;;  %3793 = vmatprep.mubr.f32.mxu0 %v5277_v4 }
 0x296   : > { %v3669_v20 = vmax.f32 %v3637_v27, %v3653_v50 }
 0x297   : > { %v4942_v31 = vpack.c.bf16 %v3668_v2, %v3664_v14 }
 0x298   : > { %v4940_v6 = vpack.c.bf16 %v3669_v20, %v3665_v29  ;;  %4865 = vmatmul.mubr.msk.f32.gmra.mrb[14].mxu0 %vm3698_vm6, %v3673_v42 }
 0x299   : > { %4027 = vmatprep.mubr.f32.mxu0 %v5277_v4 }
 0x29a   : > { %4941 = vmatprep.subr.bf16.mxu1 %v4940_v6 }
 0x29b   : > { %4943 = vmatpush1.bf16.msra.mxu1 %v4942_v31 }
 0x29e   : > { %4866 = vmatmul.mubr.msk.f32.vlgmr.msra.gmra.mrb[8].mxu1 %vm3698_vm6, %v3670_v22 }
 0x29f   : > { %3870 = vmatprep.mubr.f32.mxu1 %v5277_v4 }
 0x2a2   : > { %4867 = vmatmul.mubr.msk.f32.gmra.mrb[10].mxu1 %vm3698_vm6, %v3671_v55 }
 0x2a3   : > { %3876 = vmatprep.mubr.f32.mxu1 %v5277_v4 }
 0x2a6   : > { %4868 = vmatmul.mubr.msk.f32.gmra.mrb[12].mxu1 %vm3698_vm6, %v3672_v0 }
 0x2a7   : > { %3882 = vmatprep.mubr.f32.mxu1 %v5277_v4 }
 0x2aa   : > { %4869 = vmatmul.mubr.msk.f32.gmra.mrb[14].mxu1 %vm3698_vm6, %v3673_v42  ;;  %v4871_v42 = vld [vmem:[%s7071_s5 + $0x28] sm:$0xff] }
 0x2ab   : > { %4116 = vmatprep.mubr.f32.mxu1 %v5277_v4 }
 0x35f   : > { %v3777_v48 = vpop.f32.mrb[8].mxu0 }
 0x360   : > { %v3778_v63 = vadd.f32 %v3777_v48, %v3681_v1  ;;  %v3779_v46 = vpop.f32.mrb[9].mxu0 }
 0x361   : > { %v3780_v33 = vadd.f32 %v3779_v46, %v3681_v1 }
 0x362   : > { %v3889_v59 = vmul.f32 0.01, %v3778_v63 }
 0x363   : > { %v3783_v39 = vpop.f32.mrb[10].mxu0  ;;  %v3890_v7 = vmul.f32 0.01, %v3780_v33 }
 0x364   : > { %v3784_v61 = vadd.f32 %v3783_v39, %v3686_v35  ;;  %v3785_v49 = vpop.f32.mrb[11].mxu0  ;;  %v3905_v8 = vmax.f32 %v3778_v63, %v3889_v59 }
 0x365   : > { %v3786_v38 = vadd.f32 %v3785_v49, %v3686_v35  ;;  %v3906_v25 = vmax.f32 %v3780_v33, %v3890_v7 }
 0x366   : > { %v3893_v9 = vmul.f32 0.01, %v3784_v61 }
 0x367   : > { %v3894_v11 = vmul.f32 0.01, %v3786_v38  ;;  %v3789_v12 = vpop.f32.mrb[12].mxu0 }
 0x368   : > { %v3909_v53 = vmax.f32 %v3784_v61, %v3893_v9  ;;  %v3790_v56 = vadd.f32 %v3789_v12, %v3691_v45  ;;  %v3791_v51 = vpop.f32.mrb[13].mxu0  ;;  %v4873_v9 = vld [vmem:[%s7071_s5 + $0x38] sm:$0xff] }
 0x369   : > { %v3910_v36 = vmax.f32 %v3786_v38, %v3894_v11  ;;  %v3792_v15 = vadd.f32 %v3791_v51, %v3691_v45 }
 0x36a   : > { %v4946_v5 = vpack.c.bf16 %v3909_v53, %v3905_v8  ;;  %v3897_v3 = vmul.f32 0.01, %v3790_v56  ;;  %v3934_v53 = vpop.permute.xlu0 %3933 }
 0x36b   : > { %v3795_v62 = vpop.f32.mrb[14].mxu0  ;;  %v4944_v37 = vpack.c.bf16 %v3910_v36, %v3906_v25  ;;  %v3898_v17 = vmul.f32 0.01, %v3792_v15 }
 0x36c   : > { %v3796_v32 = vadd.f32 %v3795_v62, %v3696_v19  ;;  %v3797_v30 = vpop.f32.mrb[15].mxu0  ;;  %v3913_v23 = vmax.f32 %v3790_v56, %v3897_v3 }
 0x36d   : > { %v3798_v22 = vadd.f32 %v3797_v30, %v3696_v19  ;;  %4945 = vmatprep.subr.bf16.mxu0 %v4944_v37  ;;  %v3914_v60 = vmax.f32 %v3792_v15, %v3898_v17  ;;  %v3939_v15 = vpop.permute.xlu1 %3938 }
 0x36e   : > { %v3901_v18 = vmul.f32 0.01, %v3796_v32  ;;  %4947 = vmatpush1.bf16.msra.mxu0 %v4946_v5  ;;  %v3944_v17 = vpop.permute.xlu0 %3943 }
 0x36f   : > { %v3902_v47 = vmul.f32 0.01, %v3798_v22 }
 0x370   : > { %v3917_v58 = vmax.f32 %v3796_v32, %v3901_v18 }
 0x371   : > { %v3866_v24 = vpop.f32.mrb[8].mxu1  ;;  %v3918_v44 = vmax.f32 %v3798_v22, %v3902_v47 }
 0x372   : > { %v3867_v43 = vadd.f32 %v3866_v24, %v3681_v1  ;;  %v3868_v13 = vpop.f32.mrb[9].mxu1  ;;  %v4950_v55 = vpack.c.bf16 %v3917_v58, %v3913_v23 }
 0x373   : > { %v3869_v40 = vadd.f32 %v3868_v13, %v3681_v1  ;;  %v4948_v28 = vpack.c.bf16 %v3918_v44, %v3914_v60 }
 0x374   : > { %v3891_v16 = vmul.f32 0.01, %v3867_v43 }
 0x375   : > { %v3872_v34 = vpop.f32.mrb[10].mxu1  ;;  %4949 = vmatprep.subr.bf16.mxu0 %v4948_v28  ;;  %v3892_v54 = vmul.f32 0.01, %v3869_v40 }
 0x376   : > { %v3873_v41 = vadd.f32 %v3872_v34, %v3686_v35  ;;  %v3874_v52 = vpop.f32.mrb[11].mxu1  ;;  %4951 = vmatpush1.bf16.msra.mxu0 %v4950_v55  ;;  %v3907_v26 = vmax.f32 %v3867_v43, %v3891_v16  ;;  %v3949_v55 = vpop.permute.xlu1 %3948 }
 0x377   : > { %v3875_v21 = vadd.f32 %v3874_v52, %v3686_v35  ;;  %v3908_v29 = vmax.f32 %v3869_v40, %v3892_v54  ;;  %v4872_v35 = vld [vmem:[%s7071_s5 + $0x30] sm:$0xff] }
 0x378   : > { %v3895_v0 = vmul.f32 0.01, %v3873_v41 }
 0x379   : > { %v3896_v10 = vmul.f32 0.01, %v3875_v21  ;;  %v3878_v27 = vpop.f32.mrb[12].mxu1  ;;  %4878 = vmatmul.mubr.msk.f32.vlgmr.msra.gmra.mrb[16].mxu0 %vm3698_vm6, %v4870_v57 }
 0x37a   : > { %v3911_v50 = vmax.f32 %v3873_v41, %v3895_v0  ;;  %v3879_v14 = vadd.f32 %v3878_v27, %v3691_v45  ;;  %v3880_v2 = vpop.f32.mrb[13].mxu1  ;;  %4033 = vmatprep.mubr.f32.mxu0 %v5277_v4 }
 0x37b   : > { %v3912_v20 = vmax.f32 %v3875_v21, %v3896_v10  ;;  %v3881_v31 = vadd.f32 %v3880_v2, %v3691_v45 }
 0x37c   : > { %v4954_v6 = vpack.c.bf16 %v3911_v50, %v3907_v26  ;;  %v3899_v63 = vmul.f32 0.01, %v3879_v14 }
 0x37d   : > { %v3884_v1 = vpop.f32.mrb[14].mxu1  ;;  %v4952_v48 = vpack.c.bf16 %v3912_v20, %v3908_v29  ;;  %4879 = vmatmul.mubr.msk.f32.gmra.mrb[18].mxu0 %vm3698_vm6, %v4871_v42  ;;  %v3900_v39 = vmul.f32 0.01, %v3881_v31 }
 0x37e   : > { %v3885_v46 = vadd.f32 %v3884_v1, %v3696_v19  ;;  %v3886_v33 = vpop.f32.mrb[15].mxu1  ;;  %4039 = vmatprep.mubr.f32.mxu0 %v5277_v4  ;;  %v3915_v7 = vmax.f32 %v3879_v14, %v3899_v63  ;;  %v4886_v63 = vld [vmem:[%s7071_s5 + $0x40] sm:$0xff] }
 0x37f   : > { %v3887_v59 = vadd.f32 %v3886_v33, %v3696_v19  ;;  %4953 = vmatprep.subr.bf16.mxu1 %v4952_v48  ;;  %v3916_v45 = vmax.f32 %v3881_v31, %v3900_v39 }
 0x380   : > { %v3903_v61 = vmul.f32 0.01, %v3885_v46  ;;  %4955 = vmatpush1.bf16.msra.mxu1 %v4954_v6 }
 0x381   : > { %v3904_v49 = vmul.f32 0.01, %v3887_v59  ;;  %4880 = vmatmul.mubr.msk.f32.gmra.mrb[20].mxu0 %vm3698_vm6, %v4872_v35 }
 0x382   : > { %v3919_v38 = vmax.f32 %v3885_v46, %v3903_v61  ;;  %4045 = vmatprep.mubr.f32.mxu0 %v5277_v4 }
 0x383   : > { %v3920_v11 = vmax.f32 %v3887_v59, %v3904_v49 }
 0x384   : > { %v4958_v12 = vpack.c.bf16 %v3919_v38, %v3915_v7 }
 0x385   : > { %v4956_v8 = vpack.c.bf16 %v3920_v11, %v3916_v45  ;;  %4881 = vmatmul.mubr.msk.f32.gmra.mrb[22].mxu0 %vm3698_vm6, %v4873_v9 }
 0x386   : > { %4279 = vmatprep.mubr.f32.mxu0 %v5277_v4 }
 0x387   : > { %4957 = vmatprep.subr.bf16.mxu1 %v4956_v8 }
 0x388   : > { %4959 = vmatpush1.bf16.msra.mxu1 %v4958_v12 }
 0x38b   : > { %4882 = vmatmul.mubr.msk.f32.vlgmr.msra.gmra.mrb[16].mxu1 %vm3698_vm6, %v4870_v57 }
 0x38c   : > { %4122 = vmatprep.mubr.f32.mxu1 %v5277_v4 }
 0x38f   : > { %4883 = vmatmul.mubr.msk.f32.gmra.mrb[18].mxu1 %vm3698_vm6, %v4871_v42 }
 0x390   : > { %4128 = vmatprep.mubr.f32.mxu1 %v5277_v4 }
 0x393   : > { %4884 = vmatmul.mubr.msk.f32.gmra.mrb[20].mxu1 %vm3698_vm6, %v4872_v35 }
 0x394   : > { %4134 = vmatprep.mubr.f32.mxu1 %v5277_v4 }
 0x397   : > { %4885 = vmatmul.mubr.msk.f32.gmra.mrb[22].mxu1 %vm3698_vm6, %v4873_v9  ;;  %v4887_v9 = vld [vmem:[%s7071_s5 + $0x48] sm:$0xff] }
 0x398   : > { %4368 = vmatprep.mubr.f32.mxu1 %v5277_v4 }
 0x44c   : > { %v4029_v56 = vpop.f32.mrb[16].mxu0 }
 0x44d   : > { %v4030_v51 = vadd.f32 %v4029_v56, %v3934_v53  ;;  %v4031_v25 = vpop.f32.mrb[17].mxu0 }
 0x44e   : > { %v4032_v36 = vadd.f32 %v4031_v25, %v3934_v53 }
 0x44f   : > { %v4141_v19 = vmul.f32 0.01, %v4030_v51 }
 0x450   : > { %v4035_v5 = vpop.f32.mrb[18].mxu0  ;;  %v4142_v3 = vmul.f32 0.01, %v4032_v36 }
 0x451   : > { %v4036_v62 = vadd.f32 %v4035_v5, %v3939_v15  ;;  %v4037_v37 = vpop.f32.mrb[19].mxu0  ;;  %v4157_v47 = vmax.f32 %v4030_v51, %v4141_v19 }
 0x452   : > { %v4038_v32 = vadd.f32 %v4037_v37, %v3939_v15  ;;  %v4158_v60 = vmax.f32 %v4032_v36, %v4142_v3 }
 0x453   : > { %v4145_v30 = vmul.f32 0.01, %v4036_v62 }
 0x454   : > { %v4146_v22 = vmul.f32 0.01, %v4038_v32  ;;  %v4041_v18 = vpop.f32.mrb[20].mxu0 }
 0x455   : > { %v4161_v23 = vmax.f32 %v4036_v62, %v4145_v30  ;;  %v4042_v58 = vadd.f32 %v4041_v18, %v3944_v17  ;;  %v4043_v24 = vpop.f32.mrb[21].mxu0  ;;  %v4889_v30 = vld [vmem:[%s7071_s5 + $0x58] sm:$0xff] }
 0x456   : > { %v4162_v44 = vmax.f32 %v4038_v32, %v4146_v22  ;;  %v4044_v43 = vadd.f32 %v4043_v24, %v3944_v17 }
 0x457   : > { %v4962_v13 = vpack.c.bf16 %v4161_v23, %v4157_v47  ;;  %v4149_v34 = vmul.f32 0.01, %v4042_v58  ;;  %v4186_v23 = vpop.permute.xlu0 %4185 }
 0x458   : > { %v4047_v40 = vpop.f32.mrb[22].mxu0  ;;  %v4960_v28 = vpack.c.bf16 %v4162_v44, %v4158_v60  ;;  %v4150_v52 = vmul.f32 0.01, %v4044_v43 }
 0x459   : > { %v4048_v16 = vadd.f32 %v4047_v40, %v3949_v55  ;;  %v4049_v41 = vpop.f32.mrb[23].mxu0  ;;  %v4165_v0 = vmax.f32 %v4042_v58, %v4149_v34 }
 0x45a   : > { %v4050_v57 = vadd.f32 %v4049_v41, %v3949_v55  ;;  %4961 = vmatprep.subr.bf16.mxu0 %v4960_v28  ;;  %v4166_v26 = vmax.f32 %v4044_v43, %v4150_v52  ;;  %v4191_v43 = vpop.permute.xlu1 %4190 }
 0x45b   : > { %v4153_v54 = vmul.f32 0.01, %v4048_v16  ;;  %4963 = vmatpush1.bf16.msra.mxu0 %v4962_v13  ;;  %v4196_v52 = vpop.permute.xlu0 %4195 }
 0x45c   : > { %v4154_v21 = vmul.f32 0.01, %v4050_v57 }
 0x45d   : > { %v4169_v10 = vmax.f32 %v4048_v16, %v4153_v54 }
 0x45e   : > { %v4118_v27 = vpop.f32.mrb[16].mxu1  ;;  %v4170_v50 = vmax.f32 %v4050_v57, %v4154_v21 }
 0x45f   : > { %v4119_v14 = vadd.f32 %v4118_v27, %v3934_v53  ;;  %v4120_v2 = vpop.f32.mrb[17].mxu1  ;;  %v4966_v42 = vpack.c.bf16 %v4169_v10, %v4165_v0 }
 0x460   : > { %v4121_v29 = vadd.f32 %v4120_v2, %v3934_v53  ;;  %v4964_v20 = vpack.c.bf16 %v4170_v50, %v4166_v26  ;;  %v4201_v2 = vpop.permute.xlu1 %4200 }
 0x461   : > { %v4143_v6 = vmul.f32 0.01, %v4119_v14 }
 0x462   : > { %v4124_v31 = vpop.f32.mrb[18].mxu1  ;;  %4965 = vmatprep.subr.bf16.mxu0 %v4964_v20  ;;  %v4144_v46 = vmul.f32 0.01, %v4121_v29 }
 0x463   : > { %v4125_v1 = vadd.f32 %v4124_v31, %v3939_v15  ;;  %v4126_v48 = vpop.f32.mrb[19].mxu1  ;;  %4967 = vmatpush1.bf16.msra.mxu0 %v4966_v42  ;;  %v4159_v61 = vmax.f32 %v4119_v14, %v4143_v6 }
 0x464   : > { %v4127_v33 = vadd.f32 %v4126_v48, %v3939_v15  ;;  %v4160_v45 = vmax.f32 %v4121_v29, %v4144_v46  ;;  %v4888_v15 = vld [vmem:[%s7071_s5 + $0x50] sm:$0xff] }
 0x465   : > { %v4147_v35 = vmul.f32 0.01, %v4125_v1 }
 0x466   : > { %v4148_v39 = vmul.f32 0.01, %v4127_v33  ;;  %v4130_v59 = vpop.f32.mrb[20].mxu1  ;;  %4894 = vmatmul.mubr.msk.f32.vlgmr.msra.gmra.mrb[24].mxu0 %vm3698_vm6, %v4886_v63 }
 0x467   : > { %v4163_v49 = vmax.f32 %v4125_v1, %v4147_v35  ;;  %v4131_v7 = vadd.f32 %v4130_v59, %v3944_v17  ;;  %v4132_v38 = vpop.f32.mrb[21].mxu1  ;;  %4285 = vmatprep.mubr.f32.mxu0 %v5277_v4 }
 0x468   : > { %v4164_v11 = vmax.f32 %v4127_v33, %v4148_v39  ;;  %v4133_v12 = vadd.f32 %v4132_v38, %v3944_v17 }
 0x469   : > { %v4970_v8 = vpack.c.bf16 %v4163_v49, %v4159_v61  ;;  %v4151_v51 = vmul.f32 0.01, %v4131_v7 }
 0x46a   : > { %v4136_v53 = vpop.f32.mrb[22].mxu1  ;;  %v4968_v56 = vpack.c.bf16 %v4164_v11, %v4160_v45  ;;  %4895 = vmatmul.mubr.msk.f32.gmra.mrb[26].mxu0 %vm3698_vm6, %v4887_v9  ;;  %v4152_v5 = vmul.f32 0.01, %v4133_v12 }
 0x46b   : > { %v4137_v25 = vadd.f32 %v4136_v53, %v3949_v55  ;;  %v4138_v36 = vpop.f32.mrb[23].mxu1  ;;  %4291 = vmatprep.mubr.f32.mxu0 %v5277_v4  ;;  %v4167_v3 = vmax.f32 %v4131_v7, %v4151_v51 }
 0x46c   : > { %v4139_v19 = vadd.f32 %v4138_v36, %v3949_v55  ;;  %4969 = vmatprep.subr.bf16.mxu1 %v4968_v56  ;;  %v4168_v17 = vmax.f32 %v4133_v12, %v4152_v5  ;;  %v4425_v56 = vld [vmem:[%s7073_s7] sm:$0x1] }
 0x46d   : > { %v4155_v62 = vmul.f32 0.01, %v4137_v25  ;;  %4971 = vmatpush1.bf16.msra.mxu1 %v4970_v8 }
 0x46e   : > { %v4156_v37 = vmul.f32 0.01, %v4139_v19  ;;  %4896 = vmatmul.mubr.msk.f32.gmra.mrb[28].mxu0 %vm3698_vm6, %v4888_v15 }
 0x46f   : > { %v4171_v32 = vmax.f32 %v4137_v25, %v4155_v62  ;;  %4297 = vmatprep.mubr.f32.mxu0 %v5277_v4 }
 0x470   : > { %v4172_v22 = vmax.f32 %v4139_v19, %v4156_v37 }
 0x471   : > { %v4974_v18 = vpack.c.bf16 %v4171_v32, %v4167_v3 }
 0x472   : > { %v4972_v47 = vpack.c.bf16 %v4172_v22, %v4168_v17  ;;  %4897 = vmatmul.mubr.msk.f32.gmra.mrb[30].mxu0 %vm3698_vm6, %v4889_v30 }
 0x473   : > { %4503 = vmatprep.mubr.f32.mxu0 %v5277_v4 }
 0x474   : > { %4973 = vmatprep.subr.bf16.mxu1 %v4972_v47 }
 0x475   : > { %4975 = vmatpush1.bf16.msra.mxu1 %v4974_v18 }
 0x478   : > { %4898 = vmatmul.mubr.msk.f32.vlgmr.msra.gmra.mrb[24].mxu1 %vm3698_vm6, %v4886_v63 }
 0x479   : > { %4374 = vmatprep.mubr.f32.mxu1 %v5277_v4 }
 0x47c   : > { %4899 = vmatmul.mubr.msk.f32.gmra.mrb[26].mxu1 %vm3698_vm6, %v4887_v9 }
 0x47d   : > { %4380 = vmatprep.mubr.f32.mxu1 %v5277_v4 }
 0x480   : > { %4900 = vmatmul.mubr.msk.f32.gmra.mrb[28].mxu1 %vm3698_vm6, %v4888_v15 }
 0x481   : > { %4386 = vmatprep.mubr.f32.mxu1 %v5277_v4 }
 0x484   : > { %4901 = vmatmul.mubr.msk.f32.gmra.mrb[30].mxu1 %vm3698_vm6, %v4889_v30 }
 0x485   : > { %4574 = vmatprep.mubr.f32.mxu1 %v5277_v4 }
 0x539   : > { %v4281_v58 = vpop.f32.mrb[24].mxu0 }
 0x53a   : > { %v4282_v24 = vadd.f32 %v4281_v58, %v4186_v23  ;;  %v4283_v60 = vpop.f32.mrb[25].mxu0 }
 0x53b   : > { %v4284_v44 = vadd.f32 %v4283_v60, %v4186_v23 }
 0x53c   : > { %v4393_v55 = vmul.f32 0.01, %v4282_v24 }
 0x53d   : > { %v4287_v13 = vpop.f32.mrb[26].mxu0  ;;  %v4394_v34 = vmul.f32 0.01, %v4284_v44 }
 0x53e   : > { %v4288_v40 = vadd.f32 %v4287_v13, %v4191_v43  ;;  %v4289_v28 = vpop.f32.mrb[27].mxu0  ;;  %v4409_v21 = vmax.f32 %v4282_v24, %v4393_v55 }
 0x53f   : > { %v4290_v16 = vadd.f32 %v4289_v28, %v4191_v43  ;;  %v4410_v27 = vmax.f32 %v4284_v44, %v4394_v34 }
 0x540   : > { %v4397_v41 = vmul.f32 0.01, %v4288_v40 }
 0x541   : > { %v4398_v57 = vmul.f32 0.01, %v4290_v16  ;;  %v4293_v54 = vpop.f32.mrb[28].mxu0 }
 0x542   : > { %v4413_v0 = vmax.f32 %v4288_v40, %v4397_v41  ;;  %v4294_v10 = vadd.f32 %v4293_v54, %v4196_v52  ;;  %v4295_v4 = vpop.f32.mrb[29].mxu0 }
 0x543   : > { %v4414_v26 = vmax.f32 %v4290_v16, %v4398_v57  ;;  %v4296_v50 = vadd.f32 %v4295_v4, %v4196_v52 }
 0x544   : > { %v4978_v14 = vpack.c.bf16 %v4413_v0, %v4409_v21  ;;  %v4401_v20 = vmul.f32 0.01, %v4294_v10  ;;  %v4430_v21 = vpop.permute.xlu0 %4429 }
 0x545   : > { %v4299_v42 = vpop.f32.mrb[30].mxu0  ;;  %v4976_v29 = vpack.c.bf16 %v4414_v26, %v4410_v27  ;;  %v4402_v1 = vmul.f32 0.01, %v4296_v50 }
 0x546   : > { %v4300_v31 = vadd.f32 %v4299_v42, %v4201_v2  ;;  %v4301_v6 = vpop.f32.mrb[31].mxu0  ;;  %v4417_v33 = vmax.f32 %v4294_v10, %v4401_v20 }
 0x547   : > { %v4302_v48 = vadd.f32 %v4301_v6, %v4201_v2  ;;  %4977 = vmatprep.subr.bf16.mxu0 %v4976_v29  ;;  %v4418_v59 = vmax.f32 %v4296_v50, %v4402_v1 }
 0x548   : > { %v4405_v63 = vmul.f32 0.01, %v4300_v31  ;;  %4979 = vmatpush1.bf16.msra.mxu0 %v4978_v14  ;;  %v5279_v14 = vmov 1966171168  }
 0x549   : > { %v4406_v46 = vmul.f32 0.01, %v4302_v48 }
 0x54a   : > { %v4421_v35 = vmax.f32 %v4300_v31, %v4405_v63 }
 0x54b   : > { %v4370_v39 = vpop.f32.mrb[24].mxu1  ;;  %v4422_v61 = vmax.f32 %v4302_v48, %v4406_v46 }
 0x54c   : > { %v4371_v49 = vadd.f32 %v4370_v39, %v4186_v23  ;;  %v4372_v7 = vpop.f32.mrb[25].mxu1  ;;  %v4982_v38 = vpack.c.bf16 %v4421_v35, %v4417_v33 }
 0x54d   : > { %v4373_v9 = vadd.f32 %v4372_v7, %v4186_v23  ;;  %v4980_v45 = vpack.c.bf16 %v4422_v61, %v4418_v59 }
 0x54e   : > { %v4395_v12 = vmul.f32 0.01, %v4371_v49 }
 0x54f   : > { %v4376_v11 = vpop.f32.mrb[26].mxu1  ;;  %4981 = vmatprep.subr.bf16.mxu0 %v4980_v45  ;;  %v4396_v51 = vmul.f32 0.01, %v4373_v9 }
 0x550   : > { %v4377_v8 = vadd.f32 %v4376_v11, %v4191_v43  ;;  %v4378_v53 = vpop.f32.mrb[27].mxu1  ;;  %4983 = vmatpush1.bf16.msra.mxu0 %v4982_v38  ;;  %v4411_v19 = vmax.f32 %v4371_v49, %v4395_v12 }
 0x551   : > { %v4379_v25 = vadd.f32 %v4378_v53, %v4191_v43  ;;  %v4412_v32 = vmax.f32 %v4373_v9, %v4396_v51 }
 0x552   : > { %v4399_v36 = vmul.f32 0.01, %v4377_v8 }
 0x553   : > { %v4400_v15 = vmul.f32 0.01, %v4379_v25  ;;  %v4382_v5 = vpop.f32.mrb[28].mxu1  ;;  %4902 = vmatmul.mubr.msk.f32.vlgmr.msra.gmra.mrb[32].mxu0 %vm3698_vm6, %v4425_v56 }
 0x554   : > { %v4415_v62 = vmax.f32 %v4377_v8, %v4399_v36  ;;  %v4383_v37 = vadd.f32 %v4382_v5, %v4196_v52  ;;  %v4384_v3 = vpop.f32.mrb[29].mxu1 }
 0x555   : > { %v4416_v30 = vmax.f32 %v4379_v25, %v4400_v15  ;;  %v4385_v17 = vadd.f32 %v4384_v3, %v4196_v52  ;;  %v4432_v52 = vlaneseq }
 0x556   : > { %v4986_v22 = vpack.c.bf16 %v4415_v62, %v4411_v19  ;;  %v4403_v23 = vmul.f32 0.01, %v4383_v37 }
 0x557   : > { %v4388_v18 = vpop.f32.mrb[30].mxu1  ;;  %v4984_v47 = vpack.c.bf16 %v4416_v30, %v4412_v32  ;;  %v4404_v60 = vmul.f32 0.01, %v4385_v17  ;;  %v4433_v57 = vshrl.u32 %v4432_v52, 7  ;;  %vm4612_vm15 = vcmp.lt.s32.totalorder %v4432_v52, 512 }
 0x558   : > { %v4389_v58 = vadd.f32 %v4388_v18, %v4201_v2  ;;  %v4390_v24 = vpop.f32.mrb[31].mxu1  ;;  %v4419_v55 = vmax.f32 %v4383_v37, %v4403_v23 }
 0x559   : > { %v4391_v44 = vadd.f32 %v4390_v24, %v4201_v2  ;;  %4985 = vmatprep.subr.bf16.mxu1 %v4984_v47  ;;  %v4420_v28 = vmax.f32 %v4385_v17, %v4404_v60  ;;  %v4434_v54 = vsub.s32 0, %v4433_v57  ;;  %v4588_v2 = vunpack.c.l.s4 %v5279_v14 }
 0x55a   : > { %v4407_v43 = vmul.f32 0.01, %v4389_v58  ;;  %4987 = vmatpush1.bf16.msra.mxu1 %v4986_v22 }
 0x55b   : > { %v4408_v13 = vmul.f32 0.01, %v4391_v44  ;;  %v4435_v0 = vrot.slane %v4430_v21, %v4434_v54  ;;  %v4589_v42 = vunpack.c.0.s8 %v4588_v2 }
 0x55c   : > { %v4423_v40 = vmax.f32 %v4389_v58, %v4407_v43 }
 0x55d   : > { %v4424_v34 = vmax.f32 %v4391_v44, %v4408_v13  ;;  %v4592_v29 = vsub.s32 %v4589_v42, %v4433_v57 }
 0x55e   : > { %v4990_v16 = vpack.c.bf16 %v4423_v40, %v4419_v55 }
 0x55f   : > { %v4988_v41 = vpack.c.bf16 %v4424_v34, %v4420_v28 }
 0x561   : > { %4989 = vmatprep.subr.bf16.mxu1 %v4988_v41 }
 0x562   : > { %4991 = vmatpush1.bf16.msra.mxu1 %v4990_v16 }
 0x565   : > { %4903 = vmatmul.mubr.msk.f32.vlgmr.msra.gmra.mrb[32].mxu1 %vm3698_vm6, %v4425_v56 }
 0x626   : > { %v4505_v10 = vpop.f32.mrb[32].mxu0 }
 0x627   : > { %v4506_v4 = vadd.f32 %v4505_v10, %v4435_v0  ;;  %v4507_v27 = vpop.f32.mrb[33].mxu0 }
 0x628   : > { %v4508_v26 = vadd.f32 %v4507_v27, %v4435_v0 }
 0x62a   : > { %v4585_v50 = vcombine.low %v4506_v4, %v4508_v26 }
 0x62c   : > { %v4593_v48 = vrot.slane %v4585_v50, %v4592_v29 }
 0x638   : > { %v4576_v20 = vpop.f32.mrb[32].mxu1 }
 0x639   : > { %v4577_v31 = vadd.f32 %v4576_v20, %v4435_v0  ;;  %v4578_v6 = vpop.f32.mrb[33].mxu1 }
 0x63a   : > { %v4579_v1 = vadd.f32 %v4578_v6, %v4435_v0 }
 0x63c   : > { %v4586_v63 = vcombine.low %v4577_v31, %v4579_v1 }
 0x63e   : > { %v4600_v46 = vrot.slane %v4586_v63, %v4592_v29 }
 0x640   : > { %v4601_v33 = vcombine.low %v4593_v48, %v4600_v46 }
 0x642   : > { %v4608_v35 = vrot.slane %v4601_v33, %v4592_v29 }
 0x644   : > { %4614 = vst.msk [vmem:[%s367_s29] sm:$0xf] %vm4612_vm15, %v4608_v35 }
 0x645   : > { %5204 = shalt.err (!%p5201_p5)
}
 0x646   : > { %s5205_s28 = scalar_lea.hbm %s7019_s17, 64  ;;  %s5209_s29 = scalar_lea.hbm %s7075_s9, 128 }
 0x647   : > { %p5206_p6 = scmp.ne.s32.totalorder %s7019_s17, %s5205_s28  ;;  %p5210_p10 = scmp.lt.u32.totalorder %s7019_s17, %s7075_s9 }
 0x648   : > { %p5211_p11 = scmp.lt.u32.totalorder %s5209_s29, %s5205_s28  ;;  %p5213_p13 = scmp.lt.u32.totalorder %s5205_s28, %s7019_s17 }
 0x649   : > { %p5207_p7 = pnand %p5206_p6, %p5374_p4 }
 0x64a   : > { %p5212_p12 = por %p5211_p11, %p5210_p10 }
 0x64b   : > { %p5208_p9 = pneg %p5207_p7 }
 0x64c   : > { %p5214_p0 = por %p5213_p13, %p5212_p12 }
 0x64e   : > { %p5215_p1 = pnand %p5214_p0, %p5208_p9 }
 0x650   : > { %5218 = shalt.err (!%p5215_p1)
}
 0x651   : > { %5072 = dma.vmem_to_hbm [thread:$0]  (%p5374_p4), %s7021_s30, 64, %s7019_s17, %s4616_s19  }
 0x652 PF: > { %p5078_p2 = scmp.ge.s32.totalorder %s5269_s16, 2  ;;  %s4644_s21 = sand.u32 1, %s5249_s11  }
 0x653   : > { %s4645_s14 = scalar_lea.sflag [#allocation4], %s4644_s21 }
 0x654   : > { %p5075_p3 = pnand %p5078_p2, %p5381_p8 }
 0x656   : > { %5244 = dma.done.wait (!%p5075_p3), %s4645_s14, 64  }
 0x657   : > { %5246 = vsyncadd (!%p5075_p3), %s4645_s14, 4294967232  ;;  %s24_s16 = sadd.s32 1, %s5269_s16   ;;  %s7117_s11 = smov %s5253_s12 }
 0x658   : > { %p21_p5 = scmp.ge.s32.totalorder %s24_s16, 4   ;;  %s7118_s12 = smov %s5257_s13 }
 0x659   : > { %s7119_s13 = smov %s5387_s23  ;;  %s7120_s14 = smov %s5265_s15 }
 0x65a   : > { %s7121_s15 = smov %s7123_s18  ;;  %23 = sbr.rel (!%p21_p5) target bundleno = 7 (0x7), region = 98 }
 0x661   :  { %4650 = vsyncpa [#allocation4], 1 }
 0x662   :  { %4652 = vsyncpa [#allocation4 + $0x1], 1 }

</bundles_post_ra>
